<compile_context>
chip_gen: v5e
topology: v5e:2x2
jax: 0.10.0
libtpu: 0.0.40
codegen_flags: <defaults>
</compile_context>

<pallas_src>
import functools

import jax
import jax.numpy as jnp
import numpy as np
from jax.experimental import pallas as pl
from jax.experimental.pallas import tpu as pltpu


def _resblock_kernel(x_ref, w1_ref, w2_ref, o_ref, xp_ref, *,
                     H, W, matmul_dtype):
    """One batch image per grid step.

    x_ref : (1, H, W, C)   activations (any float dtype; upcast to fp32 inside)
    w*_ref: (3, 3, Cin, Co) weights, already in `matmul_dtype`
    o_ref : (1, H, W, C)   output (caller's dtype)
    xp_ref: (H+2, Wpad, C) persistent reflection-pad scratch in `matmul_dtype`
    """
    x = x_ref[0]  # (H, W, C), caller's dtype

    def write_interior(val):
        # Single store of the conv input into the padded scratch (one cast to
        # the matmul dtype; no separate fp32 copy of the padded tensor).
        xp_ref[1:H + 1, 1:W + 1, :] = val.astype(matmul_dtype)

    def fill_borders():
        # ReflectionPad2d(1) borders, read back from the scratch interior.
        # Columns first, rows after, so the four corners pick up the padded
        # columns too (matches jnp.pad / PyTorch reflect corners).
        xp_ref[1:H + 1, 0:1, :] = xp_ref[1:H + 1, 2:3, :]                # left  <- col 1
        xp_ref[1:H + 1, W + 1:W + 2, :] = xp_ref[1:H + 1, W - 1:W, :]    # right <- col W-2
        xp_ref[0:1, 0:W + 2, :] = xp_ref[2:3, 0:W + 2, :]                # top   <- row 1
        xp_ref[H + 1:H + 2, 0:W + 2, :] = xp_ref[H - 1:H, 0:W + 2, :]    # bot   <- row H-2

    def conv3x3(w_ref):
        # 3x3 conv (bias-free, see header) as 9 shifted MXU matmuls with an
        # fp32 accumulator.  Expects the scratch interior already written.
        fill_borders()
        acc = None
        for dy in range(3):
            for dx in range(3):
                # NOTE: dx=1,2 tap reads start at a non-multiple-of-8 sublane
                # offset; if bundle dumps show relayouts at real C, switch to a
                # pre-shifted (3, H+2, W, C) scratch (header note).
                patch = xp_ref[dy:dy + H, dx:dx + W, :]
                d = jnp.dot(patch, w_ref[dy, dx],
                            preferred_element_type=jnp.float32)
                acc = d if acc is None else acc + d
        return acc

    def inst_norm(y):
        # InstanceNorm2d defaults: affine=False, eps=1e-5, biased variance,
        # stats over spatial dims.  Single sweep: var = E[y^2] - mean^2, fp32.
        mean = jnp.mean(y, axis=(0, 1), keepdims=True)
        mean_sq = jnp.mean(y * y, axis=(0, 1), keepdims=True)
        var = jnp.maximum(mean_sq - mean * mean, 0.0)
        return (y - mean) * jax.lax.rsqrt(var + 1e-5)

    write_interior(x)
    h = jnp.maximum(inst_norm(conv3x3(w1_ref)), 0.0)   # conv1 + IN + ReLU (fp32)
    write_interior(h)                                  # result straight into scratch
    h = inst_norm(conv3x3(w2_ref))                     # conv2 + IN (fp32)
    o_ref[0] = (x.astype(jnp.float32) + h).astype(o_ref.dtype)   # residual


def _hwio(w_oihw):
    """Conv2d weight OIHW -> HWIO (kh, kw, Cin, Cout)."""
    return jnp.transpose(w_oihw, (2, 3, 1, 0))


def residual_block_nhwc(x_nhwc, w1_hwio, w2_hwio, *,
                        matmul_dtype=jnp.bfloat16, out_dtype=None):
    """Primary entry point: NHWC activations (dtype preserved end-to-end: no
    wrapper-side converts / layout round trips), HWIO weights.

    matmul_dtype=bf16 is recommended on v5e/v6e/v7x alike (bf16-native MXUs);
    InstanceNorm / ReLU / residual always run in fp32 inside the kernel.
    """
    N, H, W, C = x_nhwc.shape
    out_dtype = x_nhwc.dtype if out_dtype is None else out_dtype
    w1k = w1_hwio.astype(matmul_dtype)
    w2k = w2_hwio.astype(matmul_dtype)

    # Scratch width: W+2 rounded up to a sublane multiple (16 for packed
    # sub-32-bit dtypes, 8 for fp32).  Columns past W+2 are never read.
    sub = 16 if jnp.dtype(matmul_dtype).itemsize < 4 else 8
    w_pad = -(-(W + 2) // sub) * sub

    kernel = functools.partial(_resblock_kernel, H=H, W=W,
                               matmul_dtype=matmul_dtype)

    def weight_spec():
        # Grid-invariant (constant index_map) => single-buffered: reclaims the
        # useless second buffer copy (matters at C>=128 under v7x's 64 MiB/TC).
        return pl.BlockSpec((3, 3, C, C), lambda n: (0, 0, 0, 0),
                            pipeline_mode=pl.Buffered(1))

    return pl.pallas_call(
        kernel,
        out_shape=jax.ShapeDtypeStruct((N, H, W, C), out_dtype),
        grid=(N,),
        in_specs=[
            pl.BlockSpec((1, H, W, C), lambda n: (n, 0, 0, 0)),
            weight_spec(),
            weight_spec(),
        ],
        out_specs=pl.BlockSpec((1, H, W, C), lambda n: (n, 0, 0, 0)),
        scratch_shapes=[pltpu.VMEM((H + 2, w_pad, C), matmul_dtype)],
        compiler_params=pltpu.CompilerParams(
            dimension_semantics=("parallel",),
            # <=40 MiB leaves compiler-scratch headroom on v7x (64 MiB/TC);
            # re-derive with block sizes at real CycleGAN shapes (v5e/v6e have
            # 128 MiB physical and can go higher).
            vmem_limit_bytes=40 * 1024 * 1024),
    )(x_nhwc, w1k, w2k)


def residual_block(x_nchw, w1, b1, w2, b2, *, matmul_dtype=jnp.bfloat16):
    """PyTorch-layout compat wrapper (NCHW in/out, OIHW weights).

    b1/b2 are accepted for module parity but unused: a per-channel bias added
    before an affine=False InstanceNorm is cancelled exactly by the mean
    subtraction and does not change the variance.
    Note: the two transposes are HBM round trips -- keep the surrounding model
    in NHWC and call residual_block_nhwc directly to avoid them.
    """
    del b1, b2
    x_nhwc = jnp.transpose(x_nchw, (0, 2, 3, 1))
    out_nhwc = residual_block_nhwc(x_nhwc, _hwio(w1), _hwio(w2),
                                   matmul_dtype=matmul_dtype)
    return jnp.transpose(out_nhwc, (0, 3, 1, 2))


def residual_block_ref(x, w1, b1, w2, b2):
    """Pure-JAX reference (independent path: lax.conv + jnp.pad reflect),
    including the conv biases exactly as the PyTorch module would."""
    def conv(x, w, b):
        xp = jnp.pad(x, ((0, 0), (0, 0), (1, 1), (1, 1)), mode="reflect")
        y = jax.lax.conv_general_dilated(
            xp, w, window_strides=(1, 1), padding="VALID",
            dimension_numbers=("NCHW", "OIHW", "NCHW"))
        return y + b[None, :, None, None]

    def inorm(y):
        m = y.mean(axis=(2, 3), keepdims=True)
        v = ((y - m) ** 2).mean(axis=(2, 3), keepdims=True)
        return (y - m) / jnp.sqrt(v + 1e-5)

    h = jax.nn.relu(inorm(conv(x, w1, b1)))
    h = inorm(conv(h, w2, b2))
    return x + h


if __name__ == "__main__":
    N, C, H, W = 2, 4, 16, 16

    key = jax.random.PRNGKey(0)
    kx, kw1, kb1, kw2, kb2 = jax.random.split(key, 5)

    x = jax.random.normal(kx, (N, C, H, W), dtype=jnp.float32)
    w1 = jax.random.normal(kw1, (C, C, 3, 3), dtype=jnp.float32) * 0.1
    b1 = jax.random.normal(kb1, (C,), dtype=jnp.float32) * 0.1
    w2 = jax.random.normal(kw2, (C, C, 3, 3), dtype=jnp.float32) * 0.1
    b2 = jax.random.normal(kb2, (C,), dtype=jnp.float32) * 0.1

    ref = jax.block_until_ready(residual_block_ref(x, w1, b1, w2, b2))

    # 1) fp32 MXU path via the PyTorch-layout wrapper (strict check; also
    #    verifies bias-cancellation and the single-pass variance numerics).
    out = jax.block_until_ready(
        residual_block(x, w1, b1, w2, b2, matmul_dtype=jnp.float32))
    assert out.shape == (N, C, H, W) and out.dtype == jnp.float32
    np.testing.assert_allclose(np.asarray(out), np.asarray(ref),
                               rtol=1e-4, atol=1e-4)

    # 2) Production path: NHWC, bf16 activations in/out, bf16 MXU operands
    #    (recommended on v5e/v6e/v7x alike); norms/accumulation stay fp32.
    x_nhwc_bf16 = jnp.transpose(x, (0, 2, 3, 1)).astype(jnp.bfloat16)
    out_bf16 = jax.block_until_ready(
        residual_block_nhwc(x_nhwc_bf16, _hwio(w1), _hwio(w2)))
    assert out_bf16.shape == (N, H, W, C) and out_bf16.dtype == jnp.bfloat16
    ref_nhwc = jnp.transpose(ref, (0, 2, 3, 1))
    np.testing.assert_allclose(np.asarray(out_bf16, dtype=np.float32),
                               np.asarray(ref_nhwc),
                               rtol=5e-2, atol=1e-1)

    print("KERNEL_OK")
</pallas_src>

<mosaic_0001>
module attributes {stable_mosaic.version = 11 : i64} {
  func.func @_resblock_kernel(%arg0: i32, %arg1: memref<1x16x16x4xf32, #tpu.memory_space<vmem>>, %arg2: memref<3x3x4x4xf32, #tpu.memory_space<vmem>>, %arg3: memref<3x3x4x4xf32, #tpu.memory_space<vmem>>, %arg4: memref<1x16x16x4xf32, #tpu.memory_space<vmem>>, %arg5: memref<18x24x4xf32, #tpu.memory_space<vmem>>) attributes {dimension_semantics = [#tpu.dimension_semantics<parallel>], iteration_bounds = array<i64: 2>, scalar_prefetch = 0 : i64, scratch_operands = 1 : i64, tpu.core_type = #tpu.core_type<tc>, window_params = [{transform_indices = @transform_0, window_bounds = array<i64: 1, 16, 16, 4>}, {pipeline_mode = #tpu.pipeline_mode<synchronous>, transform_indices = @transform_1, window_bounds = array<i64: 3, 3, 4, 4>}, {pipeline_mode = #tpu.pipeline_mode<synchronous>, transform_indices = @transform_2, window_bounds = array<i64: 3, 3, 4, 4>}, {transform_indices = @transform_3, window_bounds = array<i64: 1, 16, 16, 4>}]} {
    %c0 = arith.constant 0 : index
    %c0_0 = arith.constant 0 : index
    %c0_1 = arith.constant 0 : index
    %c0_2 = arith.constant 0 : index
    %0 = vector.load %arg1[%c0, %c0_0, %c0_1, %c0_2] : memref<1x16x16x4xf32, #tpu.memory_space<vmem>>, vector<1x16x16x4xf32>
    %1 = vector.shape_cast %0 : vector<1x16x16x4xf32> to vector<16x16x4xf32>
    %c1 = arith.constant 1 : index
    %c1_3 = arith.constant 1 : index
    %c0_4 = arith.constant 0 : index
    %2 = vector.load %arg5[%c1, %c1_3, %c0_4] : memref<18x24x4xf32, #tpu.memory_space<vmem>>, vector<16x16x4xf32>
    tpu.vector_store %arg5[%c1, %c1_3, %c0_4], %1 {strides = array<i32>} : memref<18x24x4xf32, #tpu.memory_space<vmem>>, vector<16x16x4xf32>,
    %c1_5 = arith.constant 1 : index
    %c2 = arith.constant 2 : index
    %c0_6 = arith.constant 0 : index
    %3 = vector.load %arg5[%c1_5, %c2, %c0_6] : memref<18x24x4xf32, #tpu.memory_space<vmem>>, vector<16x1x4xf32>
    %c1_7 = arith.constant 1 : index
    %c0_8 = arith.constant 0 : index
    %c0_9 = arith.constant 0 : index
    %4 = vector.load %arg5[%c1_7, %c0_8, %c0_9] : memref<18x24x4xf32, #tpu.memory_space<vmem>>, vector<16x1x4xf32>
    tpu.vector_store %arg5[%c1_7, %c0_8, %c0_9], %3 {strides = array<i32>} : memref<18x24x4xf32, #tpu.memory_space<vmem>>, vector<16x1x4xf32>,
    %c1_10 = arith.constant 1 : index
    %c15 = arith.constant 15 : index
    %c0_11 = arith.constant 0 : index
    %5 = vector.load %arg5[%c1_10, %c15, %c0_11] : memref<18x24x4xf32, #tpu.memory_space<vmem>>, vector<16x1x4xf32>
    %c1_12 = arith.constant 1 : index
    %c17 = arith.constant 17 : index
    %c0_13 = arith.constant 0 : index
    %6 = vector.load %arg5[%c1_12, %c17, %c0_13] : memref<18x24x4xf32, #tpu.memory_space<vmem>>, vector<16x1x4xf32>
    tpu.vector_store %arg5[%c1_12, %c17, %c0_13], %5 {strides = array<i32>} : memref<18x24x4xf32, #tpu.memory_space<vmem>>, vector<16x1x4xf32>,
    %c2_14 = arith.constant 2 : index
    %c0_15 = arith.constant 0 : index
    %c0_16 = arith.constant 0 : index
    %7 = vector.load %arg5[%c2_14, %c0_15, %c0_16] : memref<18x24x4xf32, #tpu.memory_space<vmem>>, vector<1x18x4xf32>
    %c0_17 = arith.constant 0 : index
    %c0_18 = arith.constant 0 : index
    %c0_19 = arith.constant 0 : index
    %8 = vector.load %arg5[%c0_17, %c0_18, %c0_19] : memref<18x24x4xf32, #tpu.memory_space<vmem>>, vector<1x18x4xf32>
    tpu.vector_store %arg5[%c0_17, %c0_18, %c0_19], %7 {strides = array<i32>} : memref<18x24x4xf32, #tpu.memory_space<vmem>>, vector<1x18x4xf32>,
    %c15_20 = arith.constant 15 : index
    %c0_21 = arith.constant 0 : index
    %c0_22 = arith.constant 0 : index
    %9 = vector.load %arg5[%c15_20, %c0_21, %c0_22] : memref<18x24x4xf32, #tpu.memory_space<vmem>>, vector<1x18x4xf32>
    %c17_23 = arith.constant 17 : index
    %c0_24 = arith.constant 0 : index
    %c0_25 = arith.constant 0 : index
    %10 = vector.load %arg5[%c17_23, %c0_24, %c0_25] : memref<18x24x4xf32, #tpu.memory_space<vmem>>, vector<1x18x4xf32>
    tpu.vector_store %arg5[%c17_23, %c0_24, %c0_25], %9 {strides = array<i32>} : memref<18x24x4xf32, #tpu.memory_space<vmem>>, vector<1x18x4xf32>,
    %c0_26 = arith.constant 0 : index
    %c0_27 = arith.constant 0 : index
    %c0_28 = arith.constant 0 : index
    %11 = vector.load %arg5[%c0_26, %c0_27, %c0_28] : memref<18x24x4xf32, #tpu.memory_space<vmem>>, vector<16x16x4xf32>
    %c0_29 = arith.constant 0 : index
    %c0_30 = arith.constant 0 : index
    %c0_31 = arith.constant 0 : index
    %c0_32 = arith.constant 0 : index
    %12 = vector.load %arg2[%c0_29, %c0_30, %c0_31, %c0_32] : memref<3x3x4x4xf32, #tpu.memory_space<vmem>>, vector<1x1x4x4xf32>
    %13 = vector.shape_cast %12 : vector<1x1x4x4xf32> to vector<4x4xf32>
    %cst = arith.constant dense<0.000000e+00> : vector<16x16x4xf32>
    %14 = tpu.matmul %11, %13, %cst {dimension_numbers = #tpu.dot_dimension_numbers<[2], [0], [0, 1], [1], [0, 0, 0, 1, 1, 1], [], []>} : vector<16x16x4xf32>, vector<4x4xf32>, vector<16x16x4xf32> -> vector<16x16x4xf32>
    %c0_33 = arith.constant 0 : index
    %c1_34 = arith.constant 1 : index
    %c0_35 = arith.constant 0 : index
    %15 = vector.load %arg5[%c0_33, %c1_34, %c0_35] : memref<18x24x4xf32, #tpu.memory_space<vmem>>, vector<16x16x4xf32>
    %c0_36 = arith.constant 0 : index
    %c1_37 = arith.constant 1 : index
    %c0_38 = arith.constant 0 : index
    %c0_39 = arith.constant 0 : index
    %16 = vector.load %arg2[%c0_36, %c1_37, %c0_38, %c0_39] : memref<3x3x4x4xf32, #tpu.memory_space<vmem>>, vector<1x1x4x4xf32>
    %17 = vector.shape_cast %16 : vector<1x1x4x4xf32> to vector<4x4xf32>
    %cst_40 = arith.constant dense<0.000000e+00> : vector<16x16x4xf32>
    %18 = tpu.matmul %15, %17, %cst_40 {dimension_numbers = #tpu.dot_dimension_numbers<[2], [0], [0, 1], [1], [0, 0, 0, 1, 1, 1], [], []>} : vector<16x16x4xf32>, vector<4x4xf32>, vector<16x16x4xf32> -> vector<16x16x4xf32>
    %19 = arith.addf %14, %18 : vector<16x16x4xf32>
    %c0_41 = arith.constant 0 : index
    %c2_42 = arith.constant 2 : index
    %c0_43 = arith.constant 0 : index
    %20 = vector.load %arg5[%c0_41, %c2_42, %c0_43] : memref<18x24x4xf32, #tpu.memory_space<vmem>>, vector<16x16x4xf32>
    %c0_44 = arith.constant 0 : index
    %c2_45 = arith.constant 2 : index
    %c0_46 = arith.constant 0 : index
    %c0_47 = arith.constant 0 : index
    %21 = vector.load %arg2[%c0_44, %c2_45, %c0_46, %c0_47] : memref<3x3x4x4xf32, #tpu.memory_space<vmem>>, vector<1x1x4x4xf32>
    %22 = vector.shape_cast %21 : vector<1x1x4x4xf32> to vector<4x4xf32>
    %cst_48 = arith.constant dense<0.000000e+00> : vector<16x16x4xf32>
    %23 = tpu.matmul %20, %22, %cst_48 {dimension_numbers = #tpu.dot_dimension_numbers<[2], [0], [0, 1], [1], [0, 0, 0, 1, 1, 1], [], []>} : vector<16x16x4xf32>, vector<4x4xf32>, vector<16x16x4xf32> -> vector<16x16x4xf32>
    %24 = arith.addf %19, %23 : vector<16x16x4xf32>
    %c1_49 = arith.constant 1 : index
    %c0_50 = arith.constant 0 : index
    %c0_51 = arith.constant 0 : index
    %25 = vector.load %arg5[%c1_49, %c0_50, %c0_51] : memref<18x24x4xf32, #tpu.memory_space<vmem>>, vector<16x16x4xf32>
    %c1_52 = arith.constant 1 : index
    %c0_53 = arith.constant 0 : index
    %c0_54 = arith.constant 0 : index
    %c0_55 = arith.constant 0 : index
    %26 = vector.load %arg2[%c1_52, %c0_53, %c0_54, %c0_55] : memref<3x3x4x4xf32, #tpu.memory_space<vmem>>, vector<1x1x4x4xf32>
    %27 = vector.shape_cast %26 : vector<1x1x4x4xf32> to vector<4x4xf32>
    %cst_56 = arith.constant dense<0.000000e+00> : vector<16x16x4xf32>
    %28 = tpu.matmul %25, %27, %cst_56 {dimension_numbers = #tpu.dot_dimension_numbers<[2], [0], [0, 1], [1], [0, 0, 0, 1, 1, 1], [], []>} : vector<16x16x4xf32>, vector<4x4xf32>, vector<16x16x4xf32> -> vector<16x16x4xf32>
    %29 = arith.addf %24, %28 : vector<16x16x4xf32>
    %c1_57 = arith.constant 1 : index
    %c1_58 = arith.constant 1 : index
    %c0_59 = arith.constant 0 : index
    %30 = vector.load %arg5[%c1_57, %c1_58, %c0_59] : memref<18x24x4xf32, #tpu.memory_space<vmem>>, vector<16x16x4xf32>
    %c1_60 = arith.constant 1 : index
    %c1_61 = arith.constant 1 : index
    %c0_62 = arith.constant 0 : index
    %c0_63 = arith.constant 0 : index
    %31 = vector.load %arg2[%c1_60, %c1_61, %c0_62, %c0_63] : memref<3x3x4x4xf32, #tpu.memory_space<vmem>>, vector<1x1x4x4xf32>
    %32 = vector.shape_cast %31 : vector<1x1x4x4xf32> to vector<4x4xf32>
    %cst_64 = arith.constant dense<0.000000e+00> : vector<16x16x4xf32>
    %33 = tpu.matmul %30, %32, %cst_64 {dimension_numbers = #tpu.dot_dimension_numbers<[2], [0], [0, 1], [1], [0, 0, 0, 1, 1, 1], [], []>} : vector<16x16x4xf32>, vector<4x4xf32>, vector<16x16x4xf32> -> vector<16x16x4xf32>
    %34 = arith.addf %29, %33 : vector<16x16x4xf32>
    %c1_65 = arith.constant 1 : index
    %c2_66 = arith.constant 2 : index
    %c0_67 = arith.constant 0 : index
    %35 = vector.load %arg5[%c1_65, %c2_66, %c0_67] : memref<18x24x4xf32, #tpu.memory_space<vmem>>, vector<16x16x4xf32>
    %c1_68 = arith.constant 1 : index
    %c2_69 = arith.constant 2 : index
    %c0_70 = arith.constant 0 : index
    %c0_71 = arith.constant 0 : index
    %36 = vector.load %arg2[%c1_68, %c2_69, %c0_70, %c0_71] : memref<3x3x4x4xf32, #tpu.memory_space<vmem>>, vector<1x1x4x4xf32>
    %37 = vector.shape_cast %36 : vector<1x1x4x4xf32> to vector<4x4xf32>
    %cst_72 = arith.constant dense<0.000000e+00> : vector<16x16x4xf32>
    %38 = tpu.matmul %35, %37, %cst_72 {dimension_numbers = #tpu.dot_dimension_numbers<[2], [0], [0, 1], [1], [0, 0, 0, 1, 1, 1], [], []>} : vector<16x16x4xf32>, vector<4x4xf32>, vector<16x16x4xf32> -> vector<16x16x4xf32>
    %39 = arith.addf %34, %38 : vector<16x16x4xf32>
    %c2_73 = arith.constant 2 : index
    %c0_74 = arith.constant 0 : index
    %c0_75 = arith.constant 0 : index
    %40 = vector.load %arg5[%c2_73, %c0_74, %c0_75] : memref<18x24x4xf32, #tpu.memory_space<vmem>>, vector<16x16x4xf32>
    %c2_76 = arith.constant 2 : index
    %c0_77 = arith.constant 0 : index
    %c0_78 = arith.constant 0 : index
    %c0_79 = arith.constant 0 : index
    %41 = vector.load %arg2[%c2_76, %c0_77, %c0_78, %c0_79] : memref<3x3x4x4xf32, #tpu.memory_space<vmem>>, vector<1x1x4x4xf32>
    %42 = vector.shape_cast %41 : vector<1x1x4x4xf32> to vector<4x4xf32>
    %cst_80 = arith.constant dense<0.000000e+00> : vector<16x16x4xf32>
    %43 = tpu.matmul %40, %42, %cst_80 {dimension_numbers = #tpu.dot_dimension_numbers<[2], [0], [0, 1], [1], [0, 0, 0, 1, 1, 1], [], []>} : vector<16x16x4xf32>, vector<4x4xf32>, vector<16x16x4xf32> -> vector<16x16x4xf32>
    %44 = arith.addf %39, %43 : vector<16x16x4xf32>
    %c2_81 = arith.constant 2 : index
    %c1_82 = arith.constant 1 : index
    %c0_83 = arith.constant 0 : index
    %45 = vector.load %arg5[%c2_81, %c1_82, %c0_83] : memref<18x24x4xf32, #tpu.memory_space<vmem>>, vector<16x16x4xf32>
    %c2_84 = arith.constant 2 : index
    %c1_85 = arith.constant 1 : index
    %c0_86 = arith.constant 0 : index
    %c0_87 = arith.constant 0 : index
    %46 = vector.load %arg2[%c2_84, %c1_85, %c0_86, %c0_87] : memref<3x3x4x4xf32, #tpu.memory_space<vmem>>, vector<1x1x4x4xf32>
    %47 = vector.shape_cast %46 : vector<1x1x4x4xf32> to vector<4x4xf32>
    %cst_88 = arith.constant dense<0.000000e+00> : vector<16x16x4xf32>
    %48 = tpu.matmul %45, %47, %cst_88 {dimension_numbers = #tpu.dot_dimension_numbers<[2], [0], [0, 1], [1], [0, 0, 0, 1, 1, 1], [], []>} : vector<16x16x4xf32>, vector<4x4xf32>, vector<16x16x4xf32> -> vector<16x16x4xf32>
    %49 = arith.addf %44, %48 : vector<16x16x4xf32>
    %c2_89 = arith.constant 2 : index
    %c2_90 = arith.constant 2 : index
    %c0_91 = arith.constant 0 : index
    %50 = vector.load %arg5[%c2_89, %c2_90, %c0_91] : memref<18x24x4xf32, #tpu.memory_space<vmem>>, vector<16x16x4xf32>
    %c2_92 = arith.constant 2 : index
    %c2_93 = arith.constant 2 : index
    %c0_94 = arith.constant 0 : index
    %c0_95 = arith.constant 0 : index
    %51 = vector.load %arg2[%c2_92, %c2_93, %c0_94, %c0_95] : memref<3x3x4x4xf32, #tpu.memory_space<vmem>>, vector<1x1x4x4xf32>
    %52 = vector.shape_cast %51 : vector<1x1x4x4xf32> to vector<4x4xf32>
    %cst_96 = arith.constant dense<0.000000e+00> : vector<16x16x4xf32>
    %53 = tpu.matmul %50, %52, %cst_96 {dimension_numbers = #tpu.dot_dimension_numbers<[2], [0], [0, 1], [1], [0, 0, 0, 1, 1, 1], [], []>} : vector<16x16x4xf32>, vector<4x4xf32>, vector<16x16x4xf32> -> vector<16x16x4xf32>
    %54 = arith.addf %49, %53 : vector<16x16x4xf32>
    %cst_97 = arith.constant dense<0.000000e+00> : vector<4xf32>
    %55 = vector.multi_reduction <add>, %54, %cst_97 [0, 1] : vector<16x16x4xf32> to vector<4xf32>
    %56 = vector.shape_cast %55 : vector<4xf32> to vector<1x1x4xf32>
    %cst_98 = arith.constant 2.560000e+02 : f32
    %57 = vector.broadcast %cst_98 : f32 to vector<1x1x4xf32>
    %58 = arith.divf %56, %57 : vector<1x1x4xf32>
    %59 = arith.mulf %54, %54 : vector<16x16x4xf32>
    %cst_99 = arith.constant dense<0.000000e+00> : vector<4xf32>
    %60 = vector.multi_reduction <add>, %59, %cst_99 [0, 1] : vector<16x16x4xf32> to vector<4xf32>
    %61 = vector.shape_cast %60 : vector<4xf32> to vector<1x1x4xf32>
    %cst_100 = arith.constant 2.560000e+02 : f32
    %62 = vector.broadcast %cst_100 : f32 to vector<1x1x4xf32>
    %63 = arith.divf %61, %62 : vector<1x1x4xf32>
    %64 = arith.mulf %58, %58 : vector<1x1x4xf32>
    %65 = arith.subf %63, %64 : vector<1x1x4xf32>
    %cst_101 = arith.constant 0.000000e+00 : f32
    %66 = vector.broadcast %cst_101 : f32 to vector<1x1x4xf32>
    %67 = arith.maximumf %65, %66 : vector<1x1x4xf32>
    %68 = vector.broadcast %58 : vector<1x1x4xf32> to vector<16x16x4xf32>
    %69 = arith.subf %54, %68 : vector<16x16x4xf32>
    %cst_102 = arith.constant 9.99999974E-6 : f32
    %70 = vector.broadcast %cst_102 : f32 to vector<1x1x4xf32>
    %71 = arith.addf %67, %70 : vector<1x1x4xf32>
    %72 = math.rsqrt %71 : vector<1x1x4xf32>
    %73 = vector.broadcast %72 : vector<1x1x4xf32> to vector<16x16x4xf32>
    %74 = arith.mulf %69, %73 : vector<16x16x4xf32>
    %cst_103 = arith.constant 0.000000e+00 : f32
    %75 = vector.broadcast %cst_103 : f32 to vector<16x16x4xf32>
    %76 = arith.maximumf %74, %75 : vector<16x16x4xf32>
    %c1_104 = arith.constant 1 : index
    %c1_105 = arith.constant 1 : index
    %c0_106 = arith.constant 0 : index
    %77 = vector.load %arg5[%c1_104, %c1_105, %c0_106] : memref<18x24x4xf32, #tpu.memory_space<vmem>>, vector<16x16x4xf32>
    tpu.vector_store %arg5[%c1_104, %c1_105, %c0_106], %76 {strides = array<i32>} : memref<18x24x4xf32, #tpu.memory_space<vmem>>, vector<16x16x4xf32>,
    %c1_107 = arith.constant 1 : index
    %c2_108 = arith.constant 2 : index
    %c0_109 = arith.constant 0 : index
    %78 = vector.load %arg5[%c1_107, %c2_108, %c0_109] : memref<18x24x4xf32, #tpu.memory_space<vmem>>, vector<16x1x4xf32>
    %c1_110 = arith.constant 1 : index
    %c0_111 = arith.constant 0 : index
    %c0_112 = arith.constant 0 : index
    %79 = vector.load %arg5[%c1_110, %c0_111, %c0_112] : memref<18x24x4xf32, #tpu.memory_space<vmem>>, vector<16x1x4xf32>
    tpu.vector_store %arg5[%c1_110, %c0_111, %c0_112], %78 {strides = array<i32>} : memref<18x24x4xf32, #tpu.memory_space<vmem>>, vector<16x1x4xf32>,
    %c1_113 = arith.constant 1 : index
    %c15_114 = arith.constant 15 : index
    %c0_115 = arith.constant 0 : index
    %80 = vector.load %arg5[%c1_113, %c15_114, %c0_115] : memref<18x24x4xf32, #tpu.memory_space<vmem>>, vector<16x1x4xf32>
    %c1_116 = arith.constant 1 : index
    %c17_117 = arith.constant 17 : index
    %c0_118 = arith.constant 0 : index
    %81 = vector.load %arg5[%c1_116, %c17_117, %c0_118] : memref<18x24x4xf32, #tpu.memory_space<vmem>>, vector<16x1x4xf32>
    tpu.vector_store %arg5[%c1_116, %c17_117, %c0_118], %80 {strides = array<i32>} : memref<18x24x4xf32, #tpu.memory_space<vmem>>, vector<16x1x4xf32>,
    %c2_119 = arith.constant 2 : index
    %c0_120 = arith.constant 0 : index
    %c0_121 = arith.constant 0 : index
    %82 = vector.load %arg5[%c2_119, %c0_120, %c0_121] : memref<18x24x4xf32, #tpu.memory_space<vmem>>, vector<1x18x4xf32>
    %c0_122 = arith.constant 0 : index
    %c0_123 = arith.constant 0 : index
    %c0_124 = arith.constant 0 : index
    %83 = vector.load %arg5[%c0_122, %c0_123, %c0_124] : memref<18x24x4xf32, #tpu.memory_space<vmem>>, vector<1x18x4xf32>
    tpu.vector_store %arg5[%c0_122, %c0_123, %c0_124], %82 {strides = array<i32>} : memref<18x24x4xf32, #tpu.memory_space<vmem>>, vector<1x18x4xf32>,
    %c15_125 = arith.constant 15 : index
    %c0_126 = arith.constant 0 : index
    %c0_127 = arith.constant 0 : index
    %84 = vector.load %arg5[%c15_125, %c0_126, %c0_127] : memref<18x24x4xf32, #tpu.memory_space<vmem>>, vector<1x18x4xf32>
    %c17_128 = arith.constant 17 : index
    %c0_129 = arith.constant 0 : index
    %c0_130 = arith.constant 0 : index
    %85 = vector.load %arg5[%c17_128, %c0_129, %c0_130] : memref<18x24x4xf32, #tpu.memory_space<vmem>>, vector<1x18x4xf32>
    tpu.vector_store %arg5[%c17_128, %c0_129, %c0_130], %84 {strides = array<i32>} : memref<18x24x4xf32, #tpu.memory_space<vmem>>, vector<1x18x4xf32>,
    %c0_131 = arith.constant 0 : index
    %c0_132 = arith.constant 0 : index
    %c0_133 = arith.constant 0 : index
    %86 = vector.load %arg5[%c0_131, %c0_132, %c0_133] : memref<18x24x4xf32, #tpu.memory_space<vmem>>, vector<16x16x4xf32>
    %c0_134 = arith.constant 0 : index
    %c0_135 = arith.constant 0 : index
    %c0_136 = arith.constant 0 : index
    %c0_137 = arith.constant 0 : index
    %87 = vector.load %arg3[%c0_134, %c0_135, %c0_136, %c0_137] : memref<3x3x4x4xf32, #tpu.memory_space<vmem>>, vector<1x1x4x4xf32>
    %88 = vector.shape_cast %87 : vector<1x1x4x4xf32> to vector<4x4xf32>
    %cst_138 = arith.constant dense<0.000000e+00> : vector<16x16x4xf32>
    %89 = tpu.matmul %86, %88, %cst_138 {dimension_numbers = #tpu.dot_dimension_numbers<[2], [0], [0, 1], [1], [0, 0, 0, 1, 1, 1], [], []>} : vector<16x16x4xf32>, vector<4x4xf32>, vector<16x16x4xf32> -> vector<16x16x4xf32>
    %c0_139 = arith.constant 0 : index
    %c1_140 = arith.constant 1 : index
    %c0_141 = arith.constant 0 : index
    %90 = vector.load %arg5[%c0_139, %c1_140, %c0_141] : memref<18x24x4xf32, #tpu.memory_space<vmem>>, vector<16x16x4xf32>
    %c0_142 = arith.constant 0 : index
    %c1_143 = arith.constant 1 : index
    %c0_144 = arith.constant 0 : index
    %c0_145 = arith.constant 0 : index
    %91 = vector.load %arg3[%c0_142, %c1_143, %c0_144, %c0_145] : memref<3x3x4x4xf32, #tpu.memory_space<vmem>>, vector<1x1x4x4xf32>
    %92 = vector.shape_cast %91 : vector<1x1x4x4xf32> to vector<4x4xf32>
    %cst_146 = arith.constant dense<0.000000e+00> : vector<16x16x4xf32>
    %93 = tpu.matmul %90, %92, %cst_146 {dimension_numbers = #tpu.dot_dimension_numbers<[2], [0], [0, 1], [1], [0, 0, 0, 1, 1, 1], [], []>} : vector<16x16x4xf32>, vector<4x4xf32>, vector<16x16x4xf32> -> vector<16x16x4xf32>
    %94 = arith.addf %89, %93 : vector<16x16x4xf32>
    %c0_147 = arith.constant 0 : index
    %c2_148 = arith.constant 2 : index
    %c0_149 = arith.constant 0 : index
    %95 = vector.load %arg5[%c0_147, %c2_148, %c0_149] : memref<18x24x4xf32, #tpu.memory_space<vmem>>, vector<16x16x4xf32>
    %c0_150 = arith.constant 0 : index
    %c2_151 = arith.constant 2 : index
    %c0_152 = arith.constant 0 : index
    %c0_153 = arith.constant 0 : index
    %96 = vector.load %arg3[%c0_150, %c2_151, %c0_152, %c0_153] : memref<3x3x4x4xf32, #tpu.memory_space<vmem>>, vector<1x1x4x4xf32>
    %97 = vector.shape_cast %96 : vector<1x1x4x4xf32> to vector<4x4xf32>
    %cst_154 = arith.constant dense<0.000000e+00> : vector<16x16x4xf32>
    %98 = tpu.matmul %95, %97, %cst_154 {dimension_numbers = #tpu.dot_dimension_numbers<[2], [0], [0, 1], [1], [0, 0, 0, 1, 1, 1], [], []>} : vector<16x16x4xf32>, vector<4x4xf32>, vector<16x16x4xf32> -> vector<16x16x4xf32>
    %99 = arith.addf %94, %98 : vector<16x16x4xf32>
    %c1_155 = arith.constant 1 : index
    %c0_156 = arith.constant 0 : index
    %c0_157 = arith.constant 0 : index
    %100 = vector.load %arg5[%c1_155, %c0_156, %c0_157] : memref<18x24x4xf32, #tpu.memory_space<vmem>>, vector<16x16x4xf32>
    %c1_158 = arith.constant 1 : index
    %c0_159 = arith.constant 0 : index
    %c0_160 = arith.constant 0 : index
    %c0_161 = arith.constant 0 : index
    %101 = vector.load %arg3[%c1_158, %c0_159, %c0_160, %c0_161] : memref<3x3x4x4xf32, #tpu.memory_space<vmem>>, vector<1x1x4x4xf32>
    %102 = vector.shape_cast %101 : vector<1x1x4x4xf32> to vector<4x4xf32>
    %cst_162 = arith.constant dense<0.000000e+00> : vector<16x16x4xf32>
    %103 = tpu.matmul %100, %102, %cst_162 {dimension_numbers = #tpu.dot_dimension_numbers<[2], [0], [0, 1], [1], [0, 0, 0, 1, 1, 1], [], []>} : vector<16x16x4xf32>, vector<4x4xf32>, vector<16x16x4xf32> -> vector<16x16x4xf32>
    %104 = arith.addf %99, %103 : vector<16x16x4xf32>
    %c1_163 = arith.constant 1 : index
    %c1_164 = arith.constant 1 : index
    %c0_165 = arith.constant 0 : index
    %105 = vector.load %arg5[%c1_163, %c1_164, %c0_165] : memref<18x24x4xf32, #tpu.memory_space<vmem>>, vector<16x16x4xf32>
    %c1_166 = arith.constant 1 : index
    %c1_167 = arith.constant 1 : index
    %c0_168 = arith.constant 0 : index
    %c0_169 = arith.constant 0 : index
    %106 = vector.load %arg3[%c1_166, %c1_167, %c0_168, %c0_169] : memref<3x3x4x4xf32, #tpu.memory_space<vmem>>, vector<1x1x4x4xf32>
    %107 = vector.shape_cast %106 : vector<1x1x4x4xf32> to vector<4x4xf32>
    %cst_170 = arith.constant dense<0.000000e+00> : vector<16x16x4xf32>
    %108 = tpu.matmul %105, %107, %cst_170 {dimension_numbers = #tpu.dot_dimension_numbers<[2], [0], [0, 1], [1], [0, 0, 0, 1, 1, 1], [], []>} : vector<16x16x4xf32>, vector<4x4xf32>, vector<16x16x4xf32> -> vector<16x16x4xf32>
    %109 = arith.addf %104, %108 : vector<16x16x4xf32>
    %c1_171 = arith.constant 1 : index
    %c2_172 = arith.constant 2 : index
    %c0_173 = arith.constant 0 : index
    %110 = vector.load %arg5[%c1_171, %c2_172, %c0_173] : memref<18x24x4xf32, #tpu.memory_space<vmem>>, vector<16x16x4xf32>
    %c1_174 = arith.constant 1 : index
    %c2_175 = arith.constant 2 : index
    %c0_176 = arith.constant 0 : index
    %c0_177 = arith.constant 0 : index
    %111 = vector.load %arg3[%c1_174, %c2_175, %c0_176, %c0_177] : memref<3x3x4x4xf32, #tpu.memory_space<vmem>>, vector<1x1x4x4xf32>
    %112 = vector.shape_cast %111 : vector<1x1x4x4xf32> to vector<4x4xf32>
    %cst_178 = arith.constant dense<0.000000e+00> : vector<16x16x4xf32>
    %113 = tpu.matmul %110, %112, %cst_178 {dimension_numbers = #tpu.dot_dimension_numbers<[2], [0], [0, 1], [1], [0, 0, 0, 1, 1, 1], [], []>} : vector<16x16x4xf32>, vector<4x4xf32>, vector<16x16x4xf32> -> vector<16x16x4xf32>
    %114 = arith.addf %109, %113 : vector<16x16x4xf32>
    %c2_179 = arith.constant 2 : index
    %c0_180 = arith.constant 0 : index
    %c0_181 = arith.constant 0 : index
    %115 = vector.load %arg5[%c2_179, %c0_180, %c0_181] : memref<18x24x4xf32, #tpu.memory_space<vmem>>, vector<16x16x4xf32>
    %c2_182 = arith.constant 2 : index
    %c0_183 = arith.constant 0 : index
    %c0_184 = arith.constant 0 : index
    %c0_185 = arith.constant 0 : index
    %116 = vector.load %arg3[%c2_182, %c0_183, %c0_184, %c0_185] : memref<3x3x4x4xf32, #tpu.memory_space<vmem>>, vector<1x1x4x4xf32>
    %117 = vector.shape_cast %116 : vector<1x1x4x4xf32> to vector<4x4xf32>
    %cst_186 = arith.constant dense<0.000000e+00> : vector<16x16x4xf32>
    %118 = tpu.matmul %115, %117, %cst_186 {dimension_numbers = #tpu.dot_dimension_numbers<[2], [0], [0, 1], [1], [0, 0, 0, 1, 1, 1], [], []>} : vector<16x16x4xf32>, vector<4x4xf32>, vector<16x16x4xf32> -> vector<16x16x4xf32>
    %119 = arith.addf %114, %118 : vector<16x16x4xf32>
    %c2_187 = arith.constant 2 : index
    %c1_188 = arith.constant 1 : index
    %c0_189 = arith.constant 0 : index
    %120 = vector.load %arg5[%c2_187, %c1_188, %c0_189] : memref<18x24x4xf32, #tpu.memory_space<vmem>>, vector<16x16x4xf32>
    %c2_190 = arith.constant 2 : index
    %c1_191 = arith.constant 1 : index
    %c0_192 = arith.constant 0 : index
    %c0_193 = arith.constant 0 : index
    %121 = vector.load %arg3[%c2_190, %c1_191, %c0_192, %c0_193] : memref<3x3x4x4xf32, #tpu.memory_space<vmem>>, vector<1x1x4x4xf32>
    %122 = vector.shape_cast %121 : vector<1x1x4x4xf32> to vector<4x4xf32>
    %cst_194 = arith.constant dense<0.000000e+00> : vector<16x16x4xf32>
    %123 = tpu.matmul %120, %122, %cst_194 {dimension_numbers = #tpu.dot_dimension_numbers<[2], [0], [0, 1], [1], [0, 0, 0, 1, 1, 1], [], []>} : vector<16x16x4xf32>, vector<4x4xf32>, vector<16x16x4xf32> -> vector<16x16x4xf32>
    %124 = arith.addf %119, %123 : vector<16x16x4xf32>
    %c2_195 = arith.constant 2 : index
    %c2_196 = arith.constant 2 : index
    %c0_197 = arith.constant 0 : index
    %125 = vector.load %arg5[%c2_195, %c2_196, %c0_197] : memref<18x24x4xf32, #tpu.memory_space<vmem>>, vector<16x16x4xf32>
    %c2_198 = arith.constant 2 : index
    %c2_199 = arith.constant 2 : index
    %c0_200 = arith.constant 0 : index
    %c0_201 = arith.constant 0 : index
    %126 = vector.load %arg3[%c2_198, %c2_199, %c0_200, %c0_201] : memref<3x3x4x4xf32, #tpu.memory_space<vmem>>, vector<1x1x4x4xf32>
    %127 = vector.shape_cast %126 : vector<1x1x4x4xf32> to vector<4x4xf32>
    %cst_202 = arith.constant dense<0.000000e+00> : vector<16x16x4xf32>
    %128 = tpu.matmul %125, %127, %cst_202 {dimension_numbers = #tpu.dot_dimension_numbers<[2], [0], [0, 1], [1], [0, 0, 0, 1, 1, 1], [], []>} : vector<16x16x4xf32>, vector<4x4xf32>, vector<16x16x4xf32> -> vector<16x16x4xf32>
    %129 = arith.addf %124, %128 : vector<16x16x4xf32>
    %cst_203 = arith.constant dense<0.000000e+00> : vector<4xf32>
    %130 = vector.multi_reduction <add>, %129, %cst_203 [0, 1] : vector<16x16x4xf32> to vector<4xf32>
    %131 = vector.shape_cast %130 : vector<4xf32> to vector<1x1x4xf32>
    %cst_204 = arith.constant 2.560000e+02 : f32
    %132 = vector.broadcast %cst_204 : f32 to vector<1x1x4xf32>
    %133 = arith.divf %131, %132 : vector<1x1x4xf32>
    %134 = arith.mulf %129, %129 : vector<16x16x4xf32>
    %cst_205 = arith.constant dense<0.000000e+00> : vector<4xf32>
    %135 = vector.multi_reduction <add>, %134, %cst_205 [0, 1] : vector<16x16x4xf32> to vector<4xf32>
    %136 = vector.shape_cast %135 : vector<4xf32> to vector<1x1x4xf32>
    %cst_206 = arith.constant 2.560000e+02 : f32
    %137 = vector.broadcast %cst_206 : f32 to vector<1x1x4xf32>
    %138 = arith.divf %136, %137 : vector<1x1x4xf32>
    %139 = arith.mulf %133, %133 : vector<1x1x4xf32>
    %140 = arith.subf %138, %139 : vector<1x1x4xf32>
    %cst_207 = arith.constant 0.000000e+00 : f32
    %141 = vector.broadcast %cst_207 : f32 to vector<1x1x4xf32>
    %142 = arith.maximumf %140, %141 : vector<1x1x4xf32>
    %143 = vector.broadcast %133 : vector<1x1x4xf32> to vector<16x16x4xf32>
    %144 = arith.subf %129, %143 : vector<16x16x4xf32>
    %cst_208 = arith.constant 9.99999974E-6 : f32
    %145 = vector.broadcast %cst_208 : f32 to vector<1x1x4xf32>
    %146 = arith.addf %142, %145 : vector<1x1x4xf32>
    %147 = math.rsqrt %146 : vector<1x1x4xf32>
    %148 = vector.broadcast %147 : vector<1x1x4xf32> to vector<16x16x4xf32>
    %149 = arith.mulf %144, %148 : vector<16x16x4xf32>
    %150 = arith.addf %1, %149 : vector<16x16x4xf32>
    %c0_209 = arith.constant 0 : index
    %c0_210 = arith.constant 0 : index
    %c0_211 = arith.constant 0 : index
    %c0_212 = arith.constant 0 : index
    %151 = vector.load %arg4[%c0_209, %c0_210, %c0_211, %c0_212] : memref<1x16x16x4xf32, #tpu.memory_space<vmem>>, vector<1x16x16x4xf32>
    %152 = vector.shape_cast %151 : vector<1x16x16x4xf32> to vector<16x16x4xf32>
    %153 = vector.shape_cast %150 : vector<16x16x4xf32> to vector<1x16x16x4xf32>
    tpu.vector_store %arg4[%c0_209, %c0_210, %c0_211, %c0_212], %153 {strides = array<i32>} : memref<1x16x16x4xf32, #tpu.memory_space<vmem>>, vector<1x16x16x4xf32>,
    return
  }
  func.func @transform_0(%arg0: i32) -> (i32, i32, i32, i32) {
    %c0_i32 = arith.constant 0 : i32
    %c0_i32_0 = arith.constant 0 : i32
    %c0_i32_1 = arith.constant 0 : i32
    %c0_i32_2 = arith.constant 0 : i32
    return %arg0, %c0_i32, %c0_i32_0, %c0_i32_1 : i32, i32, i32, i32
  }
  func.func @transform_1(%arg0: i32) -> (i32, i32, i32, i32) {
    %c0_i32 = arith.constant 0 : i32
    %c0_i32_0 = arith.constant 0 : i32
    %c0_i32_1 = arith.constant 0 : i32
    %c0_i32_2 = arith.constant 0 : i32
    %c0_i32_3 = arith.constant 0 : i32
    return %c0_i32, %c0_i32_0, %c0_i32_1, %c0_i32_2 : i32, i32, i32, i32
  }
  func.func @transform_2(%arg0: i32) -> (i32, i32, i32, i32) {
    %c0_i32 = arith.constant 0 : i32
    %c0_i32_0 = arith.constant 0 : i32
    %c0_i32_1 = arith.constant 0 : i32
    %c0_i32_2 = arith.constant 0 : i32
    %c0_i32_3 = arith.constant 0 : i32
    return %c0_i32, %c0_i32_0, %c0_i32_1, %c0_i32_2 : i32, i32, i32, i32
  }
  func.func @transform_3(%arg0: i32) -> (i32, i32, i32, i32) {
    %c0_i32 = arith.constant 0 : i32
    %c0_i32_0 = arith.constant 0 : i32
    %c0_i32_1 = arith.constant 0 : i32
    %c0_i32_2 = arith.constant 0 : i32
    return %arg0, %c0_i32, %c0_i32_0, %c0_i32_1 : i32, i32, i32, i32
  }
}

</mosaic_0001>

<bundles_post_ra>
// kernel: tpu_custom_call.1
= control target key start
LH: loop header
LB: loop body
LE: loop exit
PB: predicated region body
PF: predicated region fallthrough
CT: control target
= control target key end

     0   :  { %s6628_s12 = smov 0   ;;  %s10019_s0 = inlined_call_operand.vmem [shape: f32[2,16,16,4], index: 0, kind: input, shape index: {}]   ;;  %s10020_s1 = inlined_call_operand.vmem [shape: f32[3,3,4,4], index: 1, kind: input, shape index: {}]   ;;  %s10021_s2 = inlined_call_operand.vmem [shape: f32[3,3,4,4], index: 2, kind: input, shape index: {}]   ;;  %s10022_s3 = inlined_call_operand.vmem [shape: f32[2,16,16,4], index: 3, kind: output, shape index: {}]  }
   0x1 LB: > { %s5959_s13 = sadd.s32 4294967295, %s6605_s12   ;;  %p5963_p0 = scmp.ge.s32.totalorder %s6605_s12, 1  ;;  %s6605_s12 = sphi %s6628_s12, %s13_s12  }
   0x2   : > { %p137_p1 = scmp.lt.s32.totalorder %s6605_s12, 3 }
   0x4   : > { %p138_p2 = pnand %p5963_p0, %p137_p1 }
   0x6   : > { %141 = sbr.rel (%p138_p2) target bundleno = 1887 (0x75f), region = 32 }
   0xb   : > { %v5968_v0 = vld [vmem:[%s10020_s1 + $0x4] sm:$0xf]  ;;  %vm481_vm0 = vcmask 1043456   ;;  %p161_p3 = scmp.lt.s32.totalorder %s5959_s13, 1  ;;  %v6035_v1 = vld [vmem:[%s10020_s1 + $0x8] sm:$0xf] }
   0xc   : > { %6582 = vmatpush.msk.msra.mxu2 %vm481_vm0, %v5968_v0  ;;  %v350_v2 = vld [vmem:[%s10020_s1] sm:$0xf]  ;;  %v6069_v3 = vld [vmem:[%s10020_s1 + $0xc] sm:$0xf]  ;;  %5969 = vmatpush.msk.msra.mxu0 %vm481_vm0, %v5968_v0  ;;  %v6103_v4 = vld [vmem:[%s10020_s1 + $0x10] sm:$0xf] }
   0xd   : > { %s10530_s13 = smov (!%p161_p3, %s5959_s13), 1  ;;  %6583 = vmatpush.msk.msra.mxu3 %vm481_vm0, %v350_v2  ;;  %6002 = vmatpush.msk.msra.mxu1 %vm481_vm0, %v350_v2  ;;  %vm204_vm1 = vcmask 31744   ;;  %vm253_vm2 = vcmask 24576   ;;  %vm308_vm3 = vcmask 25600  }
   0xe   : > { %6036 = vmatpush.msk.msrb.mxu2 %vm481_vm0, %v6035_v1  ;;  %s6580_s24 = sshll.u32 %s10530_s13, 8  ;;  %6104 = vmatpush.msk.msrb.mxu0 %vm481_vm0, %v6103_v4 }
   0xf   : > { %6070 = vmatpush.msk.msrb.mxu3 %vm481_vm0, %v6069_v3  ;;  %s6666_s27 = scalar_lea.vmem %s10019_s0, %s6580_s24  ;;  %s9906_s5 = scalar_lea.vmem %s10022_s3, %s6580_s24 }
  0x10   : > { %v6669_v5 = vld [vmem:[%s6666_s27 + $0x70] sm:$0xff]  ;;  %v6672_v6 = vld [vmem:[%s6666_s27 + $0x78] sm:$0xff]  ;;  %v6685_v9 = vld [vmem:[%s6666_s27 + $0x80] sm:$0xff] }
  0x11   : > { %10131 = vst [vmem:[#allocation3_spill] sm:$0xff] %v6669_v5  ;;  %v6675_v7 = vld [vmem:[%s6666_s27 + $0x10] sm:$0xff]  ;;  %v6680_v8 = vld [vmem:[%s6666_s27 + $0x18] sm:$0xff]  ;;  %v6690_v10 = vld [vmem:[%s6666_s27 + $0x88] sm:$0xff] }
  0x12   : > { %10132 = vst [vmem:[#allocation4_spill] sm:$0xff] %v6672_v6  ;;  %v6695_v11 = vld [vmem:[%s6666_s27] sm:$0xff]  ;;  %v6700_v12 = vld [vmem:[%s6666_s27 + $0x90] sm:$0xff]  ;;  %v6720_v19 = vld [vmem:[%s6666_s27 + $0x8] sm:$0xff] }
  0x13   : > { %10133 = vst [vmem:[#allocation5_spill] sm:$0xff] %v6675_v7  ;;  %v6726_v22 = vld [vmem:[%s6666_s27 + $0x98] sm:$0xff]  ;;  %v6743_v26 = vld [vmem:[%s6666_s27 + $0xa0] sm:$0xff]  ;;  %v6761_v32 = vld [vmem:[%s6666_s27 + $0xa8] sm:$0xff] }
  0x14   : > { %219 = vst.msk [vmem:[#allocation2 + $0xc1] sm:$0xff] %vm204_vm1, %v6669_v5  ;;  %v6766_v34 = vld [vmem:[%s6666_s27 + $0x20] sm:$0xff]  ;;  %v6780_v39 = vld [vmem:[%s6666_s27 + $0xb0] sm:$0xff]  ;;  %v6800_v45 = vld [vmem:[%s6666_s27 + $0x28] sm:$0xff] }
  0x15   : > { %10134 = vst [vmem:[#allocation6_spill] sm:$0xff] %v6680_v8  ;;  %v6809_v46 = vld [vmem:[%s6666_s27 + $0xb8] sm:$0xff]  ;;  %v6812_v48 = vld [vmem:[%s6666_s27 + $0x30] sm:$0xff]  ;;  %v6832_v53 = vld [vmem:[%s6666_s27 + $0xc0] sm:$0xff] }
  0x16   : > { %220 = vst.msk [vmem:[#allocation2 + $0xc9] sm:$0xff] %vm204_vm1, %v6672_v6  ;;  %v6852_v58 = vld [vmem:[%s6666_s27 + $0x38] sm:$0xff]  ;;  %v6861_v59 = vld [vmem:[%s6666_s27 + $0xc8] sm:$0xff]  ;;  %v6864_v61 = vld [vmem:[%s6666_s27 + $0x40] sm:$0xff] }
  0x17   : > { %10135 = vst [vmem:[#allocation7_spill] sm:$0xff] %v6685_v9  ;;  %v6882_v1 = vld [vmem:[%s6666_s27 + $0xd0] sm:$0xff] }
  0x18   : > { %207 = vst.msk [vmem:[#allocation2 + $0x31] sm:$0xff] %vm204_vm1, %v6675_v7 }
  0x19   : > { %10136 = vst [vmem:[#allocation8_spill] sm:$0xff] %v6690_v10 }
  0x1a   : > { %208 = vst.msk [vmem:[#allocation2 + $0x39] sm:$0xff] %vm204_vm1, %v6680_v8 }
  0x1b   : > { %10137 = vst [vmem:[#allocation9_spill] sm:$0xff] %v6695_v11  ;;  %v6706_v13 = vld [vmem:[#allocation2 + $0xc1] sm:$0xff] }
  0x1c   : > { %221 = vst.msk [vmem:[#allocation2 + $0xd9] sm:$0xff] %vm204_vm1, %v6685_v9  ;;  %v244_v14 = vld [vmem:[#allocation2 + $0xc2] sm:$0x1]  ;;  %5986 = vmatmul.msk.f32.vlgmr.msra.gmra.mxu2 %vm204_vm1, %v6706_v13 }
  0x1d   : > { %10138 = vst [vmem:[#allocation10_spill] sm:$0xff] %v6700_v12  ;;  %v6722_v20 = vld [vmem:[#allocation2 + $0xc9] sm:$0xff] }
  0x1e   : > { %222 = vst.msk [vmem:[#allocation2 + $0xe1] sm:$0xff] %vm204_vm1, %v6690_v10  ;;  %v6752_v29 = vld [vmem:[#allocation2 + $0xc8] sm:$0xff] }
  0x1f   : > { %205 = vst.msk [vmem:[#allocation2 + $0x19] sm:$0xff] %vm204_vm1, %v6695_v11  ;;  %v238_v15 = vld [vmem:[#allocation2 + $0x32] sm:$0x1] }
  0x20   : > { %223 = vst.msk [vmem:[#allocation2 + $0xf1] sm:$0xff] %vm204_vm1, %v6700_v12  ;;  %v6845_v57 = vld [vmem:[#allocation2 + $0x31] sm:$0xff] }
  0x21   : > { %261 = vst.msk [vmem:[#allocation2 + $0xc0] sm:$0x1] %vm253_vm2, %v244_v14  ;;  %v6714_v16 = vld [vmem:[#allocation2 + $0x38] sm:$0xff] }
  0x22   : > { %255 = vst.msk [vmem:[#allocation2 + $0x30] sm:$0x1] %vm253_vm2, %v238_v15  ;;  %v271_v17 = vld [vmem:[#allocation2 + $0x3f] sm:$0x1] }
  0x23   : > { %307 = vst.msk [vmem:[#allocation2 + $0x8] sm:$0xff] %vm204_vm1, %v6714_v16  ;;  %v245_v18 = vld [vmem:[#allocation2 + $0xda] sm:$0x1] }
  0x24   : > { %287 = vst.msk [vmem:[#allocation2 + $0x41] sm:$0x1] %vm253_vm2, %v271_v17  ;;  %5987 = vmatmul.msk.f32.gmra.mxu2 %vm204_vm1, %v6722_v20  ;;  %v6750_v28 = vld [vmem:[#allocation2 + $0xd9] sm:$0xff]  ;;  %v6904_v17 = vld [vmem:[%s6666_s27 + $0x48] sm:$0xff] }
  0x25   : > { %10139 = vst [vmem:[#allocation11_spill] sm:$0xff] %v6720_v19  ;;  %v6769_v35 = vld [vmem:[#allocation2 + $0xe1] sm:$0xff]  ;;  %v6875_v0 = vld [vmem:[#allocation2 + $0x39] sm:$0xff] }
  0x26   : > { %262 = vst.msk [vmem:[#allocation2 + $0xd8] sm:$0x1] %vm253_vm2, %v245_v18  ;;  %v237_v21 = vld [vmem:[#allocation2 + $0x1a] sm:$0x1]  ;;  %v6788_v42 = vld [vmem:[#allocation2 + $0xe0] sm:$0xff] }
  0x27   : > { %10140 = vst [vmem:[#allocation12_spill] sm:$0xff] %v6726_v22  ;;  %v246_v23 = vld [vmem:[#allocation2 + $0xf2] sm:$0x1]  ;;  %v6791_v43 = vld [vmem:[#allocation2 + $0x19] sm:$0xff] }
  0x28   : > { %254 = vst.msk [vmem:[#allocation2 + $0x18] sm:$0x1] %vm253_vm2, %v237_v21  ;;  %v6729_v24 = vld [vmem:[#allocation2 + $0xc0] sm:$0xff]  ;;  %v6786_v41 = vld [vmem:[#allocation2 + $0xf1] sm:$0xff] }
  0x29   : > { %206 = vst.msk [vmem:[#allocation2 + $0x21] sm:$0xff] %vm204_vm1, %v6720_v19  ;;  %6019 = vmatmul.msk.f32.vlgmr.msra.gmra.mxu3 %vm204_vm1, %v6729_v24  ;;  %v6739_v25 = vld [vmem:[#allocation2 + $0x30] sm:$0xff]  ;;  %v6913_v18 = vld [vmem:[%s6666_s27 + $0xd8] sm:$0xff] }
  0x2a   : > { %224 = vst.msk [vmem:[#allocation2 + $0xf9] sm:$0xff] %vm204_vm1, %v6726_v22  ;;  %v319_v38 = vld [vmem:[#allocation2 + $0x8] sm:$0xff] }
  0x2b   : > { %263 = vst.msk [vmem:[#allocation2 + $0xf0] sm:$0x1] %vm253_vm2, %v246_v23  ;;  %v305_v27 = vld [vmem:[#allocation2 + $0x40] sm:$0x3]  ;;  %v6916_v23 = vld [vmem:[%s6666_s27 + $0x50] sm:$0xff] }
  0x2c   : > { %10141 = vst [vmem:[#allocation13_spill] sm:$0xff] %v6743_v26  ;;  %5988 = vmatmul.msk.f32.gmra.mxu2 %vm204_vm1, %v6750_v28 }
  0x2d   : > { %306 = vst.msk [vmem:[#allocation2] sm:$0xff] %vm204_vm1, %v6739_v25  ;;  %v6771_v36 = vld [vmem:[#allocation2 + $0xd8] sm:$0xff] }
  0x2e   : > { %225 = vst.msk [vmem:[#allocation2 + $0x109] sm:$0xff] %vm204_vm1, %v6743_v26  ;;  %v7007_v26 = vld [vmem:[%s6666_s27 + $0x68] sm:$0xff] }
  0x2f   : > { %309 = vst.msk [vmem:[#allocation2 + $0x10] sm:$0x3] %vm308_vm3, %v305_v27  ;;  %v6793_v44 = vld [vmem:[#allocation2 + $0x18] sm:$0xff] }
  0x30   : > { %10142 = vst [vmem:[#allocation14_spill] sm:$0xff] %v6761_v32  ;;  %v6823_v51 = vld [vmem:[#allocation2 + $0x21] sm:$0xff] }
  0x31   : > { %6020 = vmatmul.msk.f32.gmra.mxu3 %vm204_vm1, %v6752_v29  ;;  %226 = vst.msk [vmem:[#allocation2 + $0x111] sm:$0xff] %vm204_vm1, %v6761_v32  ;;  %v6817_v49 = vld [vmem:[#allocation2 + $0xf9] sm:$0xff] }
  0x32   : > { %10143 = vst [vmem:[#allocation15_spill] sm:$0xff] %v6766_v34  ;;  %v6819_v50 = vld [vmem:[#allocation2 + $0xf0] sm:$0xff]  ;;  %v6825_v52 = vld [vmem:[#allocation2 + $0x20] sm:$0xff]  ;;  %v6842_v56 = vld [vmem:[#allocation2 + $0xf8] sm:$0xff] }
  0x33   : > { %209 = vst.msk [vmem:[#allocation2 + $0x49] sm:$0xff] %vm204_vm1, %v6766_v34 }
  0x34   : > { %v351_v30 = vld [vmem:[#allocation2 + $0x1] sm:$0xff]  ;;  %5989 = vmatmul.msk.f32.gmra.mxu2 %vm204_vm1, %v6769_v35  ;;  %10144 = vst [vmem:[#allocation16_spill] sm:$0xff] %v6780_v39 }
  0x35   : > { %v318_v31 = vld [vmem:[#allocation2] sm:$0xff]  ;;  %5970 = vmatmul.msk.f32.vlgmr.msra.gmra.mxu0 %vm204_vm1, %v351_v30  ;;  %v247_v33 = vld [vmem:[#allocation2 + $0x10a] sm:$0x1]  ;;  %227 = vst.msk [vmem:[#allocation2 + $0x121] sm:$0xff] %vm204_vm1, %v6780_v39 }
  0x36   : > { %6003 = vmatmul.msk.f32.vlgmr.msra.gmra.mxu1 %vm204_vm1, %v318_v31  ;;  %264 = vst.msk [vmem:[#allocation2 + $0x108] sm:$0x1] %vm253_vm2, %v247_v33  ;;  %v352_v37 = vld [vmem:[#allocation2 + $0x9] sm:$0xff] }
  0x37   : > { %10145 = vst [vmem:[#allocation17_spill] sm:$0xff] %v6800_v45  ;;  %v6840_v55 = vld [vmem:[#allocation2 + $0x109] sm:$0xff] }
  0x38   : > { %210 = vst.msk [vmem:[#allocation2 + $0x51] sm:$0xff] %vm204_vm1, %v6800_v45  ;;  %v6869_v62 = vld [vmem:[#allocation2 + $0x111] sm:$0xff] }
  0x39   : > { %6021 = vmatmul.msk.f32.gmra.mxu3 %vm204_vm1, %v6771_v36  ;;  %10146 = vst [vmem:[#allocation18_spill] sm:$0xff] %v6809_v46  ;;  %v6892_v4 = vld [vmem:[#allocation2 + $0x110] sm:$0xff] }
  0x3a   : > { %v239_v40 = vld [vmem:[#allocation2 + $0x4a] sm:$0x1]  ;;  %10147 = vst [vmem:[#allocation19_spill] sm:$0xff] %v6812_v48 }
  0x3b   : > { %256 = vst.msk [vmem:[#allocation2 + $0x48] sm:$0x1] %vm253_vm2, %v239_v40  ;;  %v6895_v14 = vld [vmem:[#allocation2 + $0x49] sm:$0xff] }
  0x3c   : > { %5990 = vmatmul.msk.f32.gmra.mxu2 %vm204_vm1, %v6786_v41  ;;  %v248_v47 = vld [vmem:[#allocation2 + $0x122] sm:$0x1]  ;;  %228 = vst.msk [vmem:[#allocation2 + $0x129] sm:$0xff] %vm204_vm1, %v6809_v46  ;;  %v811_v34 = vld [vmem:[#allocation2 + $0xa] sm:$0xff] }
  0x3d   : > { %5971 = vmatmul.msk.f32.gmra.mxu0 %vm204_vm1, %v352_v37  ;;  %265 = vst.msk [vmem:[#allocation2 + $0x120] sm:$0x1] %vm253_vm2, %v248_v47  ;;  %v6871_v63 = vld [vmem:[#allocation2 + $0x108] sm:$0xff]  ;;  %v6936_v37 = vld [vmem:[%s6666_s27 + $0xe0] sm:$0xff] }
  0x3e   : > { %6004 = vmatmul.msk.f32.gmra.mxu1 %vm204_vm1, %v319_v38  ;;  %211 = vst.msk [vmem:[#allocation2 + $0x61] sm:$0xff] %vm204_vm1, %v6812_v48  ;;  %v6890_v3 = vld [vmem:[#allocation2 + $0x121] sm:$0xff] }
  0x3f   : > { %10148 = vst [vmem:[#allocation20_spill] sm:$0xff] %v6832_v53  ;;  %v6927_v31 = vld [vmem:[#allocation2 + $0x51] sm:$0xff] }
  0x40   : > { %229 = vst.msk [vmem:[#allocation2 + $0x139] sm:$0xff] %vm204_vm1, %v6832_v53  ;;  %v6929_v33 = vld [vmem:[#allocation2 + $0x50] sm:$0xff] }
  0x41   : > { %6022 = vmatmul.msk.f32.gmra.mxu3 %vm204_vm1, %v6788_v42  ;;  %10149 = vst [vmem:[#allocation21_spill] sm:$0xff] %v6852_v58 }
  0x42   : > { %212 = vst.msk [vmem:[#allocation2 + $0x69] sm:$0xff] %vm204_vm1, %v6852_v58  ;;  %v6897_v15 = vld [vmem:[#allocation2 + $0x48] sm:$0xff] }
  0x43   : > { %10150 = vst [vmem:[#allocation22_spill] sm:$0xff] %v6861_v59  ;;  %v6921_v27 = vld [vmem:[#allocation2 + $0x129] sm:$0xff] }
  0x44   : > { %5991 = vmatmul.msk.f32.gmra.mxu2 %vm204_vm1, %v6817_v49  ;;  %10151 = vst [vmem:[#allocation23_spill] sm:$0xff] %v6864_v61  ;;  %v6923_v30 = vld [vmem:[#allocation2 + $0x120] sm:$0xff]  ;;  %v6946_v47 = vld [vmem:[#allocation2 + $0x128] sm:$0xff] }
  0x45   : > { %5972 = vmatmul.msk.f32.gmra.mxu0 %vm204_vm1, %v6791_v43  ;;  %v240_v54 = vld [vmem:[#allocation2 + $0x62] sm:$0x1]  ;;  %230 = vst.msk [vmem:[#allocation2 + $0x141] sm:$0xff] %vm204_vm1, %v6861_v59 }
  0x46   : > { %6005 = vmatmul.msk.f32.gmra.mxu1 %vm204_vm1, %v6793_v44  ;;  %257 = vst.msk [vmem:[#allocation2 + $0x60] sm:$0x1] %vm253_vm2, %v240_v54  ;;  %v6949_v54 = vld [vmem:[#allocation2 + $0x61] sm:$0xff] }
  0x47   : > { %v249_v60 = vld [vmem:[#allocation2 + $0x13a] sm:$0x1]  ;;  %213 = vst.msk [vmem:[#allocation2 + $0x79] sm:$0xff] %vm204_vm1, %v6864_v61 }
  0x48   : > { %266 = vst.msk [vmem:[#allocation2 + $0x138] sm:$0x1] %vm253_vm2, %v249_v60  ;;  %v6944_v40 = vld [vmem:[#allocation2 + $0x139] sm:$0xff] }
  0x49   : > { %6023 = vmatmul.msk.f32.gmra.mxu3 %vm204_vm1, %v6819_v50  ;;  %10152 = vst [vmem:[#allocation24_spill] sm:$0xff] %v6882_v1  ;;  %v6981_v59 = vld [vmem:[#allocation2 + $0x69] sm:$0xff] }
  0x4a   : > { %231 = vst.msk [vmem:[#allocation2 + $0x151] sm:$0xff] %vm204_vm1, %v6882_v1  ;;  %v6983_v53 = vld [vmem:[#allocation2 + $0x68] sm:$0xff] }
  0x4b   : > { %10153 = vst [vmem:[#allocation25_spill] sm:$0xff] %v6904_v17 }
  0x4c   : > { %5992 = vmatmul.msk.f32.gmra.mxu2 %vm204_vm1, %v6840_v55  ;;  %214 = vst.msk [vmem:[#allocation2 + $0x81] sm:$0xff] %vm204_vm1, %v6904_v17  ;;  %v6995_v46 = vld [vmem:[#allocation2 + $0x140] sm:$0xff] }
  0x4d   : > { %5973 = vmatmul.msk.f32.gmra.mxu0 %vm204_vm1, %v6823_v51  ;;  %10154 = vst [vmem:[#allocation26_spill] sm:$0xff] %v6913_v18  ;;  %v6951_v60 = vld [vmem:[#allocation2 + $0x60] sm:$0xff] }
  0x4e   : > { %6006 = vmatmul.msk.f32.gmra.mxu1 %vm204_vm1, %v6825_v52  ;;  %v241_v2 = vld [vmem:[#allocation2 + $0x7a] sm:$0x1]  ;;  %10155 = vst [vmem:[#allocation27_spill] sm:$0xff] %v6916_v23 }
  0x4f   : > { %258 = vst.msk [vmem:[#allocation2 + $0x78] sm:$0x1] %vm253_vm2, %v241_v2  ;;  %v6958_v2 = vld [vmem:[%s6666_s27 + $0x58] sm:$0xff] }
  0x50   : > { %232 = vst.msk [vmem:[#allocation2 + $0x159] sm:$0xff] %vm204_vm1, %v6913_v18  ;;  %v6975_v18 = vld [vmem:[#allocation2 + $0x141] sm:$0xff]  ;;  %v6977_v1 = vld [vmem:[#allocation2 + $0x138] sm:$0xff] }
  0x51   : > { %6024 = vmatmul.msk.f32.gmra.mxu3 %vm204_vm1, %v6842_v56  ;;  %v250_v21 = vld [vmem:[#allocation2 + $0x152] sm:$0x1]  ;;  %215 = vst.msk [vmem:[#allocation2 + $0x91] sm:$0xff] %vm204_vm1, %v6916_v23  ;;  %v6998_v39 = vld [vmem:[#allocation2 + $0x79] sm:$0xff]  ;;  %v6137_v23 = vld [vmem:[%s10020_s1 + $0x14] sm:$0xf] }
  0x52   : > { %267 = vst.msk [vmem:[#allocation2 + $0x150] sm:$0x1] %vm253_vm2, %v250_v21  ;;  %v6967_v21 = vld [vmem:[%s6666_s27 + $0xe8] sm:$0xff]  ;;  %6138 = vmatpush.msk.msrb.mxu1 %vm481_vm0, %v6137_v23 }
  0x53   : > { %10156 = vst [vmem:[#allocation28_spill] sm:$0xff] %v6936_v37  ;;  %v7023_v10 = vld [vmem:[#allocation2 + $0x81] sm:$0xff] }
  0x54   : > { %5993 = vmatmul.msk.f32.gmra.mxu2 %vm204_vm1, %v6869_v62  ;;  %233 = vst.msk [vmem:[#allocation2 + $0x169] sm:$0xff] %vm204_vm1, %v6936_v37  ;;  %v6970_v37 = vld [vmem:[%s6666_s27 + $0x60] sm:$0xff] }
  0x55   : > { %5974 = vmatmul.msk.f32.gmra.mxu0 %vm204_vm1, %v6845_v57  ;;  %10157 = vst [vmem:[#allocation29_spill] sm:$0xff] %v6958_v2  ;;  %v7025_v9 = vld [vmem:[#allocation2 + $0x80] sm:$0xff] }
  0x56   : > { %6007 = vmatmul.msk.f32.gmra.mxu1 %vm204_vm1, %v6739_v25  ;;  %216 = vst.msk [vmem:[#allocation2 + $0x99] sm:$0xff] %vm204_vm1, %v6958_v2  ;;  %v7000_v32 = vld [vmem:[#allocation2 + $0x78] sm:$0xff]  ;;  %v270_v2 = vld [vmem:[#allocation2 + $0x27] sm:$0x1] }
  0x57   : > { %10158 = vst [vmem:[#allocation30_spill] sm:$0xff] %v6967_v21  ;;  %v7019_v22 = vld [vmem:[#allocation2 + $0x159] sm:$0xff]  ;;  %v810_v23 = vld [vmem:[#allocation2 + $0x2] sm:$0xff] }
  0x58   : > { %v242_v38 = vld [vmem:[#allocation2 + $0x92] sm:$0x1]  ;;  %10159 = vst [vmem:[#allocation31_spill] sm:$0xff] %v6970_v37  ;;  %v7041_v5 = vld [vmem:[#allocation2 + $0x158] sm:$0xff] }
  0x59   : > { %6025 = vmatmul.msk.f32.gmra.mxu3 %vm204_vm1, %v6871_v63  ;;  %259 = vst.msk [vmem:[#allocation2 + $0x90] sm:$0x1] %vm253_vm2, %v242_v38  ;;  %v7021_v12 = vld [vmem:[#allocation2 + $0x150] sm:$0xff] }
  0x5a   : > { %234 = vst.msk [vmem:[#allocation2 + $0x171] sm:$0xff] %vm204_vm1, %v6967_v21  ;;  %v6993_v21 = vld [vmem:[#allocation2 + $0x151] sm:$0xff] }
  0x5b   : > { %v251_v38 = vld [vmem:[#allocation2 + $0x16a] sm:$0x1]  ;;  %217 = vst.msk [vmem:[#allocation2 + $0xa9] sm:$0xff] %vm204_vm1, %v6970_v37 }
  0x5c   : > { %5994 = vmatmul.msk.f32.gmra.mxu2 %vm204_vm1, %v6890_v3  ;;  %268 = vst.msk [vmem:[#allocation2 + $0x168] sm:$0x1] %vm253_vm2, %v251_v38  ;;  %v7039_v6 = vld [vmem:[#allocation2 + $0x169] sm:$0xff] }
  0x5d   : > { %5975 = vmatmul.msk.f32.gmra.mxu0 %vm204_vm1, %v6875_v0  ;;  %10160 = vst [vmem:[#allocation32_spill] sm:$0xff] %v6993_v21  ;;  %v7066_v58 = vld [vmem:[#allocation2 + $0x99] sm:$0xff] }
  0x5e   : > { %6008 = vmatmul.msk.f32.gmra.mxu1 %vm204_vm1, %v6714_v16  ;;  %10161 = vst [vmem:[#allocation33_spill] sm:$0xff] %v7007_v26  ;;  %v7068_v48 = vld [vmem:[#allocation2 + $0x98] sm:$0xff] }
  0x5f   : > { %218 = vst.msk [vmem:[#allocation2 + $0xb1] sm:$0xff] %vm204_vm1, %v7007_v26  ;;  %v7043_v26 = vld [vmem:[#allocation2 + $0x91] sm:$0xff] }
  0x60   : > { %10162 = vst [vmem:[#allocation34_spill] sm:$0xff] %v7019_v22  ;;  %v7045_v37 = vld [vmem:[#allocation2 + $0x90] sm:$0xff] }
  0x61   : > { %6026 = vmatmul.msk.f32.gmra.mxu3 %vm204_vm1, %v6892_v4  ;;  %10163 = vst [vmem:[#allocation35_spill] sm:$0xff] %v7039_v6  ;;  %v382_v17 = vld [vmem:[#allocation2 + $0x171] sm:$0xff] }
  0x62   : > { %v243_v38 = vld [vmem:[#allocation2 + $0xaa] sm:$0x1]  ;;  %286 = vst.msk [vmem:[#allocation2 + $0x29] sm:$0x1] %vm253_vm2, %v270_v2  ;;  %v7077_v2 = vld [vmem:[#allocation2 + $0x170] sm:$0xff] }
  0x63   : > { %260 = vst.msk [vmem:[#allocation2 + $0xa8] sm:$0x1] %vm253_vm2, %v243_v38  ;;  %v6171_v38 = vld [vmem:[%s10020_s1 + $0x18] sm:$0xf]  ;;  %v7064_v61 = vld [vmem:[#allocation2 + $0x168] sm:$0xff] }
  0x64   : > { %5995 = vmatmul.msk.f32.gmra.mxu2 %vm204_vm1, %v6921_v27  ;;  %10164 = vst [vmem:[#allocation36_spill] sm:$0xff] %v7064_v61 }
  0x65   : > { %5976 = vmatmul.msk.f32.gmra.mxu0 %vm204_vm1, %v6895_v14  ;;  %6172 = vmatpush.msk.msra.mxu2 %vm481_vm0, %v6171_v38  ;;  %v6205_v38 = vld [vmem:[%s10020_s1 + $0x1c] sm:$0xf]  ;;  %10165 = vst [vmem:[#allocation37_spill] sm:$0xff] %v7077_v2 }
  0x66   : > { %6009 = vmatmul.msk.f32.gmra.mxu1 %vm204_vm1, %v6897_v15  ;;  %6206 = vmatpush.msk.msra.mxu3 %vm481_vm0, %v6205_v38  ;;  %v6239_v38 = vld [vmem:[%s10020_s1 + $0x20] sm:$0xf]  ;;  %v7090_v8 = vld [vmem:[#allocation2 + $0xb1] sm:$0xff] }
  0x67   : > { %6240 = vmatpush.msk.msra.mxu0 %vm481_vm0, %v6239_v38  ;;  %v7079_v38 = vld [vmem:[#allocation2 + $0xa9] sm:$0xff] }
  0x68   : > { %v7092_v7 = vld [vmem:[#allocation2 + $0xb0] sm:$0xff] }
  0x69   : > { %6027 = vmatmul.msk.f32.gmra.mxu3 %vm204_vm1, %v6923_v30 }
  0x6a   : > { %v7081_v45 = vld [vmem:[#allocation2 + $0xa8] sm:$0xff] }
  0x6c   : > { %5996 = vmatmul.msk.f32.gmra.mxu2 %vm204_vm1, %v6944_v40 }
  0x6d   : > { %5977 = vmatmul.msk.f32.gmra.mxu0 %vm204_vm1, %v6927_v31 }
  0x6e   : > { %6010 = vmatmul.msk.f32.gmra.mxu1 %vm204_vm1, %v6929_v33 }
  0x71   : > { %6028 = vmatmul.msk.f32.gmra.mxu3 %vm204_vm1, %v6946_v47 }
  0x74   : > { %5997 = vmatmul.msk.f32.gmra.mxu2 %vm204_vm1, %v6975_v18 }
  0x75   : > { %5978 = vmatmul.msk.f32.gmra.mxu0 %vm204_vm1, %v6949_v54 }
  0x76   : > { %6011 = vmatmul.msk.f32.gmra.mxu1 %vm204_vm1, %v6951_v60 }
  0x79   : > { %6029 = vmatmul.msk.f32.gmra.mxu3 %vm204_vm1, %v6977_v1 }
  0x7c   : > { %5998 = vmatmul.msk.f32.gmra.mxu2 %vm204_vm1, %v6993_v21 }
  0x7d   : > { %5979 = vmatmul.msk.f32.gmra.mxu0 %vm204_vm1, %v6981_v59 }
  0x7e   : > { %6012 = vmatmul.msk.f32.gmra.mxu1 %vm204_vm1, %v6983_v53 }
  0x81   : > { %6030 = vmatmul.msk.f32.gmra.mxu3 %vm204_vm1, %v6995_v46 }
  0x84   : > { %5999 = vmatmul.msk.f32.gmra.mxu2 %vm204_vm1, %v7019_v22 }
  0x85   : > { %5980 = vmatmul.msk.f32.gmra.mxu0 %vm204_vm1, %v6998_v39 }
  0x86   : > { %6013 = vmatmul.msk.f32.gmra.mxu1 %vm204_vm1, %v7000_v32 }
  0x89   : > { %6031 = vmatmul.msk.f32.gmra.mxu3 %vm204_vm1, %v7021_v12 }
  0x8c   : > { %6000 = vmatmul.msk.f32.gmra.mxu2 %vm204_vm1, %v7039_v6  ;;  %v812_v6 = vld [vmem:[#allocation2 + $0x1a] sm:$0xff] }
  0x8d   : > { %5981 = vmatmul.msk.f32.gmra.mxu0 %vm204_vm1, %v7023_v10 }
  0x8e   : > { %6014 = vmatmul.msk.f32.gmra.mxu1 %vm204_vm1, %v7025_v9 }
  0x91   : > { %6032 = vmatmul.msk.f32.gmra.mxu3 %vm204_vm1, %v7041_v5 }
  0x94   : > { %6001 = vmatmul.msk.f32.gmra.mxu2 %vm204_vm1, %v382_v17 }
  0x95   : > { %5982 = vmatmul.msk.f32.gmra.mxu0 %vm204_vm1, %v7043_v26 }
  0x96   : > { %6015 = vmatmul.msk.f32.gmra.mxu1 %vm204_vm1, %v7045_v37 }
  0x99   : > { %6033 = vmatmul.msk.f32.gmra.mxu3 %vm204_vm1, %v7064_v61 }
  0x9c   : > { %6037 = vmatmul.msk.f32.vlgmr.msrb.gmra.mxu2 %vm204_vm1, %v810_v23 }
  0x9d   : > { %5983 = vmatmul.msk.f32.gmra.mxu0 %vm204_vm1, %v7066_v58 }
  0x9e   : > { %6016 = vmatmul.msk.f32.gmra.mxu1 %vm204_vm1, %v7068_v48 }
  0x9f   : > { %v550_v17 = vpop.f32.mrf.mxu2 }
  0xa1   : > { %6034 = vmatmul.msk.f32.gmra.mxu3 %vm204_vm1, %v7077_v2 }
  0xa4   : > { %6038 = vmatmul.msk.f32.gmra.mxu2 %vm204_vm1, %v811_v34  ;;  %v272_v34 = vld [vmem:[#allocation2 + $0x57] sm:$0x1] }
  0xa5   : > { %5984 = vmatmul.msk.f32.gmra.mxu0 %vm204_vm1, %v7079_v38  ;;  %288 = vst.msk [vmem:[#allocation2 + $0x59] sm:$0x1] %vm253_vm2, %v272_v34 }
  0xa6   : > { %6017 = vmatmul.msk.f32.gmra.mxu1 %vm204_vm1, %v7081_v45 }
  0xa7   : > { %v553_v23 = vpop.f32.mrf.mxu2 }
  0xa9   : > { %6071 = vmatmul.msk.f32.vlgmr.msrb.gmra.mxu3 %vm204_vm1, %v6793_v44 }
  0xac   : > { %v762_v19 = vpop.f32.mrf.mxu3  ;;  %6039 = vmatmul.msk.f32.gmra.mxu2 %vm204_vm1, %v812_v6 }
  0xad   : > { %5985 = vmatmul.msk.f32.gmra.mxu0 %vm204_vm1, %v7090_v8  ;;  %v7101_v11 = vadd.f32 %v762_v19, %v550_v17 }
  0xae   : > { %6018 = vmatmul.msk.f32.gmra.mxu1 %vm204_vm1, %v7092_v7 }
  0xaf   : > { %10166 = vst [vmem:[#allocation38_spill] sm:$0xff] %v7101_v11  ;;  %v556_v19 = vpop.f32.mrf.mxu2  ;;  %v813_v11 = vld [vmem:[#allocation2 + $0x22] sm:$0xff] }
  0xb1   : > { %6072 = vmatmul.msk.f32.gmra.mxu3 %vm204_vm1, %v6825_v52 }
  0xb2   : > { %v7103_v2 = vpop.f32.mrf.mxu0 }
  0xb3   : > { %v7105_v22 = vpop.f32.mrf.mxu1 }
  0xb4   : > { %v765_v44 = vpop.f32.mrf.mxu3  ;;  %6040 = vmatmul.msk.f32.gmra.mxu2 %vm204_vm1, %v813_v11 }
  0xb5   : > { %6105 = vmatmul.msk.f32.vlgmr.msrb.gmra.mxu0 %vm204_vm1, %v6791_v43  ;;  %v7114_v17 = vadd.f32 %v765_v44, %v553_v23  ;;  %v7128_v23 = vld [vmem:[#allocation2 + $0x32] sm:$0xff] }
  0xb6   : > { %6139 = vmatmul.msk.f32.vlgmr.msrb.gmra.mxu1 %vm204_vm1, %v812_v6  ;;  %10169 = vst [vmem:[#allocation41_spill] sm:$0xff] %v7128_v23 }
  0xb7   : > { %10167 = vst [vmem:[#allocation39_spill] sm:$0xff] %v7114_v17  ;;  %v559_v6 = vpop.f32.mrf.mxu2 }
  0xb9   : > { %6073 = vmatmul.msk.f32.gmra.mxu3 %vm204_vm1, %v6739_v25  ;;  %v273_v25 = vld [vmem:[#allocation2 + $0x6f] sm:$0x1] }
  0xba   : > { %v7116_v61 = vpop.f32.mrf.mxu0  ;;  %289 = vst.msk [vmem:[#allocation2 + $0x71] sm:$0x1] %vm253_vm2, %v273_v25  ;;  %v7161_v25 = vld [vmem:[#allocation2 + $0x4a] sm:$0xff] }
  0xbb   : > { %v7118_v21 = vpop.f32.mrf.mxu1  ;;  %10173 = vst [vmem:[#allocation45_spill] sm:$0xff] %v7161_v25 }
  0xbc   : > { %v768_v43 = vpop.f32.mrf.mxu3  ;;  %6041 = vmatmul.msk.f32.gmra.mxu2 %vm204_vm1, %v7128_v23 }
  0xbd   : > { %6106 = vmatmul.msk.f32.gmra.mxu0 %vm204_vm1, %v6823_v51  ;;  %v7126_v52 = vadd.f32 %v768_v43, %v556_v19  ;;  %v7145_v43 = vld [vmem:[#allocation2 + $0x3a] sm:$0xff] }
  0xbe   : > { %6140 = vmatmul.msk.f32.gmra.mxu1 %vm204_vm1, %v813_v11  ;;  %10171 = vst [vmem:[#allocation43_spill] sm:$0xff] %v7145_v43 }
  0xbf   : > { %10168 = vst [vmem:[#allocation40_spill] sm:$0xff] %v7126_v52  ;;  %v562_v11 = vpop.f32.mrf.mxu2 }
  0xc1   : > { %6074 = vmatmul.msk.f32.gmra.mxu3 %vm204_vm1, %v6714_v16 }
  0xc2   : > { %v7130_v34 = vpop.f32.mrf.mxu0 }
  0xc3   : > { %v7132_v44 = vpop.f32.mrf.mxu1 }
  0xc4   : > { %v771_v51 = vpop.f32.mrf.mxu3  ;;  %6042 = vmatmul.msk.f32.gmra.mxu2 %vm204_vm1, %v7145_v43 }
  0xc5   : > { %6107 = vmatmul.msk.f32.gmra.mxu0 %vm204_vm1, %v6845_v57  ;;  %v7143_v19 = vadd.f32 %v771_v51, %v559_v6 }
  0xc6   : > { %6141 = vmatmul.msk.f32.gmra.mxu1 %vm204_vm1, %v7128_v23 }
  0xc7   : > { %10170 = vst [vmem:[#allocation42_spill] sm:$0xff] %v7143_v19  ;;  %v565_v16 = vpop.f32.mrf.mxu2 }
  0xc9   : > { %6075 = vmatmul.msk.f32.gmra.mxu3 %vm204_vm1, %v6897_v15 }
  0xca   : > { %v7147_v52 = vpop.f32.mrf.mxu0 }
  0xcb   : > { %v7149_v17 = vpop.f32.mrf.mxu1 }
  0xcc   : > { %v774_v57 = vpop.f32.mrf.mxu3  ;;  %6043 = vmatmul.msk.f32.gmra.mxu2 %vm204_vm1, %v7161_v25 }
  0xcd   : > { %6108 = vmatmul.msk.f32.gmra.mxu0 %vm204_vm1, %v6875_v0  ;;  %v7159_v6 = vadd.f32 %v774_v57, %v562_v11  ;;  %v274_v0 = vld [vmem:[#allocation2 + $0x87] sm:$0x1] }
  0xce   : > { %6142 = vmatmul.msk.f32.gmra.mxu1 %vm204_vm1, %v7145_v43  ;;  %290 = vst.msk [vmem:[#allocation2 + $0x89] sm:$0x1] %vm253_vm2, %v274_v0  ;;  %v7194_v0 = vld [vmem:[#allocation2 + $0x62] sm:$0xff] }
  0xcf   : > { %10172 = vst [vmem:[#allocation44_spill] sm:$0xff] %v7159_v6  ;;  %v568_v15 = vpop.f32.mrf.mxu2  ;;  %v7178_v6 = vld [vmem:[#allocation2 + $0x52] sm:$0xff] }
  0xd0   : > { %10175 = vst [vmem:[#allocation47_spill] sm:$0xff] %v7178_v6 }
  0xd1   : > { %6076 = vmatmul.msk.f32.gmra.mxu3 %vm204_vm1, %v6929_v33  ;;  %10177 = vst [vmem:[#allocation49_spill] sm:$0xff] %v7194_v0 }
  0xd2   : > { %v7163_v51 = vpop.f32.mrf.mxu0 }
  0xd3   : > { %v7165_v19 = vpop.f32.mrf.mxu1 }
  0xd4   : > { %v777_v11 = vpop.f32.mrf.mxu3  ;;  %6044 = vmatmul.msk.f32.gmra.mxu2 %vm204_vm1, %v7178_v6 }
  0xd5   : > { %6109 = vmatmul.msk.f32.gmra.mxu0 %vm204_vm1, %v6895_v14  ;;  %v7176_v57 = vadd.f32 %v777_v11, %v565_v16 }
  0xd6   : > { %6143 = vmatmul.msk.f32.gmra.mxu1 %vm204_vm1, %v7161_v25 }
  0xd7   : > { %10174 = vst [vmem:[#allocation46_spill] sm:$0xff] %v7176_v57  ;;  %v571_v14 = vpop.f32.mrf.mxu2 }
  0xd9   : > { %6077 = vmatmul.msk.f32.gmra.mxu3 %vm204_vm1, %v6951_v60 }
  0xda   : > { %v7180_v43 = vpop.f32.mrf.mxu0 }
  0xdb   : > { %v7182_v23 = vpop.f32.mrf.mxu1 }
  0xdc   : > { %v780_v33 = vpop.f32.mrf.mxu3  ;;  %6045 = vmatmul.msk.f32.gmra.mxu2 %vm204_vm1, %v7194_v0 }
  0xdd   : > { %6110 = vmatmul.msk.f32.gmra.mxu0 %vm204_vm1, %v6927_v31  ;;  %v7192_v16 = vadd.f32 %v780_v33, %v568_v15  ;;  %v275_v31 = vld [vmem:[#allocation2 + $0x9f] sm:$0x1] }
  0xde   : > { %6144 = vmatmul.msk.f32.gmra.mxu1 %vm204_vm1, %v7178_v6  ;;  %291 = vst.msk [vmem:[#allocation2 + $0xa1] sm:$0x1] %vm253_vm2, %v275_v31  ;;  %v7227_v31 = vld [vmem:[#allocation2 + $0x7a] sm:$0xff] }
  0xdf   : > { %10176 = vst [vmem:[#allocation48_spill] sm:$0xff] %v7192_v16  ;;  %v574_v60 = vpop.f32.mrf.mxu2  ;;  %v7211_v16 = vld [vmem:[#allocation2 + $0x6a] sm:$0xff] }
  0xe0   : > { %10179 = vst [vmem:[#allocation51_spill] sm:$0xff] %v7211_v16 }
  0xe1   : > { %6078 = vmatmul.msk.f32.gmra.mxu3 %vm204_vm1, %v6983_v53  ;;  %10181 = vst [vmem:[#allocation53_spill] sm:$0xff] %v7227_v31 }
  0xe2   : > { %v7196_v11 = vpop.f32.mrf.mxu0 }
  0xe3   : > { %v7198_v57 = vpop.f32.mrf.mxu1 }
  0xe4   : > { %v783_v15 = vpop.f32.mrf.mxu3  ;;  %6046 = vmatmul.msk.f32.gmra.mxu2 %vm204_vm1, %v7211_v16 }
  0xe5   : > { %6111 = vmatmul.msk.f32.gmra.mxu0 %vm204_vm1, %v6949_v54  ;;  %v7209_v33 = vadd.f32 %v783_v15, %v571_v14 }
  0xe6   : > { %6145 = vmatmul.msk.f32.gmra.mxu1 %vm204_vm1, %v7194_v0 }
  0xe7   : > { %10178 = vst [vmem:[#allocation50_spill] sm:$0xff] %v7209_v33  ;;  %v577_v53 = vpop.f32.mrf.mxu2 }
  0xe9   : > { %6079 = vmatmul.msk.f32.gmra.mxu3 %vm204_vm1, %v7000_v32  ;;  %v276_v32 = vld [vmem:[#allocation2 + $0xb7] sm:$0x1] }
  0xea   : > { %v7213_v6 = vpop.f32.mrf.mxu0  ;;  %292 = vst.msk [vmem:[#allocation2 + $0xb9] sm:$0x1] %vm253_vm2, %v276_v32  ;;  %v7260_v32 = vld [vmem:[#allocation2 + $0x92] sm:$0xff] }
  0xeb   : > { %v7215_v25 = vpop.f32.mrf.mxu1  ;;  %10185 = vst [vmem:[#allocation57_spill] sm:$0xff] %v7260_v32 }
  0xec   : > { %v786_v54 = vpop.f32.mrf.mxu3  ;;  %6047 = vmatmul.msk.f32.gmra.mxu2 %vm204_vm1, %v7227_v31 }
  0xed   : > { %6112 = vmatmul.msk.f32.gmra.mxu0 %vm204_vm1, %v6981_v59  ;;  %v7225_v14 = vadd.f32 %v786_v54, %v574_v60 }
  0xee   : > { %6146 = vmatmul.msk.f32.gmra.mxu1 %vm204_vm1, %v7211_v16 }
  0xef   : > { %10180 = vst [vmem:[#allocation52_spill] sm:$0xff] %v7225_v14  ;;  %v580_v59 = vpop.f32.mrf.mxu2  ;;  %v7244_v14 = vld [vmem:[#allocation2 + $0x82] sm:$0xff] }
  0xf0   : > { %10183 = vst [vmem:[#allocation55_spill] sm:$0xff] %v7244_v14 }
  0xf1   : > { %6080 = vmatmul.msk.f32.gmra.mxu3 %vm204_vm1, %v7025_v9 }
  0xf2   : > { %v7229_v15 = vpop.f32.mrf.mxu0 }
  0xf3   : > { %v7231_v33 = vpop.f32.mrf.mxu1 }
  0xf4   : > { %v789_v60 = vpop.f32.mrf.mxu3  ;;  %6048 = vmatmul.msk.f32.gmra.mxu2 %vm204_vm1, %v7244_v14 }
  0xf5   : > { %6113 = vmatmul.msk.f32.gmra.mxu0 %vm204_vm1, %v6998_v39  ;;  %v7242_v54 = vadd.f32 %v789_v60, %v577_v53 }
  0xf6   : > { %6147 = vmatmul.msk.f32.gmra.mxu1 %vm204_vm1, %v7227_v31 }
  0xf7   : > { %10182 = vst [vmem:[#allocation54_spill] sm:$0xff] %v7242_v54  ;;  %v583_v9 = vpop.f32.mrf.mxu2 }
  0xf9   : > { %6081 = vmatmul.msk.f32.gmra.mxu3 %vm204_vm1, %v7045_v37 }
  0xfa   : > { %v7246_v16 = vpop.f32.mrf.mxu0 }
  0xfb   : > { %v7248_v0 = vpop.f32.mrf.mxu1 }
  0xfc   : > { %v792_v39 = vpop.f32.mrf.mxu3  ;;  %6049 = vmatmul.msk.f32.gmra.mxu2 %vm204_vm1, %v7260_v32 }
  0xfd   : > { %6114 = vmatmul.msk.f32.gmra.mxu0 %vm204_vm1, %v7023_v10  ;;  %v7258_v53 = vadd.f32 %v792_v39, %v580_v59  ;;  %v277_v10 = vld [vmem:[#allocation2 + $0xcf] sm:$0x1] }
  0xfe   : > { %6148 = vmatmul.msk.f32.gmra.mxu1 %vm204_vm1, %v7244_v14  ;;  %293 = vst.msk [vmem:[#allocation2 + $0xd1] sm:$0x1] %vm253_vm2, %v277_v10  ;;  %v7293_v10 = vld [vmem:[#allocation2 + $0xaa] sm:$0xff] }
  0xff   : > { %10184 = vst [vmem:[#allocation56_spill] sm:$0xff] %v7258_v53  ;;  %v586_v37 = vpop.f32.mrf.mxu2  ;;  %v7277_v53 = vld [vmem:[#allocation2 + $0x9a] sm:$0xff] }
 0x100   : > { %10187 = vst [vmem:[#allocation59_spill] sm:$0xff] %v7277_v53 }
 0x101   : > { %6082 = vmatmul.msk.f32.gmra.mxu3 %vm204_vm1, %v7068_v48  ;;  %10189 = vst [vmem:[#allocation61_spill] sm:$0xff] %v7293_v10 }
 0x102   : > { %v7262_v60 = vpop.f32.mrf.mxu0 }
 0x103   : > { %v7264_v54 = vpop.f32.mrf.mxu1 }
 0x104   : > { %v795_v59 = vpop.f32.mrf.mxu3  ;;  %6050 = vmatmul.msk.f32.gmra.mxu2 %vm204_vm1, %v7277_v53 }
 0x105   : > { %6115 = vmatmul.msk.f32.gmra.mxu0 %vm204_vm1, %v7043_v26  ;;  %v7275_v39 = vadd.f32 %v795_v59, %v583_v9 }
 0x106   : > { %6149 = vmatmul.msk.f32.gmra.mxu1 %vm204_vm1, %v7260_v32 }
 0x107   : > { %10186 = vst [vmem:[#allocation58_spill] sm:$0xff] %v7275_v39  ;;  %v589_v26 = vpop.f32.mrf.mxu2 }
 0x109   : > { %6083 = vmatmul.msk.f32.gmra.mxu3 %vm204_vm1, %v7081_v45  ;;  %v278_v45 = vld [vmem:[#allocation2 + $0xe7] sm:$0x1] }
 0x10a   : > { %v7279_v14 = vpop.f32.mrf.mxu0  ;;  %294 = vst.msk [vmem:[#allocation2 + $0xe9] sm:$0x1] %vm253_vm2, %v278_v45  ;;  %v7326_v45 = vld [vmem:[#allocation2 + $0xc2] sm:$0xff] }
 0x10b   : > { %v7281_v31 = vpop.f32.mrf.mxu1  ;;  %10193 = vst [vmem:[#allocation65_spill] sm:$0xff] %v7326_v45 }
 0x10c   : > { %v798_v48 = vpop.f32.mrf.mxu3  ;;  %6051 = vmatmul.msk.f32.gmra.mxu2 %vm204_vm1, %v7293_v10 }
 0x10d   : > { %6116 = vmatmul.msk.f32.gmra.mxu0 %vm204_vm1, %v7066_v58  ;;  %v7291_v9 = vadd.f32 %v798_v48, %v586_v37 }
 0x10e   : > { %6150 = vmatmul.msk.f32.gmra.mxu1 %vm204_vm1, %v7277_v53 }
 0x10f   : > { %10188 = vst [vmem:[#allocation60_spill] sm:$0xff] %v7291_v9  ;;  %v592_v58 = vpop.f32.mrf.mxu2  ;;  %v7310_v9 = vld [vmem:[#allocation2 + $0xb2] sm:$0xff] }
 0x110   : > { %10191 = vst [vmem:[#allocation63_spill] sm:$0xff] %v7310_v9 }
 0x111   : > { %6084 = vmatmul.msk.f32.gmra.mxu3 %vm204_vm1, %v7092_v7 }
 0x112   : > { %v7295_v59 = vpop.f32.mrf.mxu0 }
 0x113   : > { %v7297_v39 = vpop.f32.mrf.mxu1 }
 0x114   : > { %v801_v37 = vpop.f32.mrf.mxu3  ;;  %6052 = vmatmul.msk.f32.gmra.mxu2 %vm204_vm1, %v7310_v9 }
 0x115   : > { %6117 = vmatmul.msk.f32.gmra.mxu0 %vm204_vm1, %v7079_v38  ;;  %v7308_v48 = vadd.f32 %v801_v37, %v589_v26 }
 0x116   : > { %6151 = vmatmul.msk.f32.gmra.mxu1 %vm204_vm1, %v7293_v10 }
 0x117   : > { %10190 = vst [vmem:[#allocation62_spill] sm:$0xff] %v7308_v48  ;;  %v595_v7 = vpop.f32.mrf.mxu2 }
 0x119   : > { %6085 = vmatmul.msk.f32.gmra.mxu3 %vm204_vm1, %v6729_v24 }
 0x11a   : > { %v7312_v53 = vpop.f32.mrf.mxu0 }
 0x11b   : > { %v7314_v32 = vpop.f32.mrf.mxu1 }
 0x11c   : > { %v804_v38 = vpop.f32.mrf.mxu3  ;;  %6053 = vmatmul.msk.f32.gmra.mxu2 %vm204_vm1, %v7326_v45 }
 0x11d   : > { %6118 = vmatmul.msk.f32.gmra.mxu0 %vm204_vm1, %v7090_v8  ;;  %v7324_v26 = vadd.f32 %v804_v38, %v592_v58  ;;  %v279_v8 = vld [vmem:[#allocation2 + $0xff] sm:$0x1] }
 0x11e   : > { %6152 = vmatmul.msk.f32.gmra.mxu1 %vm204_vm1, %v7310_v9  ;;  %295 = vst.msk [vmem:[#allocation2 + $0x101] sm:$0x1] %vm253_vm2, %v279_v8 }
 0x11f   : > { %10192 = vst [vmem:[#allocation64_spill] sm:$0xff] %v7324_v26  ;;  %v960_v58 = vpop.f32.mrf.mxu2  ;;  %v7343_v26 = vld [vmem:[#allocation2 + $0xca] sm:$0xff] }
 0x121   : > { %6086 = vmatmul.msk.f32.gmra.mxu3 %vm204_vm1, %v6752_v29  ;;  %v715_v29 = vadd.f32 %v7105_v22, %v7103_v2  ;;  %v718_v2 = vadd.f32 %v7118_v21, %v7116_v61 }
 0x122   : > { %v7328_v37 = vpop.f32.mrf.mxu0 }
 0x123   : > { %v7330_v48 = vpop.f32.mrf.mxu1 }
 0x124   : > { %v807_v24 = vpop.f32.mrf.mxu3  ;;  %6054 = vmatmul.msk.f32.gmra.mxu2 %vm204_vm1, %v7343_v26 }
 0x125   : > { %6119 = vmatmul.msk.f32.gmra.mxu0 %vm204_vm1, %v6706_v13  ;;  %v7341_v38 = vadd.f32 %v807_v24, %v595_v7  ;;  %v1056_v13 = vadd.f32 %v960_v58, %v715_v29  ;;  %v7374_v29 = vld [vmem:[#allocation2 + $0xe2] sm:$0xff] }
 0x126   : > { %6153 = vmatmul.msk.f32.gmra.mxu1 %vm204_vm1, %v7326_v45 }
 0x127   : > { %10194 = vst [vmem:[#allocation66_spill] sm:$0xff] %v7341_v38  ;;  %v963_v7 = vpop.f32.mrf.mxu2  ;;  %v7359_v38 = vld [vmem:[#allocation2 + $0xda] sm:$0xff] }
 0x129   : > { %6087 = vmatmul.msk.f32.gmra.mxu3 %vm204_vm1, %v6771_v36  ;;  %v1057_v36 = vadd.f32 %v963_v7, %v718_v2 }
 0x12a   : > { %v7345_v9 = vpop.f32.mrf.mxu0 }
 0x12b   : > { %v7347_v10 = vpop.f32.mrf.mxu1 }
 0x12c   : > { %10195 = vst [vmem:[#allocation67_spill] sm:$0xff] %v7347_v10  ;;  %v1238_v8 = vpop.f32.mrf.mxu3  ;;  %6055 = vmatmul.msk.f32.gmra.mxu2 %vm204_vm1, %v7359_v38 }
 0x12d   : > { %6120 = vmatmul.msk.f32.gmra.mxu0 %vm204_vm1, %v6722_v20  ;;  %v1334_v24 = vadd.f32 %v1238_v8, %v1056_v13  ;;  %v280_v20 = vld [vmem:[#allocation2 + $0x117] sm:$0x1] }
 0x12e   : > { %6154 = vmatmul.msk.f32.gmra.mxu1 %vm204_vm1, %v7343_v26  ;;  %296 = vst.msk [vmem:[#allocation2 + $0x119] sm:$0x1] %vm253_vm2, %v280_v20 }
 0x12f   : > { %v966_v61 = vpop.f32.mrf.mxu2 }
 0x131   : > { %6088 = vmatmul.msk.f32.gmra.mxu3 %vm204_vm1, %v6788_v42  ;;  %v721_v42 = vadd.f32 %v7132_v44, %v7130_v34  ;;  %v7388_v34 = vld [vmem:[#allocation2 + $0xf2] sm:$0xff] }
 0x132   : > { %v1516_v45 = vpop.f32.mrf.mxu0 }
 0x133   : > { %v1794_v22 = vpop.f32.mrf.mxu1  ;;  %v1612_v10 = vadd.f32 %v1516_v45, %v1334_v24 }
 0x134   : > { %v1241_v21 = vpop.f32.mrf.mxu3  ;;  %6056 = vmatmul.msk.f32.gmra.mxu2 %vm204_vm1, %v7374_v29 }
 0x135   : > { %v7367_v58 = vadd.f32 %v1794_v22, %v1612_v10  ;;  %6121 = vmatmul.msk.f32.gmra.mxu0 %vm204_vm1, %v6750_v28  ;;  %v1335_v45 = vadd.f32 %v1241_v21, %v1057_v36  ;;  %v1058_v28 = vadd.f32 %v966_v61, %v721_v42  ;;  %v724_v36 = vadd.f32 %v7149_v17, %v7147_v52 }
 0x136   : > { %6155 = vmatmul.msk.f32.gmra.mxu1 %vm204_vm1, %v7359_v38 }
 0x137   : > { %v969_v24 = vpop.f32.mrf.mxu2 }
 0x138   : > { %v1059_v61 = vadd.f32 %v969_v24, %v724_v36 }
 0x139   : > { %6089 = vmatmul.msk.f32.gmra.mxu3 %vm204_vm1, %v6819_v50 }
 0x13a   : > { %v1519_v13 = vpop.f32.mrf.mxu0 }
 0x13b   : > { %v1797_v8 = vpop.f32.mrf.mxu1  ;;  %v1613_v10 = vadd.f32 %v1519_v13, %v1335_v45  ;;  %v7403_v13 = vld [vmem:[#allocation2 + $0xfa] sm:$0xff] }
 0x13c   : > { %v1244_v22 = vpop.f32.mrf.mxu3  ;;  %6057 = vmatmul.msk.f32.gmra.mxu2 %vm204_vm1, %v7388_v34 }
 0x13d   : > { %v7382_v7 = vadd.f32 %v1797_v8, %v1613_v10  ;;  %6122 = vmatmul.msk.f32.gmra.mxu0 %vm204_vm1, %v6769_v35  ;;  %v1336_v2 = vadd.f32 %v1244_v22, %v1058_v28  ;;  %v281_v35 = vld [vmem:[#allocation2 + $0x12f] sm:$0x1] }
 0x13e   : > { %6156 = vmatmul.msk.f32.gmra.mxu1 %vm204_vm1, %v7374_v29  ;;  %297 = vst.msk [vmem:[#allocation2 + $0x131] sm:$0x1] %vm253_vm2, %v281_v35 }
 0x13f   : > { %v972_v17 = vpop.f32.mrf.mxu2 }
 0x141   : > { %6090 = vmatmul.msk.f32.gmra.mxu3 %vm204_vm1, %v6842_v56  ;;  %v727_v56 = vadd.f32 %v7165_v19, %v7163_v51  ;;  %v7417_v19 = vld [vmem:[#allocation2 + $0x10a] sm:$0xff] }
 0x142   : > { %v1522_v44 = vpop.f32.mrf.mxu0 }
 0x143   : > { %v1800_v20 = vpop.f32.mrf.mxu1  ;;  %v1614_v50 = vadd.f32 %v1522_v44, %v1336_v2 }
 0x144   : > { %v1247_v52 = vpop.f32.mrf.mxu3  ;;  %6058 = vmatmul.msk.f32.gmra.mxu2 %vm204_vm1, %v7403_v13 }
 0x145   : > { %v7396_v21 = vadd.f32 %v1800_v20, %v1614_v50  ;;  %6123 = vmatmul.msk.f32.gmra.mxu0 %vm204_vm1, %v6786_v41  ;;  %v1337_v45 = vadd.f32 %v1247_v52, %v1059_v61  ;;  %v1060_v41 = vadd.f32 %v972_v17, %v727_v56  ;;  %v730_v20 = vadd.f32 %v7182_v23, %v7180_v43  ;;  %v7432_v61 = vld [vmem:[#allocation2 + $0x112] sm:$0xff] }
 0x146   : > { %6157 = vmatmul.msk.f32.gmra.mxu1 %vm204_vm1, %v7388_v34 }
 0x147   : > { %v975_v24 = vpop.f32.mrf.mxu2 }
 0x148   : > { %v1061_v36 = vadd.f32 %v975_v24, %v730_v20  ;;  %v736_v24 = vadd.f32 %v7215_v25, %v7213_v6 }
 0x149   : > { %6091 = vmatmul.msk.f32.gmra.mxu3 %vm204_vm1, %v6871_v63 }
 0x14a   : > { %v1525_v8 = vpop.f32.mrf.mxu0 }
 0x14b   : > { %v1803_v42 = vpop.f32.mrf.mxu1  ;;  %v1615_v10 = vadd.f32 %v1525_v8, %v1337_v45 }
 0x14c   : > { %v1250_v22 = vpop.f32.mrf.mxu3  ;;  %6059 = vmatmul.msk.f32.gmra.mxu2 %vm204_vm1, %v7417_v19 }
 0x14d   : > { %v7411_v28 = vadd.f32 %v1803_v42, %v1615_v10  ;;  %6124 = vmatmul.msk.f32.gmra.mxu0 %vm204_vm1, %v6817_v49  ;;  %v1338_v2 = vadd.f32 %v1250_v22, %v1060_v41  ;;  %v282_v49 = vld [vmem:[#allocation2 + $0x147] sm:$0x1] }
 0x14e   : > { %6158 = vmatmul.msk.f32.gmra.mxu1 %vm204_vm1, %v7403_v13  ;;  %298 = vst.msk [vmem:[#allocation2 + $0x149] sm:$0x1] %vm253_vm2, %v282_v49 }
 0x14f   : > { %v978_v23 = vpop.f32.mrf.mxu2 }
 0x151   : > { %6092 = vmatmul.msk.f32.gmra.mxu3 %vm204_vm1, %v6892_v4  ;;  %v733_v4 = vadd.f32 %v7198_v57, %v7196_v11  ;;  %v7446_v57 = vld [vmem:[#allocation2 + $0x122] sm:$0xff] }
 0x152   : > { %v1528_v51 = vpop.f32.mrf.mxu0 }
 0x153   : > { %v1806_v44 = vpop.f32.mrf.mxu1  ;;  %v1616_v63 = vadd.f32 %v1528_v51, %v1338_v2 }
 0x154   : > { %v1253_v43 = vpop.f32.mrf.mxu3  ;;  %6060 = vmatmul.msk.f32.gmra.mxu2 %vm204_vm1, %v7432_v61 }
 0x155   : > { %v7425_v50 = vadd.f32 %v1806_v44, %v1616_v63  ;;  %6125 = vmatmul.msk.f32.gmra.mxu0 %vm204_vm1, %v6840_v55  ;;  %v1339_v35 = vadd.f32 %v1253_v43, %v1061_v36  ;;  %v1062_v55 = vadd.f32 %v978_v23, %v733_v4  ;;  %v7461_v44 = vld [vmem:[#allocation2 + $0x12a] sm:$0xff]  ;;  %v739_v63 = vadd.f32 %v7231_v33, %v7229_v15 }
 0x156   : > { %6159 = vmatmul.msk.f32.gmra.mxu1 %vm204_vm1, %v7417_v19 }
 0x157   : > { %v981_v42 = vpop.f32.mrf.mxu2 }
 0x158   : > { %v1063_v22 = vadd.f32 %v981_v42, %v736_v24  ;;  %v745_v42 = vadd.f32 %v7264_v54, %v7262_v60  ;;  %v10198_v24 = vld [vmem:[#allocation32_spill] sm:$0xff] }
 0x159   : > { %6093 = vmatmul.msk.f32.gmra.mxu3 %vm204_vm1, %v6923_v30 }
 0x15a   : > { %v1531_v17 = vpop.f32.mrf.mxu0 }
 0x15b   : > { %v1809_v52 = vpop.f32.mrf.mxu1  ;;  %v1617_v45 = vadd.f32 %v1531_v17, %v1339_v35  ;;  %v7482_v35 = vld [vmem:[#allocation2 + $0x13a] sm:$0xff]  ;;  %v742_v17 = vadd.f32 %v7248_v0, %v7246_v16 }
 0x15c   : > { %v1256_v56 = vpop.f32.mrf.mxu3  ;;  %6061 = vmatmul.msk.f32.gmra.mxu2 %vm204_vm1, %v7446_v57 }
 0x15d   : > { %v7440_v8 = vadd.f32 %v1809_v52, %v1617_v45  ;;  %6126 = vmatmul.msk.f32.gmra.mxu0 %vm204_vm1, %v6869_v62  ;;  %v1340_v10 = vadd.f32 %v1256_v56, %v1062_v55  ;;  %v283_v62 = vld [vmem:[#allocation2 + $0x15f] sm:$0x1]  ;;  %v7500_v55 = vld [vmem:[#allocation2 + $0x142] sm:$0xff] }
 0x15e   : > { %6160 = vmatmul.msk.f32.gmra.mxu1 %vm204_vm1, %v7432_v61  ;;  %299 = vst.msk [vmem:[#allocation2 + $0x161] sm:$0x1] %vm253_vm2, %v283_v62 }
 0x15f   : > { %v984_v6 = vpop.f32.mrf.mxu2 }
 0x160   : > { %v1064_v36 = vadd.f32 %v984_v6, %v739_v63 }
 0x161   : > { %6094 = vmatmul.msk.f32.gmra.mxu3 %vm204_vm1, %v6946_v47 }
 0x162   : > { %v1534_v11 = vpop.f32.mrf.mxu0 }
 0x163   : > { %v1812_v41 = vpop.f32.mrf.mxu1  ;;  %v1618_v30 = vadd.f32 %v1534_v11, %v1340_v10  ;;  %v7521_v11 = vld [vmem:[#allocation2 + $0x152] sm:$0xff] }
 0x164   : > { %v1259_v25 = vpop.f32.mrf.mxu3  ;;  %6062 = vmatmul.msk.f32.gmra.mxu2 %vm204_vm1, %v7461_v44 }
 0x165   : > { %v7454_v2 = vadd.f32 %v1812_v41, %v1618_v30  ;;  %6127 = vmatmul.msk.f32.gmra.mxu0 %vm204_vm1, %v6890_v3  ;;  %v1341_v51 = vadd.f32 %v1259_v25, %v1063_v22  ;;  %v7470_v3 = vld [vmem:[%s6666_s27 + $0xf0] sm:$0xff]  ;;  %v10199_v25 = vld [vmem:[#allocation36_spill] sm:$0xff] }
 0x166   : > { %6161 = vmatmul.msk.f32.gmra.mxu1 %vm204_vm1, %v7446_v57  ;;  %10196 = vst [vmem:[#allocation68_spill] sm:$0xff] %v7470_v3 }
 0x167   : > { %235 = vst.msk [vmem:[#allocation2 + $0x181] sm:$0xff] %vm204_vm1, %v7470_v3  ;;  %v987_v33 = vpop.f32.mrf.mxu2 }
 0x168   : > { %v1065_v4 = vadd.f32 %v987_v33, %v742_v17  ;;  %v10201_v33 = vld [vmem:[#allocation37_spill] sm:$0xff]  ;;  %v10202_v17 = vld [vmem:[#allocation35_spill] sm:$0xff] }
 0x169   : > { %6095 = vmatmul.msk.f32.gmra.mxu3 %vm204_vm1, %v6977_v1 }
 0x16a   : > { %v1537_v20 = vpop.f32.mrf.mxu0 }
 0x16b   : > { %v1815_v47 = vpop.f32.mrf.mxu1  ;;  %v1619_v49 = vadd.f32 %v1537_v20, %v1341_v51  ;;  %v10200_v20 = vld [vmem:[#allocation34_spill] sm:$0xff] }
 0x16c   : > { %v1262_v15 = vpop.f32.mrf.mxu3  ;;  %6063 = vmatmul.msk.f32.gmra.mxu2 %vm204_vm1, %v7482_v35 }
 0x16d   : > { %v7472_v23 = vadd.f32 %v1815_v47, %v1619_v49  ;;  %6128 = vmatmul.msk.f32.gmra.mxu0 %vm204_vm1, %v6921_v27  ;;  %v7480_v43 = vadd.f32 %v1262_v15, %v1064_v36  ;;  %v284_v27 = vld [vmem:[#allocation2 + $0x177] sm:$0x1]  ;;  %v7554_v36 = vld [vmem:[#allocation2 + $0x16a] sm:$0xff] }
 0x16e   : > { %6162 = vmatmul.msk.f32.gmra.mxu1 %vm204_vm1, %v7461_v44  ;;  %v252_v52 = vld [vmem:[#allocation2 + $0x182] sm:$0x1]  ;;  %300 = vst.msk [vmem:[#allocation2 + $0x179] sm:$0x1] %vm253_vm2, %v284_v27 }
 0x16f   : > { %v990_v45 = vpop.f32.mrf.mxu2  ;;  %269 = vst.msk [vmem:[#allocation2 + $0x180] sm:$0x1] %vm253_vm2, %v252_v52 }
 0x170   : > { %v1066_v56 = vadd.f32 %v990_v45, %v745_v42  ;;  %v757_v42 = vadd.f32 %v7330_v48, %v7328_v37  ;;  %v1922_v48 = vld [vmem:[#allocation2 + $0x30] sm:$0xff] }
 0x171   : > { %6096 = vmatmul.msk.f32.gmra.mxu3 %vm204_vm1, %v6995_v46 }
 0x172   : > { %v7484_v1 = vpop.f32.mrf.mxu0 }
 0x174   : > { %v1265_v16 = vpop.f32.mrf.mxu3  ;;  %6064 = vmatmul.msk.f32.gmra.mxu2 %vm204_vm1, %v7500_v55 }
 0x175   : > { %6129 = vmatmul.msk.f32.gmra.mxu0 %vm204_vm1, %v6944_v40  ;;  %v7498_v0 = vadd.f32 %v1265_v16, %v1065_v4  ;;  %v7511_v40 = vld [vmem:[%s6666_s27 + $0xf8] sm:$0xff] }
 0x176   : > { %6163 = vmatmul.msk.f32.gmra.mxu1 %vm204_vm1, %v7482_v35  ;;  %10197 = vst [vmem:[#allocation69_spill] sm:$0xff] %v7511_v40  ;;  %v7570_v45 = vld [vmem:[#allocation2 + $0x172] sm:$0xff] }
 0x177   : > { %236 = vst.msk [vmem:[#allocation2 + $0x189] sm:$0xff] %vm204_vm1, %v7511_v40  ;;  %v993_v10 = vpop.f32.mrf.mxu2  ;;  %v7576_v16 = vld [vmem:[#allocation2 + $0x171] sm:$0xff] }
 0x179   : > { %6097 = vmatmul.msk.f32.gmra.mxu3 %vm204_vm1, %v7021_v12  ;;  %v748_v12 = vadd.f32 %v7281_v31, %v7279_v14  ;;  %v7538_v14 = vld [vmem:[#allocation2 + $0x15a] sm:$0xff] }
 0x17a   : > { %v7502_v46 = vpop.f32.mrf.mxu0 }
 0x17c   : > { %v1268_v54 = vpop.f32.mrf.mxu3  ;;  %6065 = vmatmul.msk.f32.gmra.mxu2 %vm204_vm1, %v7521_v11 }
 0x17d   : > { %6130 = vmatmul.msk.f32.gmra.mxu0 %vm204_vm1, %v6975_v18  ;;  %v7519_v60 = vadd.f32 %v1268_v54, %v1066_v56  ;;  %v1067_v18 = vadd.f32 %v993_v10, %v748_v12 }
 0x17e   : > { %6164 = vmatmul.msk.f32.gmra.mxu1 %vm204_vm1, %v7500_v55  ;;  %v285_v22 = vld [vmem:[#allocation2 + $0x18f] sm:$0x1] }
 0x17f   : > { %v996_v30 = vpop.f32.mrf.mxu2  ;;  %301 = vst.msk [vmem:[#allocation2 + $0x191] sm:$0x1] %vm253_vm2, %v285_v22 }
 0x181   : > { %6098 = vmatmul.msk.f32.gmra.mxu3 %vm204_vm1, %v7041_v5  ;;  %v751_v5 = vadd.f32 %v7297_v39, %v7295_v59  ;;  %v754_v59 = vadd.f32 %v7314_v32, %v7312_v53  ;;  %v7572_v53 = vld [vmem:[#allocation2 + $0x180] sm:$0xff] }
 0x182   : > { %v7523_v41 = vpop.f32.mrf.mxu0 }
 0x183   : > { %v1068_v51 = vadd.f32 %v996_v30, %v751_v5  ;;  %v7596_v30 = vld [vmem:[#allocation2 + $0x182] sm:$0xff] }
 0x184   : > { %v1271_v62 = vpop.f32.mrf.mxu3  ;;  %6066 = vmatmul.msk.f32.gmra.mxu2 %vm204_vm1, %v7538_v14 }
 0x185   : > { %6131 = vmatmul.msk.f32.gmra.mxu0 %vm204_vm1, %v10198_v24  ;;  %v7535_v6 = vadd.f32 %v1271_v62, %v1067_v18  ;;  %v7590_v18 = vld [vmem:[#allocation2 + $0x188] sm:$0xff]  ;;  %v10203_v62 = vld [vmem:[#allocation67_spill] sm:$0xff] }
 0x186   : > { %6165 = vmatmul.msk.f32.gmra.mxu1 %vm204_vm1, %v7521_v11  ;;  %v7594_v24 = vld [vmem:[#allocation2 + $0x181] sm:$0xff]  ;;  %v760_v22 = vadd.f32 %v10203_v62, %v7345_v9  ;;  %v2200_v9 = vld [vmem:[#allocation2 + $0x31] sm:$0xff] }
 0x187   : > { %v999_v47 = vpop.f32.mrf.mxu2 }
 0x188   : > { %v1069_v15 = vadd.f32 %v999_v47, %v754_v59  ;;  %v1923_v59 = vld [vmem:[#allocation2 + $0x38] sm:$0xff] }
 0x189   : > { %6099 = vmatmul.msk.f32.gmra.mxu3 %vm204_vm1, %v10199_v25 }
 0x18a   : > { %v7540_v31 = vpop.f32.mrf.mxu0 }
 0x18c   : > { %v1274_v63 = vpop.f32.mrf.mxu3  ;;  %6067 = vmatmul.msk.f32.gmra.mxu2 %vm204_vm1, %v7554_v36 }
 0x18d   : > { %6132 = vmatmul.msk.f32.gmra.mxu0 %vm204_vm1, %v10200_v20  ;;  %v7552_v49 = vadd.f32 %v1274_v63, %v1068_v51  ;;  %v10204_v20 = vld [vmem:[#allocation38_spill] sm:$0xff] }
 0x18e   : > { %6166 = vmatmul.msk.f32.gmra.mxu1 %vm204_vm1, %v7538_v14 }
 0x18f   : > { %v1002_v27 = vpop.f32.mrf.mxu2 }
 0x190   : > { %v1070_v56 = vadd.f32 %v1002_v27, %v757_v42  ;;  %v10205_v42 = vld [vmem:[#allocation39_spill] sm:$0xff] }
 0x191   : > { %6100 = vmatmul.msk.f32.gmra.mxu3 %vm204_vm1, %v10201_v33 }
 0x192   : > { %v7556_v39 = vpop.f32.mrf.mxu0 }
 0x194   : > { %v1277_v52 = vpop.f32.mrf.mxu3  ;;  %6068 = vmatmul.msk.f32.gmra.mxu2 %vm204_vm1, %v7570_v45 }
 0x195   : > { %6133 = vmatmul.msk.f32.gmra.mxu0 %vm204_vm1, %v10202_v17  ;;  %v7568_v4 = vadd.f32 %v1277_v52, %v1069_v15  ;;  %v7612_v15 = vld [vmem:[#allocation2 + $0x189] sm:$0xff] }
 0x196   : > { %6167 = vmatmul.msk.f32.gmra.mxu1 %vm204_vm1, %v7554_v36  ;;  %v7614_v17 = vld [vmem:[#allocation2 + $0x18a] sm:$0xff] }
 0x197   : > { %v1005_v10 = vpop.f32.mrf.mxu2 }
 0x198   : > { %v1071_v5 = vadd.f32 %v1005_v10, %v760_v22  ;;  %v10206_v22 = vld [vmem:[#allocation41_spill] sm:$0xff] }
 0x199   : > { %6101 = vmatmul.msk.f32.gmra.mxu3 %vm204_vm1, %v7572_v53 }
 0x19a   : > { %v7574_v32 = vpop.f32.mrf.mxu0 }
 0x19c   : > { %v1280_v54 = vpop.f32.mrf.mxu3  ;;  %6173 = vmatmul.msk.f32.vlgmr.msra.gmra.mxu2 %vm204_vm1, %v1922_v48  ;;  %v2201_v48 = vld [vmem:[#allocation2 + $0x39] sm:$0xff] }
 0x19d   : > { %6134 = vmatmul.msk.f32.gmra.mxu0 %vm204_vm1, %v7576_v16  ;;  %v7588_v12 = vadd.f32 %v1280_v54, %v1070_v56  ;;  %v1924_v54 = vld [vmem:[#allocation2 + $0x48] sm:$0xff] }
 0x19e   : > { %6168 = vmatmul.msk.f32.gmra.mxu1 %vm204_vm1, %v7570_v45 }
 0x19f   : > { %v1008_v25 = vpop.f32.mrf.mxu2 }
 0x1a0   : > { %v1072_v47 = vadd.f32 %v1008_v25, %v10204_v20 }
 0x1a1   : > { %6102 = vmatmul.msk.f32.gmra.mxu3 %vm204_vm1, %v7590_v18 }
 0x1a2   : > { %v7592_v37 = vpop.f32.mrf.mxu0 }
 0x1a4   : > { %v1283_v51 = vpop.f32.mrf.mxu3  ;;  %6174 = vmatmul.msk.f32.gmra.mxu2 %vm204_vm1, %v1923_v59 }
 0x1a5   : > { %6135 = vmatmul.msk.f32.gmra.mxu0 %vm204_vm1, %v7594_v24  ;;  %v7608_v63 = vadd.f32 %v1283_v51, %v1071_v5  ;;  %v10207_v51 = vld [vmem:[#allocation40_spill] sm:$0xff] }
 0x1a6   : > { %6169 = vmatmul.msk.f32.gmra.mxu1 %vm204_vm1, %v7596_v30 }
 0x1a7   : > { %v1011_v27 = vpop.f32.mrf.mxu2 }
 0x1a8   : > { %v1073_v56 = vadd.f32 %v1011_v27, %v10205_v42 }
 0x1a9   : > { %6207 = vmatmul.msk.f32.vlgmr.msra.gmra.mxu3 %vm204_vm1, %v2200_v9  ;;  %v1925_v9 = vld [vmem:[#allocation2 + $0x50] sm:$0xff] }
 0x1aa   : > { %v7610_v33 = vpop.f32.mrf.mxu0 }
 0x1ac   : > { %v1286_v52 = vpop.f32.mrf.mxu3  ;;  %6175 = vmatmul.msk.f32.gmra.mxu2 %vm204_vm1, %v1924_v54 }
 0x1ad   : > { %6136 = vmatmul.msk.f32.gmra.mxu0 %vm204_vm1, %v7612_v15  ;;  %v7623_v10 = vadd.f32 %v1286_v52, %v1072_v47  ;;  %v2202_v47 = vld [vmem:[#allocation2 + $0x49] sm:$0xff] }
 0x1ae   : > { %6170 = vmatmul.msk.f32.gmra.mxu1 %vm204_vm1, %v7614_v17  ;;  %v10209_v52 = vld [vmem:[#allocation43_spill] sm:$0xff] }
 0x1af   : > { %v1014_v5 = vpop.f32.mrf.mxu2 }
 0x1b0   : > { %v1074_v20 = vadd.f32 %v1014_v5, %v10207_v51  ;;  %v1926_v5 = vld [vmem:[#allocation2 + $0x60] sm:$0xff] }
 0x1b1   : > { %6208 = vmatmul.msk.f32.gmra.mxu3 %vm204_vm1, %v2201_v48  ;;  %v10210_v48 = vld [vmem:[#allocation42_spill] sm:$0xff]  ;;  %v10213_v51 = vld [vmem:[#allocation45_spill] sm:$0xff] }
 0x1b2   : > { %v7625_v62 = vpop.f32.mrf.mxu0 }
 0x1b4   : > { %v1289_v25 = vpop.f32.mrf.mxu3  ;;  %6176 = vmatmul.msk.f32.gmra.mxu2 %vm204_vm1, %v1925_v9 }
 0x1b5   : > { %6241 = vmatmul.msk.f32.vlgmr.msra.gmra.mxu0 %vm204_vm1, %v10206_v22  ;;  %v7632_v59 = vadd.f32 %v1289_v25, %v1073_v56  ;;  %v2203_v56 = vld [vmem:[#allocation2 + $0x51] sm:$0xff] }
 0x1b7   : > { %v1017_v42 = vpop.f32.mrf.mxu2 }
 0x1b8   : > { %v1075_v22 = vadd.f32 %v1017_v42, %v10210_v48  ;;  %v1927_v42 = vld [vmem:[#allocation2 + $0x68] sm:$0xff]  ;;  %v10217_v48 = vld [vmem:[#allocation47_spill] sm:$0xff] }
 0x1b9   : > { %6209 = vmatmul.msk.f32.gmra.mxu3 %vm204_vm1, %v2202_v47 }
 0x1ba   : > { %v7634_v27 = vpop.f32.mrf.mxu0 }
 0x1bb   : > { %10208 = vst [vmem:[#allocation32_spill] sm:$0xff] %v7634_v27 }
 0x1bc   : > { %v1292_v54 = vpop.f32.mrf.mxu3  ;;  %6177 = vmatmul.msk.f32.gmra.mxu2 %vm204_vm1, %v1926_v5 }
 0x1bd   : > { %6242 = vmatmul.msk.f32.gmra.mxu0 %vm204_vm1, %v10209_v52  ;;  %v7641_v40 = vadd.f32 %v1292_v54, %v1074_v20  ;;  %v10214_v52 = vld [vmem:[#allocation44_spill] sm:$0xff]  ;;  %v2204_v20 = vld [vmem:[#allocation2 + $0x61] sm:$0xff] }
 0x1bf   : > { %10211 = vst [vmem:[#allocation36_spill] sm:$0xff] %v7641_v40  ;;  %v1020_v9 = vpop.f32.mrf.mxu2 }
 0x1c0   : > { %v1076_v3 = vadd.f32 %v1020_v9, %v10214_v52  ;;  %v1928_v9 = vld [vmem:[#allocation2 + $0x78] sm:$0xff]  ;;  %v10221_v52 = vld [vmem:[#allocation49_spill] sm:$0xff] }
 0x1c1   : > { %6210 = vmatmul.msk.f32.gmra.mxu3 %vm204_vm1, %v2203_v56 }
 0x1c2   : > { %v7643_v25 = vpop.f32.mrf.mxu0 }
 0x1c3   : > { %10212 = vst [vmem:[#allocation34_spill] sm:$0xff] %v7643_v25 }
 0x1c4   : > { %v1295_v47 = vpop.f32.mrf.mxu3  ;;  %6178 = vmatmul.msk.f32.gmra.mxu2 %vm204_vm1, %v1927_v42 }
 0x1c5   : > { %6243 = vmatmul.msk.f32.gmra.mxu0 %vm204_vm1, %v10213_v51  ;;  %v7650_v27 = vadd.f32 %v1295_v47, %v1075_v22  ;;  %v10218_v51 = vld [vmem:[#allocation46_spill] sm:$0xff] }
 0x1c6   : > { %v2205_v22 = vld [vmem:[#allocation2 + $0x69] sm:$0xff] }
 0x1c7   : > { %10215 = vst [vmem:[#allocation37_spill] sm:$0xff] %v7650_v27  ;;  %v1023_v5 = vpop.f32.mrf.mxu2 }
 0x1c8   : > { %v1077_v25 = vadd.f32 %v1023_v5, %v10218_v51  ;;  %v1929_v5 = vld [vmem:[#allocation2 + $0x80] sm:$0xff]  ;;  %v10225_v51 = vld [vmem:[#allocation51_spill] sm:$0xff] }
 0x1c9   : > { %6211 = vmatmul.msk.f32.gmra.mxu3 %vm204_vm1, %v2204_v20 }
 0x1ca   : > { %v7652_v54 = vpop.f32.mrf.mxu0 }
 0x1cb   : > { %10216 = vst [vmem:[#allocation35_spill] sm:$0xff] %v7652_v54 }
 0x1cc   : > { %v1298_v56 = vpop.f32.mrf.mxu3  ;;  %6179 = vmatmul.msk.f32.gmra.mxu2 %vm204_vm1, %v1928_v9 }
 0x1cd   : > { %6244 = vmatmul.msk.f32.gmra.mxu0 %vm204_vm1, %v10217_v48  ;;  %v7659_v40 = vadd.f32 %v1298_v56, %v1076_v3  ;;  %v10222_v48 = vld [vmem:[#allocation48_spill] sm:$0xff] }
 0x1ce   : > { %v2206_v3 = vld [vmem:[#allocation2 + $0x79] sm:$0xff] }
 0x1cf   : > { %10219 = vst [vmem:[#allocation67_spill] sm:$0xff] %v7659_v40  ;;  %v1026_v42 = vpop.f32.mrf.mxu2 }
 0x1d0   : > { %v1078_v54 = vadd.f32 %v1026_v42, %v10222_v48  ;;  %v1930_v42 = vld [vmem:[#allocation2 + $0x90] sm:$0xff]  ;;  %v10229_v48 = vld [vmem:[#allocation53_spill] sm:$0xff] }
 0x1d1   : > { %6212 = vmatmul.msk.f32.gmra.mxu3 %vm204_vm1, %v2205_v22 }
 0x1d2   : > { %v7661_v47 = vpop.f32.mrf.mxu0 }
 0x1d3   : > { %10220 = vst [vmem:[#allocation38_spill] sm:$0xff] %v7661_v47 }
 0x1d4   : > { %v1301_v20 = vpop.f32.mrf.mxu3  ;;  %6180 = vmatmul.msk.f32.gmra.mxu2 %vm204_vm1, %v1929_v5 }
 0x1d5   : > { %6245 = vmatmul.msk.f32.gmra.mxu0 %vm204_vm1, %v10221_v52  ;;  %v7668_v27 = vadd.f32 %v1301_v20, %v1077_v25  ;;  %v10226_v52 = vld [vmem:[#allocation50_spill] sm:$0xff] }
 0x1d6   : > { %v2207_v25 = vld [vmem:[#allocation2 + $0x81] sm:$0xff] }
 0x1d7   : > { %10223 = vst [vmem:[#allocation39_spill] sm:$0xff] %v7668_v27  ;;  %v1029_v9 = vpop.f32.mrf.mxu2 }
 0x1d8   : > { %v1079_v47 = vadd.f32 %v1029_v9, %v10226_v52  ;;  %v1931_v9 = vld [vmem:[#allocation2 + $0x98] sm:$0xff]  ;;  %v10233_v52 = vld [vmem:[#allocation55_spill] sm:$0xff] }
 0x1d9   : > { %6213 = vmatmul.msk.f32.gmra.mxu3 %vm204_vm1, %v2206_v3 }
 0x1da   : > { %v7670_v56 = vpop.f32.mrf.mxu0 }
 0x1db   : > { %10224 = vst [vmem:[#allocation41_spill] sm:$0xff] %v7670_v56 }
 0x1dc   : > { %v1304_v22 = vpop.f32.mrf.mxu3  ;;  %6181 = vmatmul.msk.f32.gmra.mxu2 %vm204_vm1, %v1930_v42 }
 0x1dd   : > { %6246 = vmatmul.msk.f32.gmra.mxu0 %vm204_vm1, %v10225_v51  ;;  %v7677_v40 = vadd.f32 %v1304_v22, %v1078_v54  ;;  %v10230_v51 = vld [vmem:[#allocation52_spill] sm:$0xff] }
 0x1de   : > { %v2208_v54 = vld [vmem:[#allocation2 + $0x91] sm:$0xff] }
 0x1df   : > { %10227 = vst [vmem:[#allocation40_spill] sm:$0xff] %v7677_v40  ;;  %v1032_v5 = vpop.f32.mrf.mxu2 }
 0x1e0   : > { %v1080_v56 = vadd.f32 %v1032_v5, %v10230_v51  ;;  %v1932_v5 = vld [vmem:[#allocation2 + $0xa8] sm:$0xff]  ;;  %v10237_v51 = vld [vmem:[#allocation57_spill] sm:$0xff] }
 0x1e1   : > { %6214 = vmatmul.msk.f32.gmra.mxu3 %vm204_vm1, %v2207_v25 }
 0x1e2   : > { %v7679_v20 = vpop.f32.mrf.mxu0 }
 0x1e3   : > { %10228 = vst [vmem:[#allocation43_spill] sm:$0xff] %v7679_v20 }
 0x1e4   : > { %v1307_v3 = vpop.f32.mrf.mxu3  ;;  %6182 = vmatmul.msk.f32.gmra.mxu2 %vm204_vm1, %v1931_v9 }
 0x1e5   : > { %6247 = vmatmul.msk.f32.gmra.mxu0 %vm204_vm1, %v10229_v48  ;;  %v7686_v27 = vadd.f32 %v1307_v3, %v1079_v47  ;;  %v10234_v48 = vld [vmem:[#allocation54_spill] sm:$0xff]  ;;  %v2209_v47 = vld [vmem:[#allocation2 + $0x99] sm:$0xff] }
 0x1e7   : > { %10231 = vst [vmem:[#allocation42_spill] sm:$0xff] %v7686_v27  ;;  %v1035_v42 = vpop.f32.mrf.mxu2 }
 0x1e8   : > { %v1081_v20 = vadd.f32 %v1035_v42, %v10234_v48  ;;  %v1933_v42 = vld [vmem:[#allocation2 + $0xb0] sm:$0xff] }
 0x1e9   : > { %6215 = vmatmul.msk.f32.gmra.mxu3 %vm204_vm1, %v2208_v54  ;;  %v10241_v48 = vld [vmem:[#allocation59_spill] sm:$0xff] }
 0x1ea   : > { %v7688_v22 = vpop.f32.mrf.mxu0 }
 0x1eb   : > { %10232 = vst [vmem:[#allocation45_spill] sm:$0xff] %v7688_v22 }
 0x1ec   : > { %v1310_v25 = vpop.f32.mrf.mxu3  ;;  %6183 = vmatmul.msk.f32.gmra.mxu2 %vm204_vm1, %v1932_v5 }
 0x1ed   : > { %6248 = vmatmul.msk.f32.gmra.mxu0 %vm204_vm1, %v10233_v52  ;;  %v7695_v40 = vadd.f32 %v1310_v25, %v1080_v56  ;;  %v10238_v52 = vld [vmem:[#allocation56_spill] sm:$0xff]  ;;  %v2210_v56 = vld [vmem:[#allocation2 + $0xa9] sm:$0xff] }
 0x1ef   : > { %10235 = vst [vmem:[#allocation44_spill] sm:$0xff] %v7695_v40  ;;  %v1038_v9 = vpop.f32.mrf.mxu2 }
 0x1f0   : > { %v1082_v22 = vadd.f32 %v1038_v9, %v10238_v52  ;;  %v1934_v9 = vld [vmem:[#allocation2 + $0xc0] sm:$0xff] }
 0x1f1   : > { %6216 = vmatmul.msk.f32.gmra.mxu3 %vm204_vm1, %v2209_v47  ;;  %v10245_v52 = vld [vmem:[#allocation61_spill] sm:$0xff] }
 0x1f2   : > { %v7697_v3 = vpop.f32.mrf.mxu0 }
 0x1f3   : > { %10236 = vst [vmem:[#allocation47_spill] sm:$0xff] %v7697_v3 }
 0x1f4   : > { %v1313_v54 = vpop.f32.mrf.mxu3  ;;  %6184 = vmatmul.msk.f32.gmra.mxu2 %vm204_vm1, %v1933_v42 }
 0x1f5   : > { %6249 = vmatmul.msk.f32.gmra.mxu0 %vm204_vm1, %v10237_v51  ;;  %v7704_v27 = vadd.f32 %v1313_v54, %v1081_v20  ;;  %v10242_v51 = vld [vmem:[#allocation58_spill] sm:$0xff]  ;;  %v2211_v20 = vld [vmem:[#allocation2 + $0xb1] sm:$0xff] }
 0x1f7   : > { %10239 = vst [vmem:[#allocation46_spill] sm:$0xff] %v7704_v27  ;;  %v1041_v5 = vpop.f32.mrf.mxu2 }
 0x1f8   : > { %v1083_v3 = vadd.f32 %v1041_v5, %v10242_v51  ;;  %v1935_v5 = vld [vmem:[#allocation2 + $0xc8] sm:$0xff]  ;;  %v10249_v51 = vld [vmem:[#allocation63_spill] sm:$0xff] }
 0x1f9   : > { %6217 = vmatmul.msk.f32.gmra.mxu3 %vm204_vm1, %v2210_v56 }
 0x1fa   : > { %v7706_v25 = vpop.f32.mrf.mxu0 }
 0x1fb   : > { %10240 = vst [vmem:[#allocation49_spill] sm:$0xff] %v7706_v25 }
 0x1fc   : > { %v1316_v47 = vpop.f32.mrf.mxu3  ;;  %6185 = vmatmul.msk.f32.gmra.mxu2 %vm204_vm1, %v1934_v9 }
 0x1fd   : > { %6250 = vmatmul.msk.f32.gmra.mxu0 %vm204_vm1, %v10241_v48  ;;  %v7713_v40 = vadd.f32 %v1316_v47, %v1082_v22  ;;  %v10246_v48 = vld [vmem:[#allocation60_spill] sm:$0xff]  ;;  %v2212_v22 = vld [vmem:[#allocation2 + $0xc1] sm:$0xff] }
 0x1ff   : > { %10243 = vst [vmem:[#allocation48_spill] sm:$0xff] %v7713_v40  ;;  %v1044_v42 = vpop.f32.mrf.mxu2 }
 0x200   : > { %v1084_v25 = vadd.f32 %v1044_v42, %v10246_v48  ;;  %v1936_v42 = vld [vmem:[#allocation2 + $0xd8] sm:$0xff]  ;;  %v10253_v48 = vld [vmem:[#allocation65_spill] sm:$0xff] }
 0x201   : > { %6218 = vmatmul.msk.f32.gmra.mxu3 %vm204_vm1, %v2211_v20 }
 0x202   : > { %v7715_v54 = vpop.f32.mrf.mxu0 }
 0x203   : > { %10244 = vst [vmem:[#allocation51_spill] sm:$0xff] %v7715_v54 }
 0x204   : > { %v1319_v56 = vpop.f32.mrf.mxu3  ;;  %6186 = vmatmul.msk.f32.gmra.mxu2 %vm204_vm1, %v1935_v5 }
 0x205   : > { %6251 = vmatmul.msk.f32.gmra.mxu0 %vm204_vm1, %v10245_v52  ;;  %v7722_v27 = vadd.f32 %v1319_v56, %v1083_v3  ;;  %v10250_v52 = vld [vmem:[#allocation62_spill] sm:$0xff] }
 0x206   : > { %v2213_v3 = vld [vmem:[#allocation2 + $0xc9] sm:$0xff] }
 0x207   : > { %10247 = vst [vmem:[#allocation50_spill] sm:$0xff] %v7722_v27  ;;  %v1047_v9 = vpop.f32.mrf.mxu2 }
 0x208   : > { %v1085_v54 = vadd.f32 %v1047_v9, %v10250_v52  ;;  %v1937_v9 = vld [vmem:[#allocation2 + $0xe0] sm:$0xff] }
 0x209   : > { %6219 = vmatmul.msk.f32.gmra.mxu3 %vm204_vm1, %v2212_v22 }
 0x20a   : > { %v7724_v47 = vpop.f32.mrf.mxu0 }
 0x20b   : > { %10248 = vst [vmem:[#allocation53_spill] sm:$0xff] %v7724_v47 }
 0x20c   : > { %v1322_v20 = vpop.f32.mrf.mxu3  ;;  %6187 = vmatmul.msk.f32.gmra.mxu2 %vm204_vm1, %v1936_v42 }
 0x20d   : > { %6252 = vmatmul.msk.f32.gmra.mxu0 %vm204_vm1, %v10249_v51  ;;  %v7731_v40 = vadd.f32 %v1322_v20, %v1084_v25  ;;  %v10254_v51 = vld [vmem:[#allocation64_spill] sm:$0xff] }
 0x20e   : > { %v2214_v25 = vld [vmem:[#allocation2 + $0xd9] sm:$0xff] }
 0x20f   : > { %10251 = vst [vmem:[#allocation52_spill] sm:$0xff] %v7731_v40  ;;  %v1050_v5 = vpop.f32.mrf.mxu2  ;;  %v1947_v40 = vld [vmem:[#allocation2 + $0x158] sm:$0xff] }
 0x210   : > { %v1086_v47 = vadd.f32 %v1050_v5, %v10254_v51  ;;  %v1938_v5 = vld [vmem:[#allocation2 + $0xf0] sm:$0xff] }
 0x211   : > { %6220 = vmatmul.msk.f32.gmra.mxu3 %vm204_vm1, %v2213_v3  ;;  %v10257_v3 = vld [vmem:[#allocation66_spill] sm:$0xff] }
 0x212   : > { %v7733_v56 = vpop.f32.mrf.mxu0 }
 0x213   : > { %10252 = vst [vmem:[#allocation55_spill] sm:$0xff] %v7733_v56 }
 0x214   : > { %v1325_v22 = vpop.f32.mrf.mxu3  ;;  %6188 = vmatmul.msk.f32.gmra.mxu2 %vm204_vm1, %v1937_v9 }
 0x215   : > { %6253 = vmatmul.msk.f32.gmra.mxu0 %vm204_vm1, %v10253_v48  ;;  %v7740_v27 = vadd.f32 %v1325_v22, %v1085_v54  ;;  %v2215_v54 = vld [vmem:[#allocation2 + $0xe1] sm:$0xff] }
 0x217   : > { %10255 = vst [vmem:[#allocation54_spill] sm:$0xff] %v7740_v27  ;;  %v1053_v52 = vpop.f32.mrf.mxu2 }
 0x218   : > { %v1087_v48 = vadd.f32 %v1053_v52, %v10257_v3  ;;  %v1939_v52 = vld [vmem:[#allocation2 + $0xf8] sm:$0xff] }
 0x219   : > { %6221 = vmatmul.msk.f32.gmra.mxu3 %vm204_vm1, %v2214_v25 }
 0x21a   : > { %v7742_v20 = vpop.f32.mrf.mxu0 }
 0x21b   : > { %10256 = vst [vmem:[#allocation57_spill] sm:$0xff] %v7742_v20  ;;  %v2223_v20 = vld [vmem:[#allocation2 + $0x141] sm:$0xff] }
 0x21c   : > { %v1328_v42 = vpop.f32.mrf.mxu3  ;;  %6189 = vmatmul.msk.f32.gmra.mxu2 %vm204_vm1, %v1938_v5 }
 0x21d   : > { %6254 = vmatmul.msk.f32.gmra.mxu0 %vm204_vm1, %v7343_v26  ;;  %v7749_v56 = vadd.f32 %v1328_v42, %v1086_v47  ;;  %v2216_v47 = vld [vmem:[#allocation2 + $0xf1] sm:$0xff] }
 0x21f   : > { %10258 = vst [vmem:[#allocation56_spill] sm:$0xff] %v7749_v56  ;;  %v2072_v9 = vpop.f32.mrf.mxu2 }
 0x220   : > { %v2168_v25 = vadd.f32 %v2072_v9, %v7367_v58 }
 0x221   : > { %6222 = vmatmul.msk.f32.gmra.mxu3 %vm204_vm1, %v2215_v54 }
 0x222   : > { %v7751_v22 = vpop.f32.mrf.mxu0 }
 0x223   : > { %10259 = vst [vmem:[#allocation59_spill] sm:$0xff] %v7751_v22 }
 0x224   : > { %v1331_v51 = vpop.f32.mrf.mxu3  ;;  %6190 = vmatmul.msk.f32.gmra.mxu2 %vm204_vm1, %v1939_v52 }
 0x225   : > { %6255 = vmatmul.msk.f32.gmra.mxu0 %vm204_vm1, %v7359_v38  ;;  %v7757_v26 = vadd.f32 %v1331_v51, %v1087_v48  ;;  %v1940_v48 = vld [vmem:[#allocation2 + $0x108] sm:$0xff]  ;;  %v2217_v51 = vld [vmem:[#allocation2 + $0xf9] sm:$0xff] }
 0x227   : > { %10260 = vst [vmem:[#allocation58_spill] sm:$0xff] %v7757_v26  ;;  %v2075_v3 = vpop.f32.mrf.mxu2 }
 0x228   : > { %v2169_v38 = vadd.f32 %v2075_v3, %v7382_v7  ;;  %v2218_v3 = vld [vmem:[#allocation2 + $0x109] sm:$0xff] }
 0x229   : > { %6223 = vmatmul.msk.f32.gmra.mxu3 %vm204_vm1, %v2216_v47 }
 0x22a   : > { %v7760_v42 = vpop.f32.mrf.mxu0 }
 0x22b   : > { %10261 = vst [vmem:[#allocation61_spill] sm:$0xff] %v7760_v42 }
 0x22c   : > { %v2350_v5 = vpop.f32.mrf.mxu3  ;;  %6191 = vmatmul.msk.f32.gmra.mxu2 %vm204_vm1, %v1940_v48 }
 0x22d   : > { %6256 = vmatmul.msk.f32.gmra.mxu0 %vm204_vm1, %v7374_v29  ;;  %v7767_v54 = vadd.f32 %v2350_v5, %v2168_v25  ;;  %v7775_v29 = vpop.f32.mrf.mxu1  ;;  %v1941_v25 = vld [vmem:[#allocation2 + $0x110] sm:$0xff] }
 0x22f   : > { %v2078_v9 = vpop.f32.mrf.mxu2 }
 0x230   : > { %v2170_v47 = vadd.f32 %v2078_v9, %v7396_v21  ;;  %v1942_v21 = vld [vmem:[#allocation2 + $0x120] sm:$0xff] }
 0x231   : > { %6224 = vmatmul.msk.f32.gmra.mxu3 %vm204_vm1, %v2217_v51 }
 0x232   : > { %v7769_v58 = vpop.f32.mrf.mxu0 }
 0x234   : > { %v2353_v52 = vpop.f32.mrf.mxu3  ;;  %6192 = vmatmul.msk.f32.gmra.mxu2 %vm204_vm1, %v1941_v25 }
 0x235   : > { %6257 = vmatmul.msk.f32.gmra.mxu0 %vm204_vm1, %v7388_v34  ;;  %v7778_v7 = vadd.f32 %v2353_v52, %v2169_v38  ;;  %v2219_v38 = vld [vmem:[#allocation2 + $0x111] sm:$0xff]  ;;  %v7789_v9 = vpop.f32.mrf.mxu1 }
 0x237   : > { %v2081_v34 = vpop.f32.mrf.mxu2 }
 0x238   : > { %v2171_v51 = vadd.f32 %v2081_v34, %v7411_v28  ;;  %v2220_v34 = vld [vmem:[#allocation2 + $0x121] sm:$0xff] }
 0x239   : > { %6225 = vmatmul.msk.f32.gmra.mxu3 %vm204_vm1, %v2218_v3 }
 0x23a   : > { %v7780_v5 = vpop.f32.mrf.mxu0 }
 0x23c   : > { %v2356_v48 = vpop.f32.mrf.mxu3  ;;  %6193 = vmatmul.msk.f32.gmra.mxu2 %vm204_vm1, %v1942_v21 }
 0x23d   : > { %6258 = vmatmul.msk.f32.gmra.mxu0 %vm204_vm1, %v7403_v13  ;;  %v7787_v42 = vadd.f32 %v2356_v48, %v2170_v47  ;;  %v1943_v47 = vld [vmem:[#allocation2 + $0x128] sm:$0xff]  ;;  %v7802_v26 = vpop.f32.mrf.mxu1 }
 0x23f   : > { %v2084_v13 = vpop.f32.mrf.mxu2 }
 0x240   : > { %v2172_v3 = vadd.f32 %v2084_v13, %v7425_v50  ;;  %v2221_v13 = vld [vmem:[#allocation2 + $0x129] sm:$0xff] }
 0x241   : > { %6226 = vmatmul.msk.f32.gmra.mxu3 %vm204_vm1, %v2219_v38 }
 0x242   : > { %v7791_v52 = vpop.f32.mrf.mxu0 }
 0x244   : > { %v2359_v25 = vpop.f32.mrf.mxu3  ;;  %6194 = vmatmul.msk.f32.gmra.mxu2 %vm204_vm1, %v1943_v47  ;;  %v1948_v47 = vld [vmem:[#allocation2 + $0x168] sm:$0xff] }
 0x245   : > { %6259 = vmatmul.msk.f32.gmra.mxu0 %vm204_vm1, %v7417_v19  ;;  %v7798_v28 = vadd.f32 %v2359_v25, %v2171_v51  ;;  %v1944_v51 = vld [vmem:[#allocation2 + $0x138] sm:$0xff]  ;;  %v7815_v22 = vpop.f32.mrf.mxu1  ;;  %315 = vst.msk [vmem:[#allocation2 + $0x198] sm:$0xff] %vm204_vm1, %v1948_v47 }
 0x247   : > { %v2087_v19 = vpop.f32.mrf.mxu2 }
 0x248   : > { %v2173_v38 = vadd.f32 %v2087_v19, %v7440_v8  ;;  %v1945_v19 = vld [vmem:[#allocation2 + $0x140] sm:$0xff] }
 0x249   : > { %6227 = vmatmul.msk.f32.gmra.mxu3 %vm204_vm1, %v2220_v34 }
 0x24a   : > { %v7800_v48 = vpop.f32.mrf.mxu0 }
 0x24c   : > { %v2362_v21 = vpop.f32.mrf.mxu3  ;;  %6195 = vmatmul.msk.f32.gmra.mxu2 %vm204_vm1, %v1944_v51  ;;  %v6273_v51 = vld [vmem:[%s10021_s2 + $0x4] sm:$0xf] }
 0x24d   : > { %6260 = vmatmul.msk.f32.gmra.mxu0 %vm204_vm1, %v7432_v61  ;;  %v7809_v50 = vadd.f32 %v2362_v21, %v2172_v3  ;;  %v2222_v21 = vld [vmem:[#allocation2 + $0x139] sm:$0xff]  ;;  %6274 = vmatpush.msk.msra.mxu1 %vm481_vm0, %v6273_v51  ;;  %v1946_v51 = vld [vmem:[#allocation2 + $0x150] sm:$0xff] }
 0x24f   : > { %v2090_v61 = vpop.f32.mrf.mxu2 }
 0x250   : > { %v2174_v3 = vadd.f32 %v2090_v61, %v7454_v2  ;;  %v7834_v61 = vpop.f32.mrf.mxu1 }
 0x251   : > { %6228 = vmatmul.msk.f32.gmra.mxu3 %vm204_vm1, %v2221_v13 }
 0x252   : > { %v7811_v25 = vpop.f32.mrf.mxu0 }
 0x254   : > { %v2365_v8 = vpop.f32.mrf.mxu3  ;;  %6196 = vmatmul.msk.f32.gmra.mxu2 %vm204_vm1, %v1945_v19 }
 0x255   : > { %6261 = vmatmul.msk.f32.gmra.mxu0 %vm204_vm1, %v7446_v57  ;;  %v7821_v34 = vadd.f32 %v2365_v8, %v2173_v38  ;;  %v1949_v57 = vld [vmem:[#allocation2 + $0x170] sm:$0xff] }
 0x256   : > { %316 = vst.msk [vmem:[#allocation2 + $0x1a0] sm:$0xff] %vm204_vm1, %v1949_v57 }
 0x257   : > { %v2093_v2 = vpop.f32.mrf.mxu2 }
 0x258   : > { %v2175_v8 = vadd.f32 %v2093_v2, %v7472_v23  ;;  %v2224_v23 = vld [vmem:[#allocation2 + $0x151] sm:$0xff] }
 0x259   : > { %6229 = vmatmul.msk.f32.gmra.mxu3 %vm204_vm1, %v2222_v21 }
 0x25a   : > { %v7827_v13 = vpop.f32.mrf.mxu0 }
 0x25c   : > { %v2368_v38 = vpop.f32.mrf.mxu3  ;;  %6197 = vmatmul.msk.f32.gmra.mxu2 %vm204_vm1, %v1946_v51 }
 0x25d   : > { %6262 = vmatmul.msk.f32.gmra.mxu0 %vm204_vm1, %v7461_v44  ;;  %v7837_v56 = vadd.f32 %v2368_v38, %v2174_v3  ;;  %v7849_v3 = vpop.f32.mrf.mxu1  ;;  %v2225_v38 = vld [vmem:[#allocation2 + $0x159] sm:$0xff] }
 0x25f   : > { %v7845_v44 = vpop.f32.mrf.mxu2 }
 0x261   : > { %6230 = vmatmul.msk.f32.gmra.mxu3 %vm204_vm1, %v2223_v20 }
 0x262   : > { %v7839_v27 = vpop.f32.mrf.mxu0 }
 0x264   : > { %v2371_v19 = vpop.f32.mrf.mxu3  ;;  %6198 = vmatmul.msk.f32.gmra.mxu2 %vm204_vm1, %v1947_v40 }
 0x265   : > { %6263 = vmatmul.msk.f32.gmra.mxu0 %vm204_vm1, %v7482_v35  ;;  %v7847_v21 = vadd.f32 %v2371_v19, %v2175_v8  ;;  %v7863_v51 = vpop.f32.mrf.mxu1 }
 0x267   : > { %v7857_v20 = vpop.f32.mrf.mxu2 }
 0x269   : > { %6231 = vmatmul.msk.f32.gmra.mxu3 %vm204_vm1, %v2224_v23 }
 0x26a   : > { %v7851_v2 = vpop.f32.mrf.mxu0 }
 0x26b   : > { %10262 = vst [vmem:[#allocation60_spill] sm:$0xff] %v7851_v2 }
 0x26c   : > { %v7859_v35 = vpop.f32.mrf.mxu3  ;;  %6199 = vmatmul.msk.f32.gmra.mxu2 %vm204_vm1, %v1948_v47 }
 0x26d   : > { %6264 = vmatmul.msk.f32.gmra.mxu0 %vm204_vm1, %v7500_v55  ;;  %v2226_v55 = vld [vmem:[#allocation2 + $0x169] sm:$0xff]  ;;  %v7877_v2 = vpop.f32.mrf.mxu1 }
 0x26f   : > { %v7869_v40 = vpop.f32.mrf.mxu2 }
 0x271   : > { %6232 = vmatmul.msk.f32.gmra.mxu3 %vm204_vm1, %v2225_v38 }
 0x272   : > { %v7861_v8 = vpop.f32.mrf.mxu0 }
 0x273   : > { %10263 = vst [vmem:[#allocation63_spill] sm:$0xff] %v7861_v8  ;;  %v313_v8 = vld [vmem:[#allocation2 + $0x178] sm:$0x3] }
 0x274   : > { %v7871_v19 = vpop.f32.mrf.mxu3  ;;  %6200 = vmatmul.msk.f32.gmra.mxu2 %vm204_vm1, %v1949_v57  ;;  %317 = vst.msk [vmem:[#allocation2 + $0x1a8] sm:$0x3] %vm308_vm3, %v313_v8 }
 0x275   : > { %6265 = vmatmul.msk.f32.gmra.mxu0 %vm204_vm1, %v7521_v11  ;;  %v7898_v8 = vpop.f32.mrf.mxu1 }
 0x277   : > { %v7882_v11 = vpop.f32.mrf.mxu2 }
 0x278   : > { %10265 = vst [vmem:[#allocation65_spill] sm:$0xff] %v7882_v11 }
 0x279   : > { %6233 = vmatmul.msk.f32.gmra.mxu3 %vm204_vm1, %v2226_v55 }
 0x27a   : > { %v7873_v23 = vpop.f32.mrf.mxu0 }
 0x27b   : > { %10264 = vst [vmem:[#allocation62_spill] sm:$0xff] %v7873_v23 }
 0x27c   : > { %v7884_v47 = vpop.f32.mrf.mxu3  ;;  %6201 = vmatmul.msk.f32.gmra.mxu2 %vm204_vm1, %v7572_v53 }
 0x27d   : > { %6266 = vmatmul.msk.f32.gmra.mxu0 %vm204_vm1, %v7538_v14  ;;  %10266 = vst [vmem:[#allocation64_spill] sm:$0xff] %v7884_v47 }
 0x27f   : > { %v7894_v57 = vpop.f32.mrf.mxu2 }
 0x280   : > { %10268 = vst [vmem:[#allocation70_spill] sm:$0xff] %v7894_v57 }
 0x281   : > { %6234 = vmatmul.msk.f32.gmra.mxu3 %vm204_vm1, %v7576_v16  ;;  %v1952_v16 = vld [vmem:[#allocation2 + $0x198] sm:$0xff] }
 0x282   : > { %v7886_v38 = vpop.f32.mrf.mxu0 }
 0x283   : > { %10267 = vst [vmem:[#allocation66_spill] sm:$0xff] %v7886_v38  ;;  %v7912_v38 = vpop.f32.mrf.mxu1 }
 0x284   : > { %v7896_v14 = vpop.f32.mrf.mxu3  ;;  %6202 = vmatmul.msk.f32.gmra.mxu2 %vm204_vm1, %v7590_v18 }
 0x285   : > { %6267 = vmatmul.msk.f32.gmra.mxu0 %vm204_vm1, %v7554_v36  ;;  %10269 = vst [vmem:[#allocation71_spill] sm:$0xff] %v7896_v14 }
 0x287   : > { %v7908_v53 = vpop.f32.mrf.mxu2 }
 0x288   : > { %10271 = vst [vmem:[#allocation73_spill] sm:$0xff] %v7908_v53  ;;  %v2230_v53 = vld [vmem:[#allocation2 + $0x199] sm:$0xff] }
 0x289   : > { %6235 = vmatmul.msk.f32.gmra.mxu3 %vm204_vm1, %v7594_v24  ;;  %v1953_v24 = vld [vmem:[#allocation2 + $0x1a0] sm:$0xff] }
 0x28a   : > { %v7900_v55 = vpop.f32.mrf.mxu0 }
 0x28b   : > { %10270 = vst [vmem:[#allocation72_spill] sm:$0xff] %v7900_v55 }
 0x28c   : > { %v7910_v36 = vpop.f32.mrf.mxu3  ;;  %6203 = vmatmul.msk.f32.gmra.mxu2 %vm204_vm1, %v1952_v16  ;;  %v2231_v16 = vld [vmem:[#allocation2 + $0x1a1] sm:$0xff] }
 0x28d   : > { %6268 = vmatmul.msk.f32.gmra.mxu0 %vm204_vm1, %v7570_v45  ;;  %10272 = vst [vmem:[#allocation74_spill] sm:$0xff] %v7910_v36  ;;  %v7927_v36 = vpop.f32.mrf.mxu1 }
 0x28f   : > { %v7921_v18 = vpop.f32.mrf.mxu2 }
 0x290   : > { %10274 = vst [vmem:[#allocation76_spill] sm:$0xff] %v7921_v18 }
 0x291   : > { %6236 = vmatmul.msk.f32.gmra.mxu3 %vm204_vm1, %v7612_v15 }
 0x292   : > { %v7914_v14 = vpop.f32.mrf.mxu0 }
 0x293   : > { %10273 = vst [vmem:[#allocation75_spill] sm:$0xff] %v7914_v14 }
 0x294   : > { %v7923_v45 = vpop.f32.mrf.mxu3  ;;  %6204 = vmatmul.msk.f32.gmra.mxu2 %vm204_vm1, %v1953_v24 }
 0x295   : > { %6269 = vmatmul.msk.f32.gmra.mxu0 %vm204_vm1, %v7596_v30  ;;  %10275 = vst [vmem:[#allocation77_spill] sm:$0xff] %v7923_v45  ;;  %v2508_v45 = vld [vmem:[#allocation2 + $0x19a] sm:$0xff] }
 0x297   : > { %v7933_v15 = vpop.f32.mrf.mxu2 }
 0x298   : > { %10277 = vst [vmem:[#allocation79_spill] sm:$0xff] %v7933_v15 }
 0x299   : > { %6237 = vmatmul.msk.f32.gmra.mxu3 %vm204_vm1, %v2230_v53 }
 0x29a   : > { %v7925_v55 = vpop.f32.mrf.mxu0 }
 0x29b   : > { %10276 = vst [vmem:[#allocation78_spill] sm:$0xff] %v7925_v55  ;;  %v1851_v55 = vpop.f32.mrf.mxu1 }
 0x29c   : > { %v7935_v30 = vpop.f32.mrf.mxu3 }
 0x29d   : > { %6270 = vmatmul.msk.f32.gmra.mxu0 %vm204_vm1, %v7614_v17  ;;  %10278 = vst [vmem:[#allocation80_spill] sm:$0xff] %v7935_v30  ;;  %v2509_v17 = vld [vmem:[#allocation2 + $0x1a2] sm:$0xff] }
 0x29f   : > { %v7941_v14 = vpop.f32.mrf.mxu2 }
 0x2a0   : > { %10280 = vst [vmem:[#allocation82_spill] sm:$0xff] %v7941_v14 }
 0x2a1   : > { %6238 = vmatmul.msk.f32.gmra.mxu3 %vm204_vm1, %v2231_v16 }
 0x2a2   : > { %v7937_v18 = vpop.f32.mrf.mxu0 }
 0x2a3   : > { %10279 = vst [vmem:[#allocation81_spill] sm:$0xff] %v7937_v18  ;;  %v1854_v18 = vpop.f32.mrf.mxu1 }
 0x2a4   : > { %v7943_v24 = vpop.f32.mrf.mxu3 }
 0x2a5   : > { %6271 = vmatmul.msk.f32.gmra.mxu0 %vm204_vm1, %v2508_v45  ;;  %10281 = vst [vmem:[#allocation83_spill] sm:$0xff] %v7943_v24 }
 0x2a7   : > { %v7948_v15 = vpop.f32.mrf.mxu2 }
 0x2a8   : > { %10283 = vst [vmem:[#allocation85_spill] sm:$0xff] %v7948_v15 }
 0x2aa   : > { %v7945_v53 = vpop.f32.mrf.mxu0 }
 0x2ab   : > { %10282 = vst [vmem:[#allocation84_spill] sm:$0xff] %v7945_v53  ;;  %v1857_v45 = vpop.f32.mrf.mxu1 }
 0x2ac   : > { %v7950_v30 = vpop.f32.mrf.mxu3 }
 0x2ad   : > { %6272 = vmatmul.msk.f32.gmra.mxu0 %vm204_vm1, %v2509_v17  ;;  %10284 = vst [vmem:[#allocation86_spill] sm:$0xff] %v7950_v30 }
 0x2af   : > { %v7954_v16 = vpop.f32.mrf.mxu2 }
 0x2b0   : > { %10286 = vst [vmem:[#allocation88_spill] sm:$0xff] %v7954_v16 }
 0x2b2   : > { %v7952_v57 = vpop.f32.mrf.mxu0 }
 0x2b3   : > { %10285 = vst [vmem:[#allocation87_spill] sm:$0xff] %v7952_v57  ;;  %v1860_v17 = vpop.f32.mrf.mxu1 }
 0x2b4   : > { %v7956_v23 = vpop.f32.mrf.mxu3 }
 0x2b5   : > { %10287 = vst [vmem:[#allocation89_spill] sm:$0xff] %v7956_v23 }
 0x2b7   : > { %v7960_v24 = vpop.f32.mrf.mxu2 }
 0x2ba   : > { %v7958_v14 = vpop.f32.mrf.mxu0 }
 0x2bb   : > { %10288 = vst [vmem:[#allocation90_spill] sm:$0xff] %v7958_v14  ;;  %v1863_v57 = vpop.f32.mrf.mxu1  ;;  %v1620_v14 = vadd.f32 %v7484_v1, %v7480_v43  ;;  %v1625_v1 = vadd.f32 %v7574_v32, %v7568_v4  ;;  %v10298_v4 = vld [vmem:[#allocation34_spill] sm:$0xff] }
 0x2bc   : > { %v7962_v53 = vpop.f32.mrf.mxu3 }
 0x2bd   : > { %10289 = vst [vmem:[#allocation91_spill] sm:$0xff] %v7962_v53  ;;  %v1621_v53 = vadd.f32 %v7502_v46, %v7498_v0  ;;  %v1626_v0 = vadd.f32 %v7592_v37, %v7588_v12  ;;  %v1627_v46 = vadd.f32 %v7610_v33, %v7608_v63  ;;  %v10299_v12 = vld [vmem:[#allocation37_spill] sm:$0xff]  ;;  %v10300_v37 = vld [vmem:[#allocation35_spill] sm:$0xff]  ;;  %v8014_v63 = vadd.f32 %v7769_v58, %v7767_v54 }
 0x2be   : > { %v8018_v33 = vadd.f32 %v7791_v52, %v7787_v42  ;;  %v10306_v54 = vld [vmem:[#allocation43_spill] sm:$0xff]  ;;  %v8034_v42 = vadd.f32 %v7849_v3, %v1625_v1  ;;  %v8054_v3 = vadd.f32 %v7800_v48, %v7798_v28  ;;  %v8075_v28 = vadd.f32 %v7811_v25, %v7809_v50 }
 0x2bf   : > { %v7966_v15 = vpop.f32.mrf.mxu2  ;;  %v8037_v52 = vadd.f32 %v7863_v51, %v1626_v0  ;;  %v2833_v1 = vmul.f32 %v8014_v63, %v8014_v63 }
 0x2c0   : > { %10291 = vst [vmem:[#allocation93_spill] sm:$0xff] %v7966_v15  ;;  %v1623_v15 = vadd.f32 %v7540_v31, %v7535_v6  ;;  %v10296_v6 = vld [vmem:[#allocation32_spill] sm:$0xff]  ;;  %v2836_v50 = vmul.f32 %v8054_v3, %v8054_v3 }
 0x2c1   : > { %v1629_v31 = vadd.f32 %v10296_v6, %v7632_v59 }
 0x2c2   : > { %v7964_v11 = vpop.f32.mrf.mxu0 }
 0x2c3   : > { %10290 = vst [vmem:[#allocation92_spill] sm:$0xff] %v7964_v11  ;;  %v1622_v11 = vadd.f32 %v7523_v41, %v7519_v60  ;;  %v7998_v60 = vadd.f32 %v7815_v22, %v1623_v15  ;;  %v1628_v41 = vadd.f32 %v7625_v62, %v7623_v10  ;;  %v10301_v22 = vld [vmem:[#allocation67_spill] sm:$0xff]  ;;  %v1866_v15 = vpop.f32.mrf.mxu1 }
 0x2c4   : > { %v7968_v30 = vpop.f32.mrf.mxu3 }
 0x2c5   : > { %10292 = vst [vmem:[#allocation94_spill] sm:$0xff] %v7968_v30  ;;  %v1900_v43 = vadd.f32 %v7802_v26, %v1622_v11  ;;  %v1631_v26 = vadd.f32 %v10300_v37, %v10299_v12  ;;  %v10312_v37 = vld [vmem:[#allocation49_spill] sm:$0xff] }
 0x2c7   : > { %v7972_v16 = vpop.f32.mrf.mxu2 }
 0x2c8   : > { %10294 = vst [vmem:[#allocation96_spill] sm:$0xff] %v7972_v16  ;;  %v1899_v16 = vadd.f32 %v7789_v9, %v1621_v53  ;;  %v10304_v9 = vld [vmem:[#allocation41_spill] sm:$0xff]  ;;  %v8040_v53 = vadd.f32 %v7877_v2, %v1627_v46  ;;  %v8059_v2 = vadd.f32 %v1851_v55, %v1631_v26  ;;  %v10309_v55 = vld [vmem:[#allocation44_spill] sm:$0xff] }
 0x2ca   : > { %v7970_v47 = vpop.f32.mrf.mxu0 }
 0x2cb   : > { %10293 = vst [vmem:[#allocation95_spill] sm:$0xff] %v7970_v47  ;;  %v1898_v47 = vadd.f32 %v7775_v29, %v1620_v14  ;;  %v10302_v29 = vld [vmem:[#allocation38_spill] sm:$0xff]  ;;  %v10305_v14 = vld [vmem:[#allocation40_spill] sm:$0xff] }
 0x2cc   : > { %v7974_v23 = vpop.f32.mrf.mxu3  ;;  %v1634_v58 = vadd.f32 %v10306_v54, %v10305_v14 }
 0x2cd   : > { %10295 = vst [vmem:[#allocation97_spill] sm:$0xff] %v7974_v23  ;;  %v1624_v23 = vadd.f32 %v7556_v39, %v7552_v49  ;;  %v8006_v49 = vadd.f32 %v7780_v5, %v7778_v7  ;;  %v10297_v39 = vld [vmem:[#allocation36_spill] sm:$0xff]  ;;  %v1632_v7 = vadd.f32 %v10302_v29, %v10301_v22  ;;  %v10303_v5 = vld [vmem:[#allocation39_spill] sm:$0xff]  ;;  %v2176_v25 = vadd.f32 %v7845_v44, %v1898_v47 }
 0x2ce   : > { %v1630_v32 = vadd.f32 %v10298_v4, %v10297_v39  ;;  %v1633_v11 = vadd.f32 %v10304_v9, %v10303_v5  ;;  %v8045_v39 = vadd.f32 %v7898_v8, %v1628_v41  ;;  %v8048_v4 = vadd.f32 %v7912_v38, %v1629_v31 }
 0x2cf   : > { %v8020_v10 = vpop.f32.mrf.mxu2  ;;  %v8025_v59 = vadd.f32 %v7834_v61, %v1624_v23  ;;  %v10307_v61 = vld [vmem:[#allocation42_spill] sm:$0xff]  ;;  %v10308_v23 = vld [vmem:[#allocation45_spill] sm:$0xff]  ;;  %v2834_v12 = vmul.f32 %v8006_v49, %v8006_v49  ;;  %v2835_v8 = vmul.f32 %v8018_v33, %v8018_v33  ;;  %v8067_v0 = vadd.f32 %v1854_v18, %v1632_v7 }
 0x2d0   : > { %v1635_v6 = vadd.f32 %v10308_v23, %v10307_v61  ;;  %v8057_v51 = vadd.f32 %v7927_v36, %v1630_v32  ;;  %v8069_v46 = vadd.f32 %v1857_v45, %v1633_v11  ;;  %v8071_v41 = vadd.f32 %v1860_v17, %v1634_v58  ;;  %v10310_v36 = vld [vmem:[#allocation47_spill] sm:$0xff]  ;;  %v10311_v32 = vld [vmem:[#allocation46_spill] sm:$0xff]  ;;  %v1869_v61 = vpop.f32.mrf.mxu1 }
 0x2d1   : > { %v1636_v31 = vadd.f32 %v10310_v36, %v10309_v55  ;;  %v1637_v26 = vadd.f32 %v10312_v37, %v10311_v32  ;;  %v8085_v18 = vadd.f32 %v7827_v13, %v7821_v34  ;;  %v2757_v45 = vsel %vm204_vm1, %v8006_v49, 0.0  ;;  %v10315_v36 = vld [vmem:[#allocation63_spill] sm:$0xff] }
 0x2d2   : > { %v7984_v30 = vpop.f32.mrf.mxu0  ;;  %v8077_v48 = vadd.f32 %v1863_v57, %v1635_v6  ;;  %v2866_v17 = vsel %vm204_vm1, %v2834_v12, 0.0  ;;  %v2756_v57 = vsel %vm204_vm1, %v8014_v63, 0.0  ;;  %v2865_v22 = vsel %vm204_vm1, %v2833_v1, 0.0  ;;  %v10314_v1 = vld [vmem:[#allocation64_spill] sm:$0xff] }
 0x2d3   : > { %v2759_v29 = vsel %vm204_vm1, %v8018_v33, 0.0  ;;  %v2868_v34 = vsel %vm204_vm1, %v2835_v8, 0.0  ;;  %v2837_v5 = vmul.f32 %v8075_v28, %v8075_v28  ;;  %v8107_v44 = vadd.f32 %v7839_v27, %v7837_v56  ;;  %v10313_v27 = vld [vmem:[#allocation60_spill] sm:$0xff] }
 0x2d4   : > { %v8022_v62 = vpop.f32.mrf.mxu3  ;;  %v2177_v47 = vadd.f32 %v7857_v20, %v1899_v16  ;;  %v2454_v9 = vadd.f32 %v7859_v35, %v2176_v25  ;;  %v2758_v11 = vadd.f32 %v2757_v45, %v2756_v57  ;;  %v2867_v14 = vadd.f32 %v2866_v17, %v2865_v22  ;;  %v10317_v57 = vld [vmem:[#allocation62_spill] sm:$0xff] }
 0x2d5   : > { %v2838_v54 = vmul.f32 %v8085_v18, %v8085_v18  ;;  %v2178_v58 = vadd.f32 %v7869_v40, %v1900_v43  ;;  %v2761_v23 = vsel %vm204_vm1, %v8054_v3, 0.0  ;;  %v2870_v6 = vsel %vm204_vm1, %v2836_v50, 0.0 }
 0x2d6   : > { %v8119_v56 = vadd.f32 %v10313_v27, %v7847_v21  ;;  %v2455_v20 = vadd.f32 %v7871_v19, %v2177_v47  ;;  %v2760_v35 = vadd.f32 %v2759_v29, %v2758_v11  ;;  %v2869_v16 = vadd.f32 %v2868_v34, %v2867_v14  ;;  %v10316_v21 = vld [vmem:[#allocation65_spill] sm:$0xff]  ;;  %v10318_v29 = vld [vmem:[#allocation70_spill] sm:$0xff] }
 0x2d7   : > { %v8099_v13 = vpop.f32.mrf.mxu2  ;;  %v2763_v12 = vsel %vm204_vm1, %v8075_v28, 0.0  ;;  %v2456_v8 = vadd.f32 %v10314_v1, %v2178_v58  ;;  %v2872_v43 = vsel %vm204_vm1, %v2837_v5, 0.0  ;;  %v2839_v55 = vmul.f32 %v8107_v44, %v8107_v44  ;;  %v10319_v5 = vld [vmem:[#allocation71_spill] sm:$0xff]  ;;  %v10320_v14 = vld [vmem:[#allocation66_spill] sm:$0xff] }
 0x2d8   : > { %v8131_v32 = vadd.f32 %v10315_v36, %v2454_v9  ;;  %v2179_v19 = vadd.f32 %v10316_v21, %v7998_v60  ;;  %v2762_v37 = vadd.f32 %v2761_v23, %v2760_v35  ;;  %v2871_v45 = vadd.f32 %v2870_v6, %v2869_v16 }
 0x2d9   : > { %v2765_v17 = vsel %vm204_vm1, %v8085_v18, 0.0  ;;  %v2874_v50 = vsel %vm204_vm1, %v2838_v54, 0.0  ;;  %v2840_v25 = vmul.f32 %v8119_v56, %v8119_v56  ;;  %v8141_v22 = vadd.f32 %v10317_v57, %v2455_v20  ;;  %v10321_v20 = vld [vmem:[#allocation74_spill] sm:$0xff] }
 0x2da   : > { %v8065_v38 = vpop.f32.mrf.mxu0  ;;  %v2180_v34 = vadd.f32 %v10318_v29, %v8025_v59  ;;  %v2457_v47 = vadd.f32 %v10319_v5, %v2179_v19  ;;  %v8146_v9 = vadd.f32 %v1866_v15, %v1636_v31  ;;  %v2764_v60 = vadd.f32 %v2763_v12, %v2762_v37  ;;  %v10325_v29 = vld [vmem:[#allocation76_spill] sm:$0xff] }
 0x2db   : > { %v2873_v11 = vadd.f32 %v2872_v43, %v2871_v45  ;;  %v8149_v58 = vadd.f32 %v10320_v14, %v2456_v8  ;;  %v2767_v6 = vsel %vm204_vm1, %v8107_v44, 0.0  ;;  %v2876_v27 = vsel %vm204_vm1, %v2839_v55, 0.0  ;;  %v10322_v43 = vld [vmem:[#allocation72_spill] sm:$0xff]  ;;  %v10323_v55 = vld [vmem:[#allocation73_spill] sm:$0xff] }
 0x2dc   : > { %v8101_v7 = vpop.f32.mrf.mxu3  ;;  %v2841_v59 = vmul.f32 %v8131_v32, %v8131_v32  ;;  %v2458_v15 = vadd.f32 %v10321_v20, %v2180_v34  ;;  %v8161_v31 = vadd.f32 %v1869_v61, %v1637_v26  ;;  %v2766_v35 = vadd.f32 %v2765_v17, %v2764_v60  ;;  %v1872_v17 = vpop.f32.mrf.mxu1  ;;  %v10328_v60 = vld [vmem:[#allocation51_spill] sm:$0xff] }
 0x2dd   : > { %v2875_v16 = vadd.f32 %v2874_v50, %v2873_v11  ;;  %v2769_v12 = vsel %vm204_vm1, %v8119_v56, 0.0  ;;  %v2878_v1 = vsel %vm204_vm1, %v2840_v25, 0.0  ;;  %v2842_v8 = vmul.f32 %v8141_v22, %v8141_v22  ;;  %v10324_v25 = vld [vmem:[#allocation75_spill] sm:$0xff] }
 0x2de   : > { %v8169_v36 = vadd.f32 %v10322_v43, %v2457_v47  ;;  %v2181_v21 = vadd.f32 %v10323_v55, %v8034_v42  ;;  %v2768_v19 = vadd.f32 %v2767_v6, %v2766_v35  ;;  %v2771_v26 = vsel %vm204_vm1, %v8131_v32, 0.0  ;;  %v10326_v42 = vld [vmem:[#allocation77_spill] sm:$0xff]  ;;  %v10327_v47 = vld [vmem:[#allocation48_spill] sm:$0xff] }
 0x2df   : > { %v8151_v23 = vpop.f32.mrf.mxu2  ;;  %v2877_v37 = vadd.f32 %v2876_v27, %v2875_v16  ;;  %v2843_v61 = vmul.f32 %v8149_v58, %v8149_v58  ;;  %v2880_v50 = vsel %vm204_vm1, %v2841_v59, 0.0  ;;  %v8181_v57 = vadd.f32 %v10324_v25, %v2458_v15  ;;  %v10329_v15 = vld [vmem:[#allocation79_spill] sm:$0xff]  ;;  %v10330_v16 = vld [vmem:[#allocation80_spill] sm:$0xff] }
 0x2e0   : > { %v2182_v34 = vadd.f32 %v10325_v29, %v8037_v52  ;;  %v2459_v5 = vadd.f32 %v10326_v42, %v2181_v21  ;;  %v1638_v11 = vadd.f32 %v10328_v60, %v10327_v47  ;;  %v2770_v14 = vadd.f32 %v2769_v12, %v2768_v19 }
 0x2e1   : > { %v2879_v6 = vadd.f32 %v2878_v1, %v2877_v37  ;;  %v2773_v27 = vsel %vm204_vm1, %v8141_v22, 0.0  ;;  %v2882_v20 = vsel %vm204_vm1, %v2842_v8, 0.0  ;;  %v2844_v59 = vmul.f32 %v8169_v36, %v8169_v36  ;;  %v10331_v37 = vld [vmem:[#allocation78_spill] sm:$0xff] }
 0x2e2   : > { %v8125_v40 = vpop.f32.mrf.mxu0  ;;  %v2183_v35 = vadd.f32 %v10329_v15, %v8040_v53  ;;  %v2460_v52 = vadd.f32 %v10330_v16, %v2182_v34  ;;  %v2772_v43 = vadd.f32 %v2771_v26, %v2770_v14  ;;  %v2775_v21 = vsel %vm204_vm1, %v8149_v58, 0.0  ;;  %v10332_v53 = vld [vmem:[#allocation82_spill] sm:$0xff]  ;;  %v10333_v26 = vld [vmem:[#allocation83_spill] sm:$0xff]  ;;  %v10334_v14 = vld [vmem:[#allocation81_spill] sm:$0xff] }
 0x2e3   : > { %v2881_v55 = vadd.f32 %v2880_v50, %v2879_v6  ;;  %v2884_v12 = vsel %vm204_vm1, %v2843_v61, 0.0  ;;  %v2845_v8 = vmul.f32 %v8181_v57, %v8181_v57  ;;  %v8206_v25 = vadd.f32 %v10331_v37, %v2459_v5  ;;  %v10335_v5 = vld [vmem:[#allocation85_spill] sm:$0xff]  ;;  %v10336_v16 = vld [vmem:[#allocation86_spill] sm:$0xff] }
 0x2e4   : > { %v8153_v54 = vpop.f32.mrf.mxu3  ;;  %v2184_v29 = vadd.f32 %v10332_v53, %v8045_v39  ;;  %v2461_v50 = vadd.f32 %v10333_v26, %v2183_v35  ;;  %v8211_v34 = vadd.f32 %v1872_v17, %v1638_v11  ;;  %v2774_v42 = vadd.f32 %v2773_v27, %v2772_v43  ;;  %v10337_v11 = vld [vmem:[#allocation88_spill] sm:$0xff]  ;;  %v10340_v26 = vld [vmem:[#allocation91_spill] sm:$0xff] }
 0x2e5   : > { %v2883_v47 = vadd.f32 %v2882_v20, %v2881_v55  ;;  %v2777_v61 = vsel %vm204_vm1, %v8169_v36, 0.0  ;;  %v2886_v60 = vsel %vm204_vm1, %v2844_v59, 0.0  ;;  %v8217_v6 = vadd.f32 %v10334_v14, %v2460_v52  ;;  %v10338_v52 = vld [vmem:[#allocation84_spill] sm:$0xff] }
 0x2e6   : > { %v2185_v15 = vadd.f32 %v10335_v5, %v8048_v4  ;;  %v2462_v37 = vadd.f32 %v10336_v16, %v2184_v29  ;;  %v2776_v39 = vadd.f32 %v2775_v21, %v2774_v42  ;;  %v2779_v17 = vsel %vm204_vm1, %v8181_v57, 0.0  ;;  %v10339_v4 = vld [vmem:[#allocation89_spill] sm:$0xff]  ;;  %v1875_v5 = vpop.f32.mrf.mxu1  ;;  %v10343_v16 = vld [vmem:[#allocation87_spill] sm:$0xff] }
 0x2e7   : > { %v8199_v1 = vpop.f32.mrf.mxu2  ;;  %v2885_v53 = vadd.f32 %v2884_v12, %v2883_v47  ;;  %v2186_v27 = vadd.f32 %v10337_v11, %v8057_v51  ;;  %v2888_v59 = vsel %vm204_vm1, %v2845_v8, 0.0  ;;  %v2846_v35 = vmul.f32 %v8206_v25, %v8206_v25  ;;  %v10341_v51 = vld [vmem:[#allocation50_spill] sm:$0xff]  ;;  %v10342_v47 = vld [vmem:[#allocation53_spill] sm:$0xff] }
 0x2e8   : > { %v8232_v43 = vadd.f32 %v10338_v52, %v2461_v50  ;;  %v2463_v55 = vadd.f32 %v10339_v4, %v2185_v15  ;;  %v2778_v21 = vadd.f32 %v2777_v61, %v2776_v39  ;;  %v2187_v29 = vadd.f32 %v7960_v24, %v8059_v2  ;;  %v10344_v15 = vld [vmem:[#allocation93_spill] sm:$0xff]  ;;  %v10345_v2 = vld [vmem:[#allocation94_spill] sm:$0xff] }
 0x2e9   : > { %v2887_v12 = vadd.f32 %v2886_v60, %v2885_v53  ;;  %v2464_v42 = vadd.f32 %v10340_v26, %v2186_v27  ;;  %v1639_v14 = vadd.f32 %v10342_v47, %v10341_v51  ;;  %v2781_v8 = vsel %vm204_vm1, %v8206_v25, 0.0  ;;  %v10346_v51 = vld [vmem:[#allocation90_spill] sm:$0xff] }
 0x2ea   : > { %v8177_v45 = vpop.f32.mrf.mxu0  ;;  %v2847_v50 = vmul.f32 %v8217_v6, %v8217_v6  ;;  %v8245_v11 = vadd.f32 %v10343_v16, %v2462_v37  ;;  %v2780_v61 = vadd.f32 %v2779_v17, %v2778_v21  ;;  %v2188_v24 = vadd.f32 %v10344_v15, %v8067_v0  ;;  %v10348_v0 = vld [vmem:[#allocation96_spill] sm:$0xff] }
 0x2eb   : > { %v2889_v60 = vadd.f32 %v2888_v59, %v2887_v12  ;;  %v2465_v39 = vadd.f32 %v10345_v2, %v2187_v29  ;;  %v2890_v52 = vsel %vm204_vm1, %v2846_v35, 0.0  ;;  %v2783_v4 = vsel %vm204_vm1, %v8217_v6, 0.0  ;;  %v10347_v59 = vld [vmem:[#allocation92_spill] sm:$0xff]  ;;  %v10349_v29 = vld [vmem:[#allocation97_spill] sm:$0xff] }
 0x2ec   : > { %v8201_v19 = vpop.f32.mrf.mxu3  ;;  %v2848_v26 = vmul.f32 %v8232_v43, %v8232_v43  ;;  %v8256_v37 = vadd.f32 %v10346_v51, %v2463_v55  ;;  %v2782_v17 = vadd.f32 %v2781_v8, %v2780_v61  ;;  %v8259_v21 = vadd.f32 %v10347_v59, %v2464_v42  ;;  %v10350_v8 = vld [vmem:[#allocation95_spill] sm:$0xff] }
 0x2ed   : > { %v2189_v12 = vadd.f32 %v10348_v0, %v8069_v46  ;;  %v2466_v47 = vadd.f32 %v10349_v29, %v2188_v24  ;;  %v1917_v16 = vadd.f32 %v1875_v5, %v1639_v14  ;;  %v2892_v35 = vsel %vm204_vm1, %v2847_v50, 0.0 }
 0x2ee   : > { %v2785_v15 = vsel %vm204_vm1, %v8232_v43, 0.0  ;;  %v2849_v2 = vmul.f32 %v8245_v11, %v8245_v11  ;;  %v2891_v55 = vadd.f32 %v2890_v52, %v2889_v60  ;;  %v2784_v51 = vadd.f32 %v2783_v4, %v2782_v17 }
 0x2ef   : > { %v2150_v53 = vpop.f32.mrf.mxu2  ;;  %v8270_v61 = vadd.f32 %v10350_v8, %v2465_v39  ;;  %v2467_v42 = vadd.f32 %v8022_v62, %v2189_v12  ;;  %v2894_v46 = vsel %vm204_vm1, %v2848_v26, 0.0  ;;  %v2787_v14 = vsel %vm204_vm1, %v8245_v11, 0.0 }
 0x2f0   : > { %v2850_v5 = vmul.f32 %v8256_v37, %v8256_v37  ;;  %v2190_v50 = vadd.f32 %v8020_v10, %v8071_v41  ;;  %v2893_v24 = vadd.f32 %v2892_v35, %v2891_v55  ;;  %v2786_v60 = vadd.f32 %v2785_v15, %v2784_v51 }
 0x2f1   : > { %v2851_v39 = vmul.f32 %v8259_v21, %v8259_v21  ;;  %v8283_v52 = vadd.f32 %v7984_v30, %v2466_v47  ;;  %v2896_v62 = vsel %vm204_vm1, %v2849_v2, 0.0  ;;  %v2789_v4 = vsel %vm204_vm1, %v8256_v37, 0.0 }
 0x2f2   : > { %v8226_v20 = vpop.f32.mrf.mxu0  ;;  %v2191_v26 = vadd.f32 %v8099_v13, %v8077_v48  ;;  %v2468_v17 = vadd.f32 %v8101_v7, %v2190_v50  ;;  %v2895_v0 = vadd.f32 %v2894_v46, %v2893_v24  ;;  %v2788_v10 = vadd.f32 %v2787_v14, %v2786_v60 }
 0x2f3   : > { %v2852_v41 = vmul.f32 %v8270_v61, %v8270_v61  ;;  %v8294_v12 = vadd.f32 %v8065_v38, %v2467_v42  ;;  %v2898_v47 = vsel %vm204_vm1, %v2850_v5, 0.0  ;;  %v2791_v35 = vsel %vm204_vm1, %v8259_v21, 0.0 }
 0x2f4   : > { %v2425_v27 = vpop.f32.mrf.mxu3  ;;  %v2192_v48 = vadd.f32 %v8151_v23, %v8146_v9  ;;  %v2469_v13 = vadd.f32 %v8153_v54, %v2191_v26  ;;  %v2897_v7 = vadd.f32 %v2896_v62, %v2895_v0  ;;  %v2790_v15 = vadd.f32 %v2789_v4, %v2788_v10  ;;  %v1878_v23 = vpop.f32.mrf.mxu1  ;;  %v10352_v0 = vld [vmem:[#allocation55_spill] sm:$0xff] }
 0x2f5   : > { %v2900_v2 = vsel %vm204_vm1, %v2851_v39, 0.0  ;;  %v2853_v38 = vmul.f32 %v8283_v52, %v8283_v52  ;;  %v2793_v55 = vsel %vm204_vm1, %v8270_v61, 0.0  ;;  %v8308_v51 = vadd.f32 %v8125_v40, %v2468_v17 }
 0x2f6   : > { %v2193_v8 = vadd.f32 %v8199_v1, %v8161_v31  ;;  %v2470_v9 = vadd.f32 %v8201_v19, %v2192_v48  ;;  %v2899_v54 = vadd.f32 %v2898_v47, %v2897_v7  ;;  %v2792_v42 = vadd.f32 %v2791_v35, %v2790_v15 }
 0x2f7   : > { %v2153_v30 = vpop.f32.mrf.mxu2  ;;  %v2902_v46 = vsel %vm204_vm1, %v2852_v41, 0.0  ;;  %v2854_v14 = vmul.f32 %v8294_v12, %v8294_v12  ;;  %v2795_v50 = vsel %vm204_vm1, %v8283_v52, 0.0  ;;  %v8319_v40 = vadd.f32 %v8177_v45, %v2469_v13  ;;  %v10351_v45 = vld [vmem:[#allocation52_spill] sm:$0xff] }
 0x2f8   : > { %v2194_v24 = vadd.f32 %v2150_v53, %v8211_v34  ;;  %v2471_v31 = vadd.f32 %v2425_v27, %v2193_v8  ;;  %v2901_v1 = vadd.f32 %v2900_v2, %v2899_v54  ;;  %v2794_v19 = vadd.f32 %v2793_v55, %v2792_v42 }
 0x2f9   : > { %v2904_v60 = vsel %vm204_vm1, %v2853_v38, 0.0  ;;  %v2797_v39 = vsel %vm204_vm1, %v8294_v12, 0.0  ;;  %v2855_v62 = vmul.f32 %v8308_v51, %v8308_v51  ;;  %v8328_v4 = vadd.f32 %v8226_v20, %v2470_v9 }
 0x2fa   : > { %v2703_v59 = vpop.f32.mrf.mxu0  ;;  %v2195_v26 = vadd.f32 %v2153_v30, %v1917_v16  ;;  %v1640_v10 = vadd.f32 %v10352_v0, %v10351_v45  ;;  %v2903_v34 = vadd.f32 %v2902_v46, %v2901_v1  ;;  %v2796_v53 = vadd.f32 %v2795_v50, %v2794_v19  ;;  %v10353_v19 = vld [vmem:[#allocation54_spill] sm:$0xff] }
 0x2fb   : > { %v2906_v27 = vsel %vm204_vm1, %v2854_v14, 0.0  ;;  %v2799_v35 = vsel %vm204_vm1, %v8308_v51, 0.0  ;;  %v2856_v48 = vmul.f32 %v8319_v40, %v8319_v40  ;;  %v8337_v13 = vadd.f32 %v2703_v59, %v2471_v31 }
 0x2fc   : > { %v2428_v29 = vpop.f32.mrf.mxu3  ;;  %v2905_v16 = vadd.f32 %v2904_v60, %v2903_v34  ;;  %v2798_v30 = vadd.f32 %v2797_v39, %v2796_v53  ;;  %v2801_v7 = vsel %vm204_vm1, %v8319_v40, 0.0  ;;  %v2857_v15 = vmul.f32 %v8328_v4, %v8328_v4  ;;  %v1881_v14 = vpop.f32.mrf.mxu1  ;;  %v10354_v60 = vld [vmem:[#allocation57_spill] sm:$0xff] }
 0x2fd   : > { %v2472_v17 = vadd.f32 %v2428_v29, %v2194_v24  ;;  %v2908_v29 = vsel %vm204_vm1, %v2855_v62, 0.0  ;;  %v1918_v38 = vadd.f32 %v1878_v23, %v1640_v10  ;;  %v2910_v59 = vsel %vm204_vm1, %v2856_v48, 0.0 }
 0x2fe   : > { %v2907_v55 = vadd.f32 %v2906_v27, %v2905_v16  ;;  %v2800_v8 = vadd.f32 %v2799_v35, %v2798_v30  ;;  %v2803_v54 = vsel %vm204_vm1, %v8328_v4, 0.0  ;;  %v2858_v42 = vmul.f32 %v8337_v13, %v8337_v13 }
 0x2ff   : > { %v2156_v41 = vpop.f32.mrf.mxu2  ;;  %v2805_v23 = vsel %vm204_vm1, %v8337_v13, 0.0  ;;  %v1641_v39 = vadd.f32 %v10354_v60, %v10353_v19 }
 0x300   : > { %v2909_v50 = vadd.f32 %v2908_v29, %v2907_v55  ;;  %v2802_v24 = vadd.f32 %v2801_v7, %v2800_v8  ;;  %v2196_v1 = vadd.f32 %v2156_v41, %v1918_v38  ;;  %v2914_v0 = vsel %vm204_vm1, %v2858_v42, 0.0 }
 0x301   : > { %v1919_v30 = vadd.f32 %v1881_v14, %v1641_v39 }
 0x302   : > { %v2706_v5 = vpop.f32.mrf.mxu0  ;;  %v2911_v62 = vadd.f32 %v2910_v59, %v2909_v50 }
 0x303   : > { %v8344_v2 = vadd.f32 %v2706_v5, %v2472_v17  ;;  %v2912_v5 = vsel %vm204_vm1, %v2857_v15, 0.0 }
 0x304   : > { %v2431_v47 = vpop.f32.mrf.mxu3  ;;  %v2913_v27 = vadd.f32 %v2912_v5, %v2911_v62  ;;  %v1884_v59 = vpop.f32.mrf.mxu1  ;;  %v10356_v5 = vld [vmem:[#allocation59_spill] sm:$0xff] }
 0x305   : > { %v2473_v20 = vadd.f32 %v2431_v47, %v2195_v26  ;;  %v2859_v31 = vmul.f32 %v8344_v2, %v8344_v2  ;;  %v2804_v26 = vadd.f32 %v2803_v54, %v2802_v24  ;;  %v2807_v10 = vsel %vm204_vm1, %v8344_v2, 0.0  ;;  %v10355_v24 = vld [vmem:[#allocation56_spill] sm:$0xff] }
 0x306   : > { %v2915_v48 = vadd.f32 %v2914_v0, %v2913_v27  ;;  %v1642_v14 = vadd.f32 %v10356_v5, %v10355_v24 }
 0x307   : > { %v2159_v17 = vpop.f32.mrf.mxu2  ;;  %v2806_v47 = vadd.f32 %v2805_v23, %v2804_v26  ;;  %v2916_v41 = vsel %vm204_vm1, %v2859_v31, 0.0 }
 0x308   : > { %v2917_v15 = vadd.f32 %v2916_v41, %v2915_v48  ;;  %v2197_v55 = vadd.f32 %v2159_v17, %v1919_v30  ;;  %v1920_v39 = vadd.f32 %v1884_v59, %v1642_v14 }
 0x30a   : > { %v2709_v9 = vpop.f32.mrf.mxu0 }
 0x30b   : > { %v8351_v46 = vadd.f32 %v2709_v9, %v2473_v20  ;;  %v2808_v20 = vadd.f32 %v2807_v10, %v2806_v47 }
 0x30c   : > { %v2434_v45 = vpop.f32.mrf.mxu3 }
 0x30d   : > { %v2860_v34 = vmul.f32 %v8351_v46, %v8351_v46  ;;  %v2474_v53 = vadd.f32 %v2434_v45, %v2196_v1  ;;  %v2809_v35 = vsel %vm204_vm1, %v8351_v46, 0.0 }
 0x30e   : > { %v2810_v38 = vadd.f32 %v2809_v35, %v2808_v20  ;;  %v1887_v35 = vpop.f32.mrf.mxu1  ;;  %v6607_v20 = vmov 256.0  }
 0x30f   : > { %v2918_v29 = vsel %vm204_vm1, %v2860_v34, 0.0  ;;  %v2162_v19 = vpop.f32.mrf.mxu2  ;;  %v10357_v34 = vld [vmem:[#allocation58_spill] sm:$0xff]  ;;  %6593 = vrcp.f32 %v6607_v20 }
 0x310   : > { %v2919_v54 = vadd.f32 %v2918_v29, %v2917_v15  ;;  %v2198_v26 = vadd.f32 %v2162_v19, %v1920_v39 }
 0x312   : > { %v2712_v16 = vpop.f32.mrf.mxu0 }
 0x313   : > { %v8369_v7 = vadd.f32 %v2712_v16, %v2474_v53  ;;  %v10358_v53 = vld [vmem:[#allocation61_spill] sm:$0xff] }
 0x314   : > { %v2437_v50 = vpop.f32.mrf.mxu3  ;;  %v1643_v27 = vadd.f32 %v10358_v53, %v10357_v34 }
 0x315   : > { %v2811_v8 = vsel %vm204_vm1, %v8369_v7, 0.0  ;;  %v2861_v9 = vmul.f32 %v8369_v7, %v8369_v7  ;;  %v2475_v31 = vadd.f32 %v2437_v50, %v2197_v55 }
 0x316   : > { %v2812_v42 = vadd.f32 %v2811_v8, %v2810_v38  ;;  %v1921_v29 = vadd.f32 %v1887_v35, %v1643_v27 }
 0x317   : > { %v2920_v23 = vsel %vm204_vm1, %v2861_v9, 0.0  ;;  %v2165_v16 = vpop.f32.mrf.mxu2  ;;  %v6594_v9 = vpop.eup %6593 }
 0x318   : > { %v2921_v1 = vadd.f32 %v2920_v23, %v2919_v54  ;;  %v2199_v38 = vadd.f32 %v2165_v16, %v1921_v29  ;;  %v2826_v5 = vmul.f32 256.0, %v6594_v9  ;;  %vm2830_vm4 = vweird.f32 %v6594_v9 }
 0x31a   : > { %v2715_v60 = vpop.f32.mrf.mxu0 }
 0x31b   : > { %v8378_v62 = vadd.f32 %v2715_v60, %v2475_v31 }
 0x31c   : > { %v2440_v10 = vpop.f32.mrf.mxu3 }
 0x31d   : > { %v2813_v17 = vsel %vm204_vm1, %v8378_v62, 0.0  ;;  %v2862_v45 = vmul.f32 %v8378_v62, %v8378_v62  ;;  %v2476_v41 = vadd.f32 %v2440_v10, %v2198_v26 }
 0x31e   : > { %v2814_v0 = vadd.f32 %v2813_v17, %v2812_v42 }
 0x31f   : > { %v2922_v47 = vsel %vm204_vm1, %v2862_v45, 0.0 }
 0x320   : > { %v2923_v48 = vadd.f32 %v2922_v47, %v2921_v1  ;;  %v2827_v1 = vsub.f32 1.0, %v2826_v5 }
 0x322   : > { %v2718_v30 = vpop.f32.mrf.mxu0  ;;  %v2828_v45 = vmul.f32 %v6594_v9, %v2827_v1  ;;  %v6374_v1 = vld [vmem:[%s10021_s2 + $0xc] sm:$0xf] }
 0x323   : > { %v8387_v15 = vadd.f32 %v2718_v30, %v2476_v41  ;;  %6375 = vmatpush.msk.msrb.mxu0 %vm481_vm0, %v6374_v1 }
 0x324   : > { %v2443_v54 = vpop.f32.mrf.mxu3  ;;  %v2829_v27 = vadd.f32 %v6594_v9, %v2828_v45 }
 0x325   : > { %v2815_v55 = vsel %vm204_vm1, %v8387_v15, 0.0  ;;  %v2863_v8 = vmul.f32 %v8387_v15, %v8387_v15  ;;  %v2477_v50 = vadd.f32 %v2443_v54, %v2199_v38 }
 0x326   : > { %v2816_v59 = vadd.f32 %v2815_v55, %v2814_v0  ;;  %v8401_v20 = vsel %vm2830_vm4, %v6594_v9, %v2829_v27  ;;  %v3185_v55 = vld [vmem:[%s10021_s2] sm:$0xf] }
 0x327   : > { %v2924_v42 = vsel %vm204_vm1, %v2863_v8, 0.0  ;;  %10359 = vst [vmem:[#allocation32_spill] sm:$0xff] %v8401_v20  ;;  %6307 = vmatpush.msk.msrb.mxu2 %vm481_vm0, %v3185_v55 }
 0x328   : > { %v2925_v24 = vadd.f32 %v2924_v42, %v2923_v48  ;;  %v6340_v42 = vld [vmem:[%s10021_s2 + $0x8] sm:$0xf] }
 0x329   : > { %6341 = vmatpush.msk.msrb.mxu3 %vm481_vm0, %v6340_v42 }
 0x32a   : > { %v2721_v14 = vpop.f32.mrf.mxu0 }
 0x32b   : > { %v8394_v23 = vadd.f32 %v2721_v14, %v2477_v50 }
 0x32d   : > { %v2817_v31 = vsel %vm204_vm1, %v8394_v23, 0.0  ;;  %v2864_v19 = vmul.f32 %v8394_v23, %v8394_v23 }
 0x32e   : > { %v2818_v60 = vadd.f32 %v2817_v31, %v2816_v59 }
 0x32f   : > { %v2926_v39 = vsel %vm204_vm1, %v2864_v19, 0.0 }
 0x330   : > { %v2819_v26 = vrot.slane %v2818_v60, 4  ;;  %v2927_v17 = vadd.f32 %v2926_v39, %v2925_v24 }
 0x332   : > { %v2820_v0 = vadd.f32 %v2819_v26, %v2818_v60  ;;  %v2928_v10 = vrot.slane %v2927_v17, 4 }
 0x334   : > { %v2821_v34 = vrot.slane %v2820_v0, 2  ;;  %v2929_v53 = vadd.f32 %v2928_v10, %v2927_v17 }
 0x336   : > { %v2822_v47 = vadd.f32 %v2821_v34, %v2820_v0  ;;  %v2930_v41 = vrot.slane %v2929_v53, 2 }
 0x338   : > { %v2823_v35 = vrot.slane %v2822_v47, 1  ;;  %v2931_v48 = vadd.f32 %v2930_v41, %v2929_v53 }
 0x33a   : > { %v2824_v16 = vadd.f32 %v2823_v35, %v2822_v47  ;;  %v2932_v30 = vrot.slane %v2931_v48, 1 }
 0x33c   : > { %v8404_v29 = vmul.f32 %v8401_v20, %v2824_v16  ;;  %v2933_v38 = vadd.f32 %v2932_v30, %v2931_v48 }
 0x33e   : > { %v2934_v8 = vmul.f32 %v2933_v38, %v8401_v20  ;;  %v2935_v59 = vmul.f32 %v8404_v29, %v8404_v29  ;;  %v2969_v9 = vsub.f32 %v8394_v23, %v8404_v29  ;;  %v2965_v5 = vsub.f32 %v8351_v46, %v8404_v29 }
 0x33f   : > { %v2966_v14 = vsub.f32 %v8369_v7, %v8404_v29  ;;  %v2967_v31 = vsub.f32 %v8378_v62, %v8404_v29  ;;  %v2968_v23 = vsub.f32 %v8387_v15, %v8404_v29  ;;  %v2938_v26 = vsub.f32 %v8014_v63, %v8404_v29 }
 0x340   : > { %v2936_v54 = vsub.f32 %v2934_v8, %v2935_v59  ;;  %v2939_v17 = vsub.f32 %v8006_v49, %v8404_v29  ;;  %v2940_v45 = vsub.f32 %v8018_v33, %v8404_v29  ;;  %v2941_v0 = vsub.f32 %v8054_v3, %v8404_v29 }
 0x341   : > { %v2942_v10 = vsub.f32 %v8075_v28, %v8404_v29  ;;  %v2943_v53 = vsub.f32 %v8085_v18, %v8404_v29  ;;  %v2944_v27 = vsub.f32 %v8107_v44, %v8404_v29  ;;  %v2945_v63 = vsub.f32 %v8119_v56, %v8404_v29 }
 0x342   : > { %v2937_v50 = vmax.f32 %v2936_v54, 0.0  ;;  %v2946_v49 = vsub.f32 %v8131_v32, %v8404_v29  ;;  %v2947_v33 = vsub.f32 %v8141_v22, %v8404_v29  ;;  %v2948_v3 = vsub.f32 %v8149_v58, %v8404_v29 }
 0x343   : > { %v2949_v28 = vsub.f32 %v8169_v36, %v8404_v29  ;;  %v2950_v18 = vsub.f32 %v8181_v57, %v8404_v29  ;;  %v2951_v44 = vsub.f32 %v8206_v25, %v8404_v29  ;;  %v2952_v56 = vsub.f32 %v8217_v6, %v8404_v29 }
 0x344   : > { %v2970_v24 = vadd.f32 1e-05, %v2937_v50  ;;  %v2953_v32 = vsub.f32 %v8232_v43, %v8404_v29  ;;  %v2954_v22 = vsub.f32 %v8245_v11, %v8404_v29  ;;  %v2955_v58 = vsub.f32 %v8256_v37, %v8404_v29 }
 0x345   : > { %v2956_v57 = vsub.f32 %v8259_v21, %v8404_v29  ;;  %v2957_v25 = vsub.f32 %v8270_v61, %v8404_v29  ;;  %v2958_v6 = vsub.f32 %v8283_v52, %v8404_v29  ;;  %v2959_v43 = vsub.f32 %v8294_v12, %v8404_v29 }
 0x346   : > { %6595 = vrsqrt.f32 %v2970_v24  ;;  %vm2977_vm6 = vweird.f32 %v2970_v24  ;;  %v2960_v11 = vsub.f32 %v8308_v51, %v8404_v29  ;;  %v2961_v37 = vsub.f32 %v8319_v40, %v8404_v29 }
 0x347   : > { %v2962_v21 = vsub.f32 %v8328_v4, %v8404_v29  ;;  %v2963_v61 = vsub.f32 %v8337_v13, %v8404_v29  ;;  %v2964_v35 = vsub.f32 %v8344_v2, %v8404_v29 }
 0x34c   : > { %v6596_v19 = vpop.eup %6595 }
 0x34d   : > { %v2972_v60 = vmul.f32 %v6596_v19, %v2970_v24  ;;  %vm2978_vm5 = vweird.f32 %v6596_v19 }
 0x34e   : > { %vm2979_vm7 = vmor %vm2977_vm6, %vm2978_vm5 }
 0x34f   : > { %v2973_v39 = vmul.f32 %v6596_v19, %v2972_v60 }
 0x351   : > { %v2974_v34 = vmul.f32 0.5, %v2973_v39 }
 0x353   : > { %v2975_v47 = vsub.f32 1.5, %v2974_v34 }
 0x355   : > { %v2976_v36 = vmul.f32 %v6596_v19, %v2975_v47 }
 0x357   : > { %v2980_v41 = vsel %vm2979_vm7, %v6596_v19, %v2976_v36 }
 0x358   : > { %v3012_v52 = vmul.f32 %v2980_v41, %v2969_v9  ;;  %v2981_v48 = vmul.f32 %v2980_v41, %v2938_v26  ;;  %v2982_v16 = vmul.f32 %v2980_v41, %v2939_v17  ;;  %v2983_v12 = vmul.f32 %v2980_v41, %v2940_v45 }
 0x359   : > { %v2984_v30 = vmul.f32 %v2980_v41, %v2941_v0  ;;  %v2985_v38 = vmul.f32 %v2980_v41, %v2942_v10  ;;  %v2986_v51 = vmul.f32 %v2980_v41, %v2943_v53  ;;  %v2987_v55 = vmul.f32 %v2980_v41, %v2944_v27 }
 0x35a   : > { %v3044_v8 = vmax.f32 %v3012_v52, 0.0  ;;  %v2988_v40 = vmul.f32 %v2980_v41, %v2945_v63  ;;  %v2989_v59 = vmul.f32 %v2980_v41, %v2946_v49  ;;  %v2990_v54 = vmul.f32 %v2980_v41, %v2947_v33 }
 0x35b   : > { %v2991_v42 = vmul.f32 %v2980_v41, %v2948_v3  ;;  %v2992_v4 = vmul.f32 %v2980_v41, %v2949_v28  ;;  %v2993_v50 = vmul.f32 %v2980_v41, %v2950_v18  ;;  %v2994_v24 = vmul.f32 %v2980_v41, %v2951_v44 }
 0x35c   : > { %3076 = vst.msk [vmem:[#allocation2 + $0x189] sm:$0xff] %vm204_vm1, %v3044_v8  ;;  %v2995_v13 = vmul.f32 %v2980_v41, %v2952_v56  ;;  %v2996_v2 = vmul.f32 %v2980_v41, %v2953_v32  ;;  %v2997_v9 = vmul.f32 %v2980_v41, %v2954_v22  ;;  %v2998_v1 = vmul.f32 %v2980_v41, %v2955_v58 }
 0x35d   : > { %v2999_v19 = vmul.f32 %v2980_v41, %v2956_v57  ;;  %v3000_v60 = vmul.f32 %v2980_v41, %v2957_v25  ;;  %v3001_v39 = vmul.f32 %v2980_v41, %v2958_v6  ;;  %v3002_v26 = vmul.f32 %v2980_v41, %v2959_v43  ;;  %v6408_v6 = vld [vmem:[%s10021_s2 + $0x10] sm:$0xf] }
 0x35e   : > { %v3003_v17 = vmul.f32 %v2980_v41, %v2960_v11  ;;  %v3004_v45 = vmul.f32 %v2980_v41, %v2961_v37  ;;  %v8486_v0 = vmul.f32 %v2980_v41, %v2962_v21  ;;  %v8488_v10 = vmul.f32 %v2980_v41, %v2963_v61  ;;  %6409 = vmatpush.msk.msrb.mxu1 %vm481_vm0, %v6408_v6 }
 0x35f   : > { %v8490_v34 = vmul.f32 %v2980_v41, %v2964_v35  ;;  %v8495_v53 = vmul.f32 %v2980_v41, %v2965_v5  ;;  %v8500_v27 = vmul.f32 %v2980_v41, %v2966_v14  ;;  %v8505_v63 = vmul.f32 %v2980_v41, %v2967_v31 }
 0x360   : > { %v8510_v49 = vmul.f32 %v2980_v41, %v2968_v23  ;;  %v3013_v33 = vmax.f32 %v2981_v48, 0.0  ;;  %v3014_v3 = vmax.f32 %v2982_v16, 0.0  ;;  %v3015_v46 = vmax.f32 %v2983_v12, 0.0 }
 0x361   : > { %v3016_v5 = vmax.f32 %v2984_v30, 0.0  ;;  %v3017_v28 = vmax.f32 %v2985_v38, 0.0  ;;  %v3018_v7 = vmax.f32 %v2986_v51, 0.0  ;;  %v3019_v14 = vmax.f32 %v2987_v55, 0.0 }
 0x362   : > { %3045 = vst.msk [vmem:[#allocation2 + $0x19] sm:$0xff] %vm204_vm1, %v3013_v33  ;;  %v3020_v62 = vmax.f32 %v2988_v40, 0.0  ;;  %v3021_v31 = vmax.f32 %v2989_v59, 0.0  ;;  %v3022_v15 = vmax.f32 %v2990_v54, 0.0  ;;  %v3023_v29 = vmax.f32 %v2991_v42, 0.0 }
 0x363   : > { %3046 = vst.msk [vmem:[#allocation2 + $0x21] sm:$0xff] %vm204_vm1, %v3014_v3  ;;  %v3024_v23 = vmax.f32 %v2992_v4, 0.0  ;;  %v3025_v47 = vmax.f32 %v2993_v50, 0.0  ;;  %v3026_v18 = vmax.f32 %v2994_v24, 0.0  ;;  %v3027_v44 = vmax.f32 %v2995_v13, 0.0 }
 0x364   : > { %3047 = vst.msk [vmem:[#allocation2 + $0x31] sm:$0xff] %vm204_vm1, %v3015_v46  ;;  %v3028_v56 = vmax.f32 %v2996_v2, 0.0  ;;  %v3029_v32 = vmax.f32 %v2997_v9, 0.0  ;;  %v3030_v22 = vmax.f32 %v2998_v1, 0.0  ;;  %v3031_v58 = vmax.f32 %v2999_v19, 0.0 }
 0x365   : > { %3048 = vst.msk [vmem:[#allocation2 + $0x39] sm:$0xff] %vm204_vm1, %v3016_v5  ;;  %v3032_v36 = vmax.f32 %v3000_v60, 0.0  ;;  %v3033_v57 = vmax.f32 %v3001_v39, 0.0  ;;  %v3034_v25 = vmax.f32 %v3002_v26, 0.0  ;;  %v3035_v43 = vmax.f32 %v3003_v17, 0.0 }
 0x366   : > { %3049 = vst.msk [vmem:[#allocation2 + $0x49] sm:$0xff] %vm204_vm1, %v3017_v28  ;;  %v3036_v11 = vmax.f32 %v3004_v45, 0.0  ;;  %v3037_v37 = vmax.f32 %v8486_v0, 0.0  ;;  %v3038_v41 = vmax.f32 %v8488_v10, 0.0  ;;  %v3039_v21 = vmax.f32 %v8490_v34, 0.0 }
 0x367   : > { %3050 = vst.msk [vmem:[#allocation2 + $0x51] sm:$0xff] %vm204_vm1, %v3018_v7  ;;  %v3040_v61 = vmax.f32 %v8495_v53, 0.0  ;;  %v3041_v35 = vmax.f32 %v8500_v27, 0.0  ;;  %v3042_v52 = vmax.f32 %v8505_v63, 0.0  ;;  %v3043_v48 = vmax.f32 %v8510_v49, 0.0 }
 0x368   : > { %3051 = vst.msk [vmem:[#allocation2 + $0x61] sm:$0xff] %vm204_vm1, %v3019_v14 }
 0x369   : > { %3052 = vst.msk [vmem:[#allocation2 + $0x69] sm:$0xff] %vm204_vm1, %v3020_v62  ;;  %v3077_v16 = vld [vmem:[#allocation2 + $0x1a] sm:$0x1] }
 0x36a   : > { %3053 = vst.msk [vmem:[#allocation2 + $0x79] sm:$0xff] %vm204_vm1, %v3021_v31  ;;  %v3109_v51 = vld [vmem:[#allocation2 + $0x27] sm:$0x1] }
 0x36b   : > { %3054 = vst.msk [vmem:[#allocation2 + $0x81] sm:$0xff] %vm204_vm1, %v3022_v15  ;;  %v3078_v12 = vld [vmem:[#allocation2 + $0x32] sm:$0x1]  ;;  %v8578_v19 = vld [vmem:[#allocation2 + $0x20] sm:$0xff] }
 0x36c   : > { %3055 = vst.msk [vmem:[#allocation2 + $0x91] sm:$0xff] %vm204_vm1, %v3023_v29  ;;  %v8554_v30 = vld [vmem:[#allocation2 + $0x38] sm:$0xff] }
 0x36d   : > { %3056 = vst.msk [vmem:[#allocation2 + $0x99] sm:$0xff] %vm204_vm1, %v3024_v23  ;;  %v3110_v38 = vld [vmem:[#allocation2 + $0x3f] sm:$0x1]  ;;  %v3079_v55 = vld [vmem:[#allocation2 + $0x4a] sm:$0x1]  ;;  %v8653_v6 = vld [vmem:[#allocation2 + $0x32] sm:$0xff] }
 0x36e   : > { %3057 = vst.msk [vmem:[#allocation2 + $0xa9] sm:$0xff] %vm204_vm1, %v3025_v47  ;;  %v3111_v40 = vld [vmem:[#allocation2 + $0x57] sm:$0x1]  ;;  %v8610_v47 = vld [vmem:[#allocation2 + $0x19] sm:$0xff] }
 0x36f   : > { %3058 = vst.msk [vmem:[#allocation2 + $0xb1] sm:$0xff] %vm204_vm1, %v3026_v18  ;;  %v3080_v8 = vld [vmem:[#allocation2 + $0x62] sm:$0x1]  ;;  %v3124_v18 = vld [vmem:[#allocation2 + $0x18f] sm:$0x1] }
 0x370   : > { %3059 = vst.msk [vmem:[#allocation2 + $0xc1] sm:$0xff] %vm204_vm1, %v3027_v44  ;;  %v3112_v42 = vld [vmem:[#allocation2 + $0x6f] sm:$0x1]  ;;  %v8619_v44 = vld [vmem:[#allocation2 + $0x1a] sm:$0xff] }
 0x371   : > { %3060 = vst.msk [vmem:[#allocation2 + $0xc9] sm:$0xff] %vm204_vm1, %v3028_v56  ;;  %v3081_v59 = vld [vmem:[#allocation2 + $0x7a] sm:$0x1] }
 0x372   : > { %3061 = vst.msk [vmem:[#allocation2 + $0xd9] sm:$0xff] %vm204_vm1, %v3029_v32  ;;  %v3113_v13 = vld [vmem:[#allocation2 + $0x87] sm:$0x1] }
 0x373   : > { %3062 = vst.msk [vmem:[#allocation2 + $0xe1] sm:$0xff] %vm204_vm1, %v3030_v22  ;;  %v3082_v50 = vld [vmem:[#allocation2 + $0x92] sm:$0x1]  ;;  %v8630_v22 = vld [vmem:[#allocation2 + $0x21] sm:$0xff] }
 0x374   : > { %3063 = vst.msk [vmem:[#allocation2 + $0xf1] sm:$0xff] %vm204_vm1, %v3031_v58  ;;  %v3114_v9 = vld [vmem:[#allocation2 + $0x9f] sm:$0x1] }
 0x375   : > { %3064 = vst.msk [vmem:[#allocation2 + $0xf9] sm:$0xff] %vm204_vm1, %v3032_v36  ;;  %v3083_v2 = vld [vmem:[#allocation2 + $0xaa] sm:$0x1] }
 0x376   : > { %3065 = vst.msk [vmem:[#allocation2 + $0x109] sm:$0xff] %vm204_vm1, %v3033_v57  ;;  %v3115_v60 = vld [vmem:[#allocation2 + $0xb7] sm:$0x1] }
 0x377   : > { %3066 = vst.msk [vmem:[#allocation2 + $0x111] sm:$0xff] %vm204_vm1, %v3034_v25  ;;  %v3084_v1 = vld [vmem:[#allocation2 + $0xc2] sm:$0x1]  ;;  %v8643_v57 = vld [vmem:[#allocation2 + $0x50] sm:$0xff] }
 0x378   : > { %3067 = vst.msk [vmem:[#allocation2 + $0x121] sm:$0xff] %vm204_vm1, %v3035_v43  ;;  %v3116_v26 = vld [vmem:[#allocation2 + $0xcf] sm:$0x1]  ;;  %v8645_v25 = vld [vmem:[#allocation2 + $0x31] sm:$0xff] }
 0x379   : > { %3068 = vst.msk [vmem:[#allocation2 + $0x129] sm:$0xff] %vm204_vm1, %v3036_v11  ;;  %v3085_v39 = vld [vmem:[#allocation2 + $0xda] sm:$0x1] }
 0x37a   : > { %3069 = vst.msk [vmem:[#allocation2 + $0x139] sm:$0xff] %vm204_vm1, %v3037_v37  ;;  %v3117_v34 = vld [vmem:[#allocation2 + $0xe7] sm:$0x1]  ;;  %v8659_v11 = vld [vmem:[#allocation2 + $0x39] sm:$0xff] }
 0x37b   : > { %3070 = vst.msk [vmem:[#allocation2 + $0x141] sm:$0xff] %vm204_vm1, %v3038_v41  ;;  %v3086_v10 = vld [vmem:[#allocation2 + $0xf2] sm:$0x1]  ;;  %v8671_v41 = vld [vmem:[#allocation2 + $0x68] sm:$0xff]  ;;  %v8843_v20 = vld [vmem:[#allocation2 + $0xd9] sm:$0xff] }
 0x37c   : > { %3071 = vst.msk [vmem:[#allocation2 + $0x151] sm:$0xff] %vm204_vm1, %v3039_v21  ;;  %v3118_v27 = vld [vmem:[#allocation2 + $0xff] sm:$0x1]  ;;  %v8673_v21 = vld [vmem:[#allocation2 + $0x49] sm:$0xff] }
 0x37d   : > { %3072 = vst.msk [vmem:[#allocation2 + $0x159] sm:$0xff] %vm204_vm1, %v3040_v61  ;;  %v3087_v53 = vld [vmem:[#allocation2 + $0x10a] sm:$0x1] }
 0x37e   : > { %3073 = vst.msk [vmem:[#allocation2 + $0x169] sm:$0xff] %vm204_vm1, %v3041_v35  ;;  %v3119_v49 = vld [vmem:[#allocation2 + $0x117] sm:$0x1]  ;;  %v8681_v61 = vld [vmem:[#allocation2 + $0x4a] sm:$0xff] }
 0x37f   : > { %3074 = vst.msk [vmem:[#allocation2 + $0x171] sm:$0xff] %vm204_vm1, %v3042_v52  ;;  %v3088_v63 = vld [vmem:[#allocation2 + $0x122] sm:$0x1]  ;;  %v8687_v52 = vld [vmem:[#allocation2 + $0x51] sm:$0xff] }
 0x380   : > { %3075 = vst.msk [vmem:[#allocation2 + $0x181] sm:$0xff] %vm204_vm1, %v3043_v48  ;;  %v3120_v5 = vld [vmem:[#allocation2 + $0x12f] sm:$0x1] }
 0x381   : > { %3093 = vst.msk [vmem:[#allocation2 + $0x18] sm:$0x1] %vm253_vm2, %v3077_v16  ;;  %v3089_v33 = vld [vmem:[#allocation2 + $0x13a] sm:$0x1]  ;;  %v8699_v16 = vld [vmem:[#allocation2 + $0x80] sm:$0xff] }
 0x382   : > { %3094 = vst.msk [vmem:[#allocation2 + $0x30] sm:$0x1] %vm253_vm2, %v3078_v12  ;;  %v3121_v14 = vld [vmem:[#allocation2 + $0x147] sm:$0x1] }
 0x383   : > { %3145 = vst.msk [vmem:[#allocation2 + $0x8] sm:$0xff] %vm204_vm1, %v8554_v30  ;;  %v3090_v7 = vld [vmem:[#allocation2 + $0x152] sm:$0x1]  ;;  %v8701_v12 = vld [vmem:[#allocation2 + $0x61] sm:$0xff] }
 0x384   : > { %3126 = vst.msk [vmem:[#allocation2 + $0x41] sm:$0x1] %vm253_vm2, %v3110_v38  ;;  %v3122_v31 = vld [vmem:[#allocation2 + $0x15f] sm:$0x1]  ;;  %v8709_v38 = vld [vmem:[#allocation2 + $0x62] sm:$0xff] }
 0x385   : > { %3125 = vst.msk [vmem:[#allocation2 + $0x29] sm:$0x1] %vm253_vm2, %v3109_v51  ;;  %v3091_v62 = vld [vmem:[#allocation2 + $0x16a] sm:$0x1] }
 0x386   : > { %3095 = vst.msk [vmem:[#allocation2 + $0x48] sm:$0x1] %vm253_vm2, %v3079_v55  ;;  %v3123_v29 = vld [vmem:[#allocation2 + $0x177] sm:$0x1]  ;;  %v8715_v55 = vld [vmem:[#allocation2 + $0x69] sm:$0xff] }
 0x387   : > { %3096 = vst.msk [vmem:[#allocation2 + $0x60] sm:$0x1] %vm253_vm2, %v3080_v8  ;;  %v3092_v15 = vld [vmem:[#allocation2 + $0x182] sm:$0x1]  ;;  %v8607_v23 = vld [vmem:[#allocation2 + $0x170] sm:$0xff] }
 0x388   : > { %v8564_v54 = vld [vmem:[#allocation2 + $0x18] sm:$0xff]  ;;  %3127 = vst.msk [vmem:[#allocation2 + $0x59] sm:$0x1] %vm253_vm2, %v3111_v40 }
 0x389   : > { %6376 = vmatmul.msk.f32.vlgmr.msrb.gmra.mxu0 %vm204_vm1, %v8564_v54  ;;  %v8569_v4 = vld [vmem:[#allocation2 + $0x30] sm:$0xff]  ;;  %3097 = vst.msk [vmem:[#allocation2 + $0x78] sm:$0x1] %vm253_vm2, %v3081_v59  ;;  %v8727_v40 = vld [vmem:[#allocation2 + $0x98] sm:$0xff] }
 0x38a   : > { %3144 = vst.msk [vmem:[#allocation2] sm:$0xff] %vm204_vm1, %v8569_v4  ;;  %v3154_v46 = vld [vmem:[#allocation2 + $0x8] sm:$0xff]  ;;  %v8729_v59 = vld [vmem:[#allocation2 + $0x79] sm:$0xff] }
 0x38b   : > { %v3143_v24 = vld [vmem:[#allocation2 + $0x40] sm:$0x3]  ;;  %3128 = vst.msk [vmem:[#allocation2 + $0x71] sm:$0x1] %vm253_vm2, %v3112_v42 }
 0x38c   : > { %3146 = vst.msk [vmem:[#allocation2 + $0x10] sm:$0x3] %vm308_vm3, %v3143_v24  ;;  %v8638_v36 = vld [vmem:[#allocation2 + $0x22] sm:$0xff]  ;;  %v8667_v37 = vld [vmem:[#allocation2 + $0x3a] sm:$0xff] }
 0x38d   : > { %3098 = vst.msk [vmem:[#allocation2 + $0x90] sm:$0x1] %vm253_vm2, %v3082_v50  ;;  %v8628_v32 = vld [vmem:[#allocation2 + $0x48] sm:$0xff] }
 0x38e   : > { %3129 = vst.msk [vmem:[#allocation2 + $0x89] sm:$0x1] %vm253_vm2, %v3113_v13  ;;  %v8657_v43 = vld [vmem:[#allocation2 + $0x60] sm:$0xff]  ;;  %v8755_v13 = vld [vmem:[#allocation2 + $0xb0] sm:$0xff] }
 0x38f   : > { %3099 = vst.msk [vmem:[#allocation2 + $0xa8] sm:$0x1] %vm253_vm2, %v3083_v2  ;;  %v8695_v48 = vld [vmem:[#allocation2 + $0x52] sm:$0xff]  ;;  %v8743_v50 = vld [vmem:[#allocation2 + $0x81] sm:$0xff] }
 0x390   : > { %3130 = vst.msk [vmem:[#allocation2 + $0xa1] sm:$0x1] %vm253_vm2, %v3114_v9  ;;  %v8685_v35 = vld [vmem:[#allocation2 + $0x78] sm:$0xff] }
 0x391   : > { %v3186_v17 = vld [vmem:[#allocation2 + $0x1] sm:$0xff]  ;;  %6377 = vmatmul.msk.f32.gmra.mxu0 %vm204_vm1, %v8578_v19  ;;  %3100 = vst.msk [vmem:[#allocation2 + $0xc0] sm:$0x1] %vm253_vm2, %v3084_v1  ;;  %v8757_v2 = vld [vmem:[#allocation2 + $0x91] sm:$0xff] }
 0x392   : > { %v3153_v45 = vld [vmem:[#allocation2] sm:$0xff]  ;;  %6275 = vmatmul.msk.f32.vlgmr.msra.gmra.mxu1 %vm204_vm1, %v3186_v17  ;;  %3131 = vst.msk [vmem:[#allocation2 + $0xb9] sm:$0x1] %vm253_vm2, %v3115_v60  ;;  %v8723_v8 = vld [vmem:[#allocation2 + $0x6a] sm:$0xff]  ;;  %v8765_v9 = vld [vmem:[#allocation2 + $0x92] sm:$0xff] }
 0x393   : > { %v3644_v0 = vld [vmem:[#allocation2 + $0x2] sm:$0xff]  ;;  %6308 = vmatmul.msk.f32.vlgmr.msrb.gmra.mxu2 %vm204_vm1, %v3153_v45  ;;  %3101 = vst.msk [vmem:[#allocation2 + $0xd8] sm:$0x1] %vm253_vm2, %v3085_v39  ;;  %v3645_v28 = vld [vmem:[#allocation2 + $0xa] sm:$0xff] }
 0x394   : > { %6342 = vmatmul.msk.f32.vlgmr.msrb.gmra.mxu3 %vm204_vm1, %v3644_v0  ;;  %3132 = vst.msk [vmem:[#allocation2 + $0xd1] sm:$0x1] %vm253_vm2, %v3116_v26  ;;  %v3187_v3 = vld [vmem:[#allocation2 + $0x9] sm:$0xff] }
 0x395   : > { %3102 = vst.msk [vmem:[#allocation2 + $0xf0] sm:$0x1] %vm253_vm2, %v3086_v10  ;;  %v8713_v51 = vld [vmem:[#allocation2 + $0x90] sm:$0xff]  ;;  %v8751_v24 = vld [vmem:[#allocation2 + $0x82] sm:$0xff] }
 0x396   : > { %3133 = vst.msk [vmem:[#allocation2 + $0xe9] sm:$0x1] %vm253_vm2, %v3117_v34  ;;  %v8741_v42 = vld [vmem:[#allocation2 + $0xa8] sm:$0xff]  ;;  %v8799_v10 = vld [vmem:[#allocation2 + $0xb1] sm:$0xff] }
 0x397   : > { %3103 = vst.msk [vmem:[#allocation2 + $0x108] sm:$0x1] %vm253_vm2, %v3087_v53  ;;  %v8779_v60 = vld [vmem:[#allocation2 + $0x9a] sm:$0xff]  ;;  %v8783_v39 = vld [vmem:[#allocation2 + $0xc8] sm:$0xff] }
 0x398   : > { %3134 = vst.msk [vmem:[#allocation2 + $0x101] sm:$0x1] %vm253_vm2, %v3118_v27  ;;  %v8769_v1 = vld [vmem:[#allocation2 + $0xc0] sm:$0xff]  ;;  %v8785_v26 = vld [vmem:[#allocation2 + $0xa9] sm:$0xff] }
 0x399   : > { %6378 = vmatmul.msk.f32.gmra.mxu0 %vm204_vm1, %v8569_v4  ;;  %3104 = vst.msk [vmem:[#allocation2 + $0x120] sm:$0x1] %vm253_vm2, %v3088_v63  ;;  %v8793_v17 = vld [vmem:[#allocation2 + $0xaa] sm:$0xff]  ;;  %v8807_v34 = vld [vmem:[#allocation2 + $0xb2] sm:$0xff]  ;;  %v8811_v63 = vld [vmem:[#allocation2 + $0xe0] sm:$0xff] }
 0x39a   : > { %6276 = vmatmul.msk.f32.gmra.mxu1 %vm204_vm1, %v3187_v3  ;;  %3135 = vst.msk [vmem:[#allocation2 + $0x119] sm:$0x1] %vm253_vm2, %v3119_v49  ;;  %v8797_v0 = vld [vmem:[#allocation2 + $0xd8] sm:$0xff]  ;;  %v8813_v49 = vld [vmem:[#allocation2 + $0xc1] sm:$0xff] }
 0x39b   : > { %6309 = vmatmul.msk.f32.gmra.mxu2 %vm204_vm1, %v3154_v46  ;;  %3105 = vst.msk [vmem:[#allocation2 + $0x138] sm:$0x1] %vm253_vm2, %v3089_v33  ;;  %v8821_v33 = vld [vmem:[#allocation2 + $0xc2] sm:$0xff] }
 0x39c   : > { %6343 = vmatmul.msk.f32.gmra.mxu3 %vm204_vm1, %v3645_v28  ;;  %3136 = vst.msk [vmem:[#allocation2 + $0x131] sm:$0x1] %vm253_vm2, %v3120_v5 }
 0x39d   : > { %3106 = vst.msk [vmem:[#allocation2 + $0x150] sm:$0x1] %vm253_vm2, %v3090_v7 }
 0x39e   : > { %3137 = vst.msk [vmem:[#allocation2 + $0x149] sm:$0x1] %vm253_vm2, %v3121_v14 }
 0x39f   : > { %3107 = vst.msk [vmem:[#allocation2 + $0x168] sm:$0x1] %vm253_vm2, %v3091_v62  ;;  %v8825_v62 = vld [vmem:[#allocation2 + $0xf0] sm:$0xff] }
 0x3a0   : > { %3138 = vst.msk [vmem:[#allocation2 + $0x161] sm:$0x1] %vm253_vm2, %v3122_v31  ;;  %v8827_v31 = vld [vmem:[#allocation2 + $0xc9] sm:$0xff] }
 0x3a1   : > { %6379 = vmatmul.msk.f32.gmra.mxu0 %vm204_vm1, %v8554_v30  ;;  %3108 = vst.msk [vmem:[#allocation2 + $0x180] sm:$0x1] %vm253_vm2, %v3092_v15  ;;  %v8835_v15 = vld [vmem:[#allocation2 + $0xca] sm:$0xff] }
 0x3a2   : > { %6277 = vmatmul.msk.f32.gmra.mxu1 %vm204_vm1, %v8610_v47  ;;  %3139 = vst.msk [vmem:[#allocation2 + $0x179] sm:$0x1] %vm253_vm2, %v3123_v29 }
 0x3a3   : > { %6310 = vmatmul.msk.f32.gmra.mxu2 %vm204_vm1, %v8564_v54  ;;  %3151 = vst.msk [vmem:[#allocation2 + $0x1a0] sm:$0xff] %vm204_vm1, %v8607_v23  ;;  %v8737_v54 = vld [vmem:[#allocation2 + $0x7a] sm:$0xff] }
 0x3a4   : > { %6344 = vmatmul.msk.f32.gmra.mxu3 %vm204_vm1, %v8619_v44  ;;  %3140 = vst.msk [vmem:[#allocation2 + $0x191] sm:$0x1] %vm253_vm2, %v3124_v18 }
 0x3a5   : > { %10360 = vst [vmem:[#allocation36_spill] sm:$0xff] %v8783_v39 }
 0x3a6   : > { %v3147_v56 = vld [vmem:[#allocation2 + $0x168] sm:$0xff]  ;;  %10361 = vst [vmem:[#allocation34_spill] sm:$0xff] %v8797_v0 }
 0x3a7   : > { %3150 = vst.msk [vmem:[#allocation2 + $0x198] sm:$0xff] %vm204_vm1, %v3147_v56 }
 0x3a8   : > { %10362 = vst [vmem:[#allocation37_spill] sm:$0xff] %v8807_v34 }
 0x3a9   : > { %6380 = vmatmul.msk.f32.gmra.mxu0 %vm204_vm1, %v8628_v32  ;;  %v3149_v58 = vld [vmem:[#allocation2 + $0x178] sm:$0x3]  ;;  %10363 = vst [vmem:[#allocation35_spill] sm:$0xff] %v8811_v63 }
 0x3aa   : > { %6278 = vmatmul.msk.f32.gmra.mxu1 %vm204_vm1, %v8630_v22  ;;  %3152 = vst.msk [vmem:[#allocation2 + $0x1a8] sm:$0x3] %vm308_vm3, %v3149_v58 }
 0x3ab   : > { %6311 = vmatmul.msk.f32.gmra.mxu2 %vm204_vm1, %v8578_v19  ;;  %v8771_v19 = vld [vmem:[#allocation2 + $0x99] sm:$0xff]  ;;  %10364 = vst [vmem:[#allocation67_spill] sm:$0xff] %v8821_v33 }
 0x3ac   : > { %6345 = vmatmul.msk.f32.gmra.mxu3 %vm204_vm1, %v8638_v36  ;;  %10365 = vst [vmem:[#allocation38_spill] sm:$0xff] %v8825_v62 }
 0x3ad   : > { %10366 = vst [vmem:[#allocation39_spill] sm:$0xff] %v8835_v15 }
 0x3b1   : > { %6381 = vmatmul.msk.f32.gmra.mxu0 %vm204_vm1, %v8643_v57 }
 0x3b2   : > { %6279 = vmatmul.msk.f32.gmra.mxu1 %vm204_vm1, %v8645_v25 }
 0x3b3   : > { %6312 = vmatmul.msk.f32.gmra.mxu2 %vm204_vm1, %v8569_v4 }
 0x3b4   : > { %6346 = vmatmul.msk.f32.gmra.mxu3 %vm204_vm1, %v8653_v6 }
 0x3b9   : > { %6382 = vmatmul.msk.f32.gmra.mxu0 %vm204_vm1, %v8657_v43 }
 0x3ba   : > { %6280 = vmatmul.msk.f32.gmra.mxu1 %vm204_vm1, %v8659_v11 }
 0x3bb   : > { %6313 = vmatmul.msk.f32.gmra.mxu2 %vm204_vm1, %v8554_v30 }
 0x3bc   : > { %6347 = vmatmul.msk.f32.gmra.mxu3 %vm204_vm1, %v8667_v37 }
 0x3c1   : > { %6383 = vmatmul.msk.f32.gmra.mxu0 %vm204_vm1, %v8671_v41 }
 0x3c2   : > { %6281 = vmatmul.msk.f32.gmra.mxu1 %vm204_vm1, %v8673_v21 }
 0x3c3   : > { %6314 = vmatmul.msk.f32.gmra.mxu2 %vm204_vm1, %v8628_v32 }
 0x3c4   : > { %6348 = vmatmul.msk.f32.gmra.mxu3 %vm204_vm1, %v8681_v61 }
 0x3c9   : > { %6384 = vmatmul.msk.f32.gmra.mxu0 %vm204_vm1, %v8685_v35 }
 0x3ca   : > { %6282 = vmatmul.msk.f32.gmra.mxu1 %vm204_vm1, %v8687_v52 }
 0x3cb   : > { %6315 = vmatmul.msk.f32.gmra.mxu2 %vm204_vm1, %v8643_v57 }
 0x3cc   : > { %6349 = vmatmul.msk.f32.gmra.mxu3 %vm204_vm1, %v8695_v48 }
 0x3d1   : > { %6385 = vmatmul.msk.f32.gmra.mxu0 %vm204_vm1, %v8699_v16 }
 0x3d2   : > { %6283 = vmatmul.msk.f32.gmra.mxu1 %vm204_vm1, %v8701_v12 }
 0x3d3   : > { %6316 = vmatmul.msk.f32.gmra.mxu2 %vm204_vm1, %v8657_v43 }
 0x3d4   : > { %6350 = vmatmul.msk.f32.gmra.mxu3 %vm204_vm1, %v8709_v38 }
 0x3d9   : > { %6386 = vmatmul.msk.f32.gmra.mxu0 %vm204_vm1, %v8713_v51 }
 0x3da   : > { %6284 = vmatmul.msk.f32.gmra.mxu1 %vm204_vm1, %v8715_v55 }
 0x3db   : > { %6317 = vmatmul.msk.f32.gmra.mxu2 %vm204_vm1, %v8671_v41 }
 0x3dc   : > { %6351 = vmatmul.msk.f32.gmra.mxu3 %vm204_vm1, %v8723_v8 }
 0x3e1   : > { %6387 = vmatmul.msk.f32.gmra.mxu0 %vm204_vm1, %v8727_v40 }
 0x3e2   : > { %6285 = vmatmul.msk.f32.gmra.mxu1 %vm204_vm1, %v8729_v59 }
 0x3e3   : > { %6318 = vmatmul.msk.f32.gmra.mxu2 %vm204_vm1, %v8685_v35 }
 0x3e4   : > { %6352 = vmatmul.msk.f32.gmra.mxu3 %vm204_vm1, %v8737_v54 }
 0x3e9   : > { %6388 = vmatmul.msk.f32.gmra.mxu0 %vm204_vm1, %v8741_v42 }
 0x3ea   : > { %6286 = vmatmul.msk.f32.gmra.mxu1 %vm204_vm1, %v8743_v50 }
 0x3eb   : > { %6319 = vmatmul.msk.f32.gmra.mxu2 %vm204_vm1, %v8699_v16 }
 0x3ec   : > { %6353 = vmatmul.msk.f32.gmra.mxu3 %vm204_vm1, %v8751_v24 }
 0x3f1   : > { %6389 = vmatmul.msk.f32.gmra.mxu0 %vm204_vm1, %v8755_v13 }
 0x3f2   : > { %6287 = vmatmul.msk.f32.gmra.mxu1 %vm204_vm1, %v8757_v2 }
 0x3f3   : > { %6320 = vmatmul.msk.f32.gmra.mxu2 %vm204_vm1, %v8713_v51 }
 0x3f4   : > { %6354 = vmatmul.msk.f32.gmra.mxu3 %vm204_vm1, %v8765_v9 }
 0x3f9   : > { %6390 = vmatmul.msk.f32.gmra.mxu0 %vm204_vm1, %v8769_v1 }
 0x3fa   : > { %6288 = vmatmul.msk.f32.gmra.mxu1 %vm204_vm1, %v8771_v19 }
 0x3fb   : > { %6321 = vmatmul.msk.f32.gmra.mxu2 %vm204_vm1, %v8727_v40 }
 0x3fc   : > { %6355 = vmatmul.msk.f32.gmra.mxu3 %vm204_vm1, %v8779_v60 }
 0x401   : > { %6391 = vmatmul.msk.f32.gmra.mxu0 %vm204_vm1, %v8783_v39 }
 0x402   : > { %6289 = vmatmul.msk.f32.gmra.mxu1 %vm204_vm1, %v8785_v26 }
 0x403   : > { %6322 = vmatmul.msk.f32.gmra.mxu2 %vm204_vm1, %v8741_v42 }
 0x404   : > { %6356 = vmatmul.msk.f32.gmra.mxu3 %vm204_vm1, %v8793_v17 }
 0x406   : > { %v4072_v45 = vpop.f32.mrf.mxu0 }
 0x409   : > { %6392 = vmatmul.msk.f32.gmra.mxu0 %vm204_vm1, %v8797_v0 }
 0x40a   : > { %6290 = vmatmul.msk.f32.gmra.mxu1 %vm204_vm1, %v8799_v10 }
 0x40b   : > { %6323 = vmatmul.msk.f32.gmra.mxu2 %vm204_vm1, %v8755_v13 }
 0x40c   : > { %6357 = vmatmul.msk.f32.gmra.mxu3 %vm204_vm1, %v8807_v34  ;;  %v8875_v34 = vld [vmem:[#allocation2 + $0xf1] sm:$0xff] }
 0x40d   : > { %10376 = vst [vmem:[#allocation60_spill] sm:$0xff] %v8875_v34 }
 0x40e   : > { %v4075_v53 = vpop.f32.mrf.mxu0 }
 0x40f   : > { %v3336_v27 = vpop.f32.mrf.mxu1 }
 0x411   : > { %6393 = vmatmul.msk.f32.gmra.mxu0 %vm204_vm1, %v8811_v63 }
 0x412   : > { %6291 = vmatmul.msk.f32.gmra.mxu1 %vm204_vm1, %v8813_v49 }
 0x413   : > { %6324 = vmatmul.msk.f32.gmra.mxu2 %vm204_vm1, %v8769_v1 }
 0x414   : > { %6358 = vmatmul.msk.f32.gmra.mxu3 %vm204_vm1, %v8821_v33  ;;  %v8857_v33 = vld [vmem:[#allocation2 + $0x108] sm:$0xff] }
 0x415   : > { %10371 = vst [vmem:[#allocation45_spill] sm:$0xff] %v8857_v33 }
 0x416   : > { %v3548_v3 = vpop.f32.mrf.mxu2  ;;  %v4078_v28 = vpop.f32.mrf.mxu0 }
 0x417   : > { %v3549_v46 = vadd.f32 %v3548_v3, %v3336_v27  ;;  %v3794_v5 = vpop.f32.mrf.mxu3  ;;  %v3339_v7 = vpop.f32.mrf.mxu1 }
 0x419   : > { %v3890_v14 = vadd.f32 %v3794_v5, %v3549_v46  ;;  %6394 = vmatmul.msk.f32.gmra.mxu0 %vm204_vm1, %v8825_v62  ;;  %v8841_v5 = vld [vmem:[#allocation2 + $0xf8] sm:$0xff] }
 0x41a   : > { %6292 = vmatmul.msk.f32.gmra.mxu1 %vm204_vm1, %v8827_v31  ;;  %10368 = vst [vmem:[#allocation40_spill] sm:$0xff] %v8841_v5 }
 0x41b   : > { %6325 = vmatmul.msk.f32.gmra.mxu2 %vm204_vm1, %v8783_v39  ;;  %v8837_v29 = vadd.f32 %v4072_v45, %v3890_v14  ;;  %v8851_v45 = vld [vmem:[#allocation2 + $0xda] sm:$0xff] }
 0x41c   : > { %6359 = vmatmul.msk.f32.gmra.mxu3 %vm204_vm1, %v8835_v15  ;;  %10369 = vst [vmem:[#allocation43_spill] sm:$0xff] %v8851_v45  ;;  %v8859_v39 = vld [vmem:[#allocation2 + $0xe1] sm:$0xff] }
 0x41d   : > { %10367 = vst [vmem:[#allocation41_spill] sm:$0xff] %v8837_v29 }
 0x41e   : > { %v3551_v18 = vpop.f32.mrf.mxu2  ;;  %v4081_v27 = vpop.f32.mrf.mxu0  ;;  %10372 = vst [vmem:[#allocation44_spill] sm:$0xff] %v8859_v39 }
 0x41f   : > { %v3552_v56 = vadd.f32 %v3551_v18, %v3339_v7  ;;  %v3797_v58 = vpop.f32.mrf.mxu3  ;;  %v3342_v3 = vpop.f32.mrf.mxu1 }
 0x421   : > { %v3891_v46 = vadd.f32 %v3797_v58, %v3552_v56  ;;  %6395 = vmatmul.msk.f32.gmra.mxu0 %vm204_vm1, %v8841_v5 }
 0x422   : > { %6293 = vmatmul.msk.f32.gmra.mxu1 %vm204_vm1, %v8843_v20 }
 0x423   : > { %6326 = vmatmul.msk.f32.gmra.mxu2 %vm204_vm1, %v8797_v0  ;;  %v8853_v7 = vadd.f32 %v4075_v53, %v3891_v46  ;;  %v8867_v53 = vld [vmem:[#allocation2 + $0xe2] sm:$0xff]  ;;  %v8873_v0 = vld [vmem:[#allocation2 + $0x110] sm:$0xff] }
 0x424   : > { %6360 = vmatmul.msk.f32.gmra.mxu3 %vm204_vm1, %v8851_v45  ;;  %10373 = vst [vmem:[#allocation47_spill] sm:$0xff] %v8867_v53 }
 0x425   : > { %10370 = vst [vmem:[#allocation42_spill] sm:$0xff] %v8853_v7 }
 0x426   : > { %v3554_v14 = vpop.f32.mrf.mxu2  ;;  %v4084_v58 = vpop.f32.mrf.mxu0  ;;  %10375 = vst [vmem:[#allocation49_spill] sm:$0xff] %v8873_v0 }
 0x427   : > { %v3555_v18 = vadd.f32 %v3554_v14, %v3342_v3  ;;  %v3800_v56 = vpop.f32.mrf.mxu3  ;;  %v3345_v29 = vpop.f32.mrf.mxu1 }
 0x429   : > { %v3892_v15 = vadd.f32 %v3800_v56, %v3555_v18  ;;  %6396 = vmatmul.msk.f32.gmra.mxu0 %vm204_vm1, %v8857_v33 }
 0x42a   : > { %6294 = vmatmul.msk.f32.gmra.mxu1 %vm204_vm1, %v8859_v39  ;;  %v8891_v39 = vld [vmem:[#allocation2 + $0xf9] sm:$0xff] }
 0x42b   : > { %6327 = vmatmul.msk.f32.gmra.mxu2 %vm204_vm1, %v8811_v63  ;;  %v8869_v3 = vadd.f32 %v4078_v28, %v3892_v15  ;;  %v8883_v28 = vld [vmem:[#allocation2 + $0xf2] sm:$0xff]  ;;  %v8889_v63 = vld [vmem:[#allocation2 + $0x120] sm:$0xff]  ;;  %10380 = vst [vmem:[#allocation62_spill] sm:$0xff] %v8891_v39 }
 0x42c   : > { %6361 = vmatmul.msk.f32.gmra.mxu3 %vm204_vm1, %v8867_v53  ;;  %10377 = vst [vmem:[#allocation64_spill] sm:$0xff] %v8883_v28 }
 0x42d   : > { %10374 = vst [vmem:[#allocation46_spill] sm:$0xff] %v8869_v3 }
 0x42e   : > { %v3557_v46 = vpop.f32.mrf.mxu2  ;;  %v4087_v56 = vpop.f32.mrf.mxu0  ;;  %10379 = vst [vmem:[#allocation65_spill] sm:$0xff] %v8889_v63 }
 0x42f   : > { %v3558_v14 = vadd.f32 %v3557_v46, %v3345_v29  ;;  %v3803_v18 = vpop.f32.mrf.mxu3  ;;  %v3348_v7 = vpop.f32.mrf.mxu1 }
 0x431   : > { %v3893_v45 = vadd.f32 %v3803_v18, %v3558_v14  ;;  %6397 = vmatmul.msk.f32.gmra.mxu0 %vm204_vm1, %v8873_v0 }
 0x432   : > { %6295 = vmatmul.msk.f32.gmra.mxu1 %vm204_vm1, %v8875_v34  ;;  %v8907_v34 = vld [vmem:[#allocation2 + $0x109] sm:$0xff] }
 0x433   : > { %6328 = vmatmul.msk.f32.gmra.mxu2 %vm204_vm1, %v8825_v62  ;;  %v8885_v15 = vadd.f32 %v4081_v27, %v3893_v45  ;;  %v8899_v27 = vld [vmem:[#allocation2 + $0xfa] sm:$0xff]  ;;  %v8905_v62 = vld [vmem:[#allocation2 + $0x128] sm:$0xff]  ;;  %10384 = vst [vmem:[#allocation74_spill] sm:$0xff] %v8907_v34 }
 0x434   : > { %6362 = vmatmul.msk.f32.gmra.mxu3 %vm204_vm1, %v8883_v28  ;;  %10381 = vst [vmem:[#allocation70_spill] sm:$0xff] %v8899_v27 }
 0x435   : > { %10378 = vst [vmem:[#allocation63_spill] sm:$0xff] %v8885_v15 }
 0x436   : > { %v3560_v29 = vpop.f32.mrf.mxu2  ;;  %v4090_v18 = vpop.f32.mrf.mxu0  ;;  %10383 = vst [vmem:[#allocation66_spill] sm:$0xff] %v8905_v62 }
 0x437   : > { %v3561_v46 = vadd.f32 %v3560_v29, %v3348_v7  ;;  %v3806_v14 = vpop.f32.mrf.mxu3  ;;  %v3351_v3 = vpop.f32.mrf.mxu1 }
 0x439   : > { %v3894_v53 = vadd.f32 %v3806_v14, %v3561_v46  ;;  %6398 = vmatmul.msk.f32.gmra.mxu0 %vm204_vm1, %v8889_v63 }
 0x43a   : > { %6296 = vmatmul.msk.f32.gmra.mxu1 %vm204_vm1, %v8891_v39  ;;  %v8923_v39 = vld [vmem:[#allocation2 + $0x111] sm:$0xff] }
 0x43b   : > { %6329 = vmatmul.msk.f32.gmra.mxu2 %vm204_vm1, %v8841_v5  ;;  %v8901_v45 = vadd.f32 %v4084_v58, %v3894_v53  ;;  %v8915_v58 = vld [vmem:[#allocation2 + $0x10a] sm:$0xff]  ;;  %v8921_v5 = vld [vmem:[#allocation2 + $0x138] sm:$0xff]  ;;  %10388 = vst [vmem:[#allocation76_spill] sm:$0xff] %v8923_v39 }
 0x43c   : > { %6363 = vmatmul.msk.f32.gmra.mxu3 %vm204_vm1, %v8899_v27  ;;  %10385 = vst [vmem:[#allocation72_spill] sm:$0xff] %v8915_v58 }
 0x43d   : > { %10382 = vst [vmem:[#allocation71_spill] sm:$0xff] %v8901_v45 }
 0x43e   : > { %v3563_v7 = vpop.f32.mrf.mxu2  ;;  %v4093_v14 = vpop.f32.mrf.mxu0  ;;  %10387 = vst [vmem:[#allocation75_spill] sm:$0xff] %v8921_v5 }
 0x43f   : > { %v3564_v29 = vadd.f32 %v3563_v7, %v3351_v3  ;;  %v3809_v46 = vpop.f32.mrf.mxu3  ;;  %v3354_v15 = vpop.f32.mrf.mxu1 }
 0x441   : > { %v3895_v28 = vadd.f32 %v3809_v46, %v3564_v29  ;;  %6399 = vmatmul.msk.f32.gmra.mxu0 %vm204_vm1, %v8905_v62 }
 0x442   : > { %6297 = vmatmul.msk.f32.gmra.mxu1 %vm204_vm1, %v8907_v34  ;;  %v8939_v34 = vld [vmem:[#allocation2 + $0x121] sm:$0xff] }
 0x443   : > { %6330 = vmatmul.msk.f32.gmra.mxu2 %vm204_vm1, %v8857_v33  ;;  %v8917_v53 = vadd.f32 %v4087_v56, %v3895_v28  ;;  %v8931_v56 = vld [vmem:[#allocation2 + $0x112] sm:$0xff]  ;;  %v8937_v33 = vld [vmem:[#allocation2 + $0x140] sm:$0xff]  ;;  %10391 = vst [vmem:[#allocation51_spill] sm:$0xff] %v8939_v34 }
 0x444   : > { %6364 = vmatmul.msk.f32.gmra.mxu3 %vm204_vm1, %v8915_v58  ;;  %10389 = vst [vmem:[#allocation77_spill] sm:$0xff] %v8931_v56 }
 0x445   : > { %10386 = vst [vmem:[#allocation73_spill] sm:$0xff] %v8917_v53 }
 0x446   : > { %v3566_v3 = vpop.f32.mrf.mxu2  ;;  %v4096_v46 = vpop.f32.mrf.mxu0 }
 0x447   : > { %v3567_v7 = vadd.f32 %v3566_v3, %v3354_v15  ;;  %v3812_v29 = vpop.f32.mrf.mxu3  ;;  %v3357_v45 = vpop.f32.mrf.mxu1 }
 0x449   : > { %v3896_v27 = vadd.f32 %v3812_v29, %v3567_v7  ;;  %6400 = vmatmul.msk.f32.gmra.mxu0 %vm204_vm1, %v8921_v5 }
 0x44a   : > { %6298 = vmatmul.msk.f32.gmra.mxu1 %vm204_vm1, %v8923_v39  ;;  %v8955_v39 = vld [vmem:[#allocation2 + $0x129] sm:$0xff] }
 0x44b   : > { %6331 = vmatmul.msk.f32.gmra.mxu2 %vm204_vm1, %v8873_v0  ;;  %v8933_v28 = vadd.f32 %v4090_v18, %v3896_v27  ;;  %v8947_v18 = vld [vmem:[#allocation2 + $0x122] sm:$0xff]  ;;  %v8953_v0 = vld [vmem:[#allocation2 + $0x150] sm:$0xff]  ;;  %10395 = vst [vmem:[#allocation82_spill] sm:$0xff] %v8955_v39 }
 0x44c   : > { %6365 = vmatmul.msk.f32.gmra.mxu3 %vm204_vm1, %v8931_v56  ;;  %10392 = vst [vmem:[#allocation79_spill] sm:$0xff] %v8947_v18 }
 0x44d   : > { %10390 = vst [vmem:[#allocation48_spill] sm:$0xff] %v8933_v28 }
 0x44e   : > { %v3569_v15 = vpop.f32.mrf.mxu2  ;;  %v4099_v29 = vpop.f32.mrf.mxu0  ;;  %10394 = vst [vmem:[#allocation78_spill] sm:$0xff] %v8953_v0 }
 0x44f   : > { %v3570_v3 = vadd.f32 %v3569_v15, %v3357_v45  ;;  %v3815_v7 = vpop.f32.mrf.mxu3  ;;  %v3360_v53 = vpop.f32.mrf.mxu1 }
 0x451   : > { %v3897_v58 = vadd.f32 %v3815_v7, %v3570_v3  ;;  %6401 = vmatmul.msk.f32.gmra.mxu0 %vm204_vm1, %v8937_v33 }
 0x452   : > { %6299 = vmatmul.msk.f32.gmra.mxu1 %vm204_vm1, %v8939_v34  ;;  %v8971_v34 = vld [vmem:[#allocation2 + $0x139] sm:$0xff] }
 0x453   : > { %6332 = vmatmul.msk.f32.gmra.mxu2 %vm204_vm1, %v8889_v63  ;;  %v8949_v27 = vadd.f32 %v4093_v14, %v3897_v58  ;;  %v8963_v14 = vld [vmem:[#allocation2 + $0x12a] sm:$0xff]  ;;  %v8969_v63 = vld [vmem:[#allocation2 + $0x158] sm:$0xff]  ;;  %10398 = vst [vmem:[#allocation85_spill] sm:$0xff] %v8971_v34 }
 0x454   : > { %6366 = vmatmul.msk.f32.gmra.mxu3 %vm204_vm1, %v8947_v18  ;;  %10396 = vst [vmem:[#allocation83_spill] sm:$0xff] %v8963_v14 }
 0x455   : > { %10393 = vst [vmem:[#allocation80_spill] sm:$0xff] %v8949_v27 }
 0x456   : > { %v3572_v45 = vpop.f32.mrf.mxu2  ;;  %v4102_v7 = vpop.f32.mrf.mxu0 }
 0x457   : > { %v3573_v15 = vadd.f32 %v3572_v45, %v3360_v53  ;;  %v3818_v3 = vpop.f32.mrf.mxu3  ;;  %v3363_v28 = vpop.f32.mrf.mxu1 }
 0x459   : > { %v3898_v56 = vadd.f32 %v3818_v3, %v3573_v15  ;;  %6402 = vmatmul.msk.f32.gmra.mxu0 %vm204_vm1, %v8953_v0 }
 0x45a   : > { %6300 = vmatmul.msk.f32.gmra.mxu1 %vm204_vm1, %v8955_v39  ;;  %v9013_v39 = vld [vmem:[#allocation2 + $0x151] sm:$0xff] }
 0x45b   : > { %6333 = vmatmul.msk.f32.gmra.mxu2 %vm204_vm1, %v8905_v62  ;;  %v8965_v58 = vadd.f32 %v4096_v46, %v3898_v56  ;;  %v8979_v46 = vld [vmem:[#allocation2 + $0x13a] sm:$0xff]  ;;  %v8985_v62 = vld [vmem:[#allocation2 + $0x168] sm:$0xff] }
 0x45c   : > { %6367 = vmatmul.msk.f32.gmra.mxu3 %vm204_vm1, %v8963_v14  ;;  %10399 = vst [vmem:[#allocation86_spill] sm:$0xff] %v8979_v46 }
 0x45d   : > { %10397 = vst [vmem:[#allocation81_spill] sm:$0xff] %v8965_v58 }
 0x45e   : > { %v3575_v53 = vpop.f32.mrf.mxu2  ;;  %v4105_v3 = vpop.f32.mrf.mxu0 }
 0x45f   : > { %v3576_v45 = vadd.f32 %v3575_v53, %v3363_v28  ;;  %v3821_v15 = vpop.f32.mrf.mxu3  ;;  %v3366_v27 = vpop.f32.mrf.mxu1 }
 0x461   : > { %v3899_v18 = vadd.f32 %v3821_v15, %v3576_v45  ;;  %6403 = vmatmul.msk.f32.gmra.mxu0 %vm204_vm1, %v8969_v63 }
 0x462   : > { %6301 = vmatmul.msk.f32.gmra.mxu1 %vm204_vm1, %v8971_v34  ;;  %v6442_v34 = vld [vmem:[%s10021_s2 + $0x14] sm:$0xf] }
 0x463   : > { %6334 = vmatmul.msk.f32.gmra.mxu2 %vm204_vm1, %v8921_v5  ;;  %v8981_v56 = vadd.f32 %v4099_v29, %v3899_v18  ;;  %v6510_v29 = vld [vmem:[%s10021_s2 + $0x1c] sm:$0xf]  ;;  %v8993_v18 = vld [vmem:[#allocation2 + $0x141] sm:$0xff] }
 0x464   : > { %6368 = vmatmul.msk.f32.gmra.mxu3 %vm204_vm1, %v8979_v46  ;;  %10401 = vst [vmem:[#allocation84_spill] sm:$0xff] %v8993_v18  ;;  %6443 = vmatpush.msk.msra.mxu2 %vm481_vm0, %v6442_v34 }
 0x465   : > { %10400 = vst [vmem:[#allocation88_spill] sm:$0xff] %v8981_v56  ;;  %6511 = vmatpush.msk.msra.mxu0 %vm481_vm0, %v6510_v29 }
 0x466   : > { %v3578_v28 = vpop.f32.mrf.mxu2  ;;  %v4108_v15 = vpop.f32.mrf.mxu0 }
 0x467   : > { %v3579_v53 = vadd.f32 %v3578_v28, %v3366_v27  ;;  %v3824_v45 = vpop.f32.mrf.mxu3  ;;  %v3369_v58 = vpop.f32.mrf.mxu1  ;;  %v6476_v27 = vld [vmem:[%s10021_s2 + $0x18] sm:$0xf]  ;;  %v9005_v28 = vld [vmem:[#allocation2 + $0x142] sm:$0xff] }
 0x468   : > { %10402 = vst [vmem:[#allocation89_spill] sm:$0xff] %v9005_v28  ;;  %6477 = vmatpush.msk.msra.mxu3 %vm481_vm0, %v6476_v27 }
 0x469   : > { %v3900_v14 = vadd.f32 %v3824_v45, %v3579_v53  ;;  %6404 = vmatmul.msk.f32.gmra.mxu0 %vm204_vm1, %v8985_v62 }
 0x46a   : > { %6302 = vmatmul.msk.f32.gmra.mxu1 %vm204_vm1, %v8993_v18 }
 0x46b   : > { %6335 = vmatmul.msk.f32.gmra.mxu2 %vm204_vm1, %v8937_v33  ;;  %v9007_v53 = vadd.f32 %v4102_v7, %v3900_v14  ;;  %v9021_v7 = vld [vmem:[#allocation2 + $0x152] sm:$0xff] }
 0x46c   : > { %6369 = vmatmul.msk.f32.gmra.mxu3 %vm204_vm1, %v9005_v28  ;;  %10404 = vst [vmem:[#allocation50_spill] sm:$0xff] %v9021_v7  ;;  %v9031_v28 = vld [vmem:[#allocation2 + $0x180] sm:$0xff] }
 0x46d   : > { %10403 = vst [vmem:[#allocation91_spill] sm:$0xff] %v9007_v53 }
 0x46e   : > { %v3581_v34 = vpop.f32.mrf.mxu2  ;;  %v4111_v46 = vpop.f32.mrf.mxu0  ;;  %10406 = vst [vmem:[#allocation87_spill] sm:$0xff] %v9031_v28 }
 0x46f   : > { %v3582_v45 = vadd.f32 %v3581_v34, %v3369_v58  ;;  %v3827_v56 = vpop.f32.mrf.mxu3  ;;  %v3372_v5 = vpop.f32.mrf.mxu1  ;;  %v6544_v58 = vld [vmem:[%s10021_s2 + $0x20] sm:$0xf] }
 0x470   : > { %6545 = vmatpush.msk.msra.mxu1 %vm481_vm0, %v6544_v58 }
 0x471   : > { %v3901_v18 = vadd.f32 %v3827_v56, %v3582_v45  ;;  %6405 = vmatmul.msk.f32.gmra.mxu0 %vm204_vm1, %v8607_v23 }
 0x472   : > { %6303 = vmatmul.msk.f32.gmra.mxu1 %vm204_vm1, %v9013_v39 }
 0x473   : > { %6336 = vmatmul.msk.f32.gmra.mxu2 %vm204_vm1, %v8953_v0  ;;  %v9023_v14 = vadd.f32 %v4105_v3, %v3901_v18  ;;  %v9033_v0 = vld [vmem:[#allocation2 + $0x159] sm:$0xff] }
 0x474   : > { %6370 = vmatmul.msk.f32.gmra.mxu3 %vm204_vm1, %v9021_v7  ;;  %v9041_v3 = vld [vmem:[#allocation2 + $0x15a] sm:$0xff]  ;;  %v9049_v7 = vld [vmem:[#allocation2 + $0x169] sm:$0xff] }
 0x475   : > { %10405 = vst [vmem:[#allocation53_spill] sm:$0xff] %v9023_v14 }
 0x476   : > { %v3584_v56 = vpop.f32.mrf.mxu2  ;;  %v4114_v34 = vpop.f32.mrf.mxu0  ;;  %10407 = vst [vmem:[#allocation93_spill] sm:$0xff] %v9041_v3 }
 0x477   : > { %v3585_v29 = vadd.f32 %v3584_v56, %v3372_v5  ;;  %v3830_v27 = vpop.f32.mrf.mxu3  ;;  %v3375_v45 = vpop.f32.mrf.mxu1 }
 0x479   : > { %v3902_v53 = vadd.f32 %v3830_v27, %v3585_v29  ;;  %6406 = vmatmul.msk.f32.gmra.mxu0 %vm204_vm1, %v9031_v28  ;;  %v9047_v28 = vld [vmem:[#allocation2 + $0x188] sm:$0xff] }
 0x47a   : > { %6304 = vmatmul.msk.f32.gmra.mxu1 %vm204_vm1, %v9033_v0  ;;  %10409 = vst [vmem:[#allocation90_spill] sm:$0xff] %v9047_v28 }
 0x47b   : > { %6337 = vmatmul.msk.f32.gmra.mxu2 %vm204_vm1, %v8969_v63  ;;  %v9043_v5 = vadd.f32 %v4108_v15, %v3902_v53  ;;  %v9057_v15 = vld [vmem:[#allocation2 + $0x16a] sm:$0xff] }
 0x47c   : > { %6371 = vmatmul.msk.f32.gmra.mxu3 %vm204_vm1, %v9041_v3  ;;  %10410 = vst [vmem:[#allocation92_spill] sm:$0xff] %v9057_v15 }
 0x47d   : > { %10408 = vst [vmem:[#allocation94_spill] sm:$0xff] %v9043_v5 }
 0x47e   : > { %v3587_v18 = vpop.f32.mrf.mxu2  ;;  %v4117_v29 = vpop.f32.mrf.mxu0 }
 0x47f   : > { %v3588_v58 = vadd.f32 %v3587_v18, %v3375_v45  ;;  %v3833_v56 = vpop.f32.mrf.mxu3  ;;  %v3378_v27 = vpop.f32.mrf.mxu1 }
 0x481   : > { %v3903_v14 = vadd.f32 %v3833_v56, %v3588_v58  ;;  %6407 = vmatmul.msk.f32.gmra.mxu0 %vm204_vm1, %v9047_v28  ;;  %v9063_v28 = vld [vmem:[#allocation2 + $0x171] sm:$0xff] }
 0x482   : > { %6305 = vmatmul.msk.f32.gmra.mxu1 %vm204_vm1, %v9049_v7 }
 0x483   : > { %6338 = vmatmul.msk.f32.gmra.mxu2 %vm204_vm1, %v8985_v62  ;;  %v9059_v53 = vadd.f32 %v4111_v46, %v3903_v14  ;;  %v9071_v46 = vld [vmem:[#allocation2 + $0x172] sm:$0xff] }
 0x484   : > { %6372 = vmatmul.msk.f32.gmra.mxu3 %vm204_vm1, %v9057_v15  ;;  %10412 = vst [vmem:[#allocation97_spill] sm:$0xff] %v9071_v46 }
 0x485   : > { %10411 = vst [vmem:[#allocation96_spill] sm:$0xff] %v9059_v53 }
 0x486   : > { %v3590_v45 = vpop.f32.mrf.mxu2  ;;  %v4120_v56 = vpop.f32.mrf.mxu0 }
 0x487   : > { %v3591_v18 = vadd.f32 %v3590_v45, %v3378_v27  ;;  %v3836_v58 = vpop.f32.mrf.mxu3  ;;  %v3381_v5 = vpop.f32.mrf.mxu1 }
 0x489   : > { %v3904_v3 = vadd.f32 %v3836_v58, %v3591_v18  ;;  %6512 = vmatmul.msk.f32.vlgmr.msra.gmra.mxu0 %vm204_vm1, %v8645_v25 }
 0x48a   : > { %6306 = vmatmul.msk.f32.gmra.mxu1 %vm204_vm1, %v9063_v28 }
 0x48b   : > { %6339 = vmatmul.msk.f32.gmra.mxu2 %vm204_vm1, %v8607_v23  ;;  %v9075_v14 = vadd.f32 %v4114_v34, %v3904_v3 }
 0x48c   : > { %6373 = vmatmul.msk.f32.gmra.mxu3 %vm204_vm1, %v9071_v46 }
 0x48d   : > { %10413 = vst [vmem:[#allocation95_spill] sm:$0xff] %v9075_v14 }
 0x48e   : > { %v3593_v27 = vpop.f32.mrf.mxu2  ;;  %v4123_v58 = vpop.f32.mrf.mxu0 }
 0x48f   : > { %v3594_v45 = vadd.f32 %v3593_v27, %v3381_v5  ;;  %v3839_v18 = vpop.f32.mrf.mxu3  ;;  %v3384_v53 = vpop.f32.mrf.mxu1 }
 0x491   : > { %v3905_v15 = vadd.f32 %v3839_v18, %v3594_v45  ;;  %6513 = vmatmul.msk.f32.gmra.mxu0 %vm204_vm1, %v8659_v11 }
 0x492   : > { %6410 = vmatmul.msk.f32.vlgmr.msrb.gmra.mxu1 %vm204_vm1, %v8610_v47 }
 0x493   : > { %6444 = vmatmul.msk.f32.vlgmr.msra.gmra.mxu2 %vm204_vm1, %v8619_v44  ;;  %v9085_v34 = vadd.f32 %v4117_v29, %v3905_v15 }
 0x494   : > { %6478 = vmatmul.msk.f32.vlgmr.msra.gmra.mxu3 %vm204_vm1, %v8569_v4 }
 0x496   : > { %v3596_v3 = vpop.f32.mrf.mxu2  ;;  %v4126_v14 = vpop.f32.mrf.mxu0 }
 0x497   : > { %v3597_v5 = vadd.f32 %v3596_v3, %v3384_v53  ;;  %v3842_v27 = vpop.f32.mrf.mxu3  ;;  %v3387_v46 = vpop.f32.mrf.mxu1 }
 0x499   : > { %v3906_v45 = vadd.f32 %v3842_v27, %v3597_v5  ;;  %6514 = vmatmul.msk.f32.gmra.mxu0 %vm204_vm1, %v8673_v21 }
 0x49a   : > { %6411 = vmatmul.msk.f32.gmra.mxu1 %vm204_vm1, %v8630_v22 }
 0x49b   : > { %6445 = vmatmul.msk.f32.gmra.mxu2 %vm204_vm1, %v8638_v36  ;;  %v9095_v4 = vadd.f32 %v4120_v56, %v3906_v45 }
 0x49c   : > { %6479 = vmatmul.msk.f32.gmra.mxu3 %vm204_vm1, %v8554_v30 }
 0x49e   : > { %v3599_v47 = vpop.f32.mrf.mxu2  ;;  %v4129_v15 = vpop.f32.mrf.mxu0 }
 0x49f   : > { %v3600_v44 = vadd.f32 %v3599_v47, %v3387_v46  ;;  %v3845_v29 = vpop.f32.mrf.mxu3  ;;  %v3390_v53 = vpop.f32.mrf.mxu1 }
 0x4a1   : > { %v3907_v18 = vadd.f32 %v3845_v29, %v3600_v44  ;;  %6515 = vmatmul.msk.f32.gmra.mxu0 %vm204_vm1, %v8687_v52 }
 0x4a2   : > { %6412 = vmatmul.msk.f32.gmra.mxu1 %vm204_vm1, %v8645_v25 }
 0x4a3   : > { %6446 = vmatmul.msk.f32.gmra.mxu2 %vm204_vm1, %v8653_v6  ;;  %v9105_v30 = vadd.f32 %v4123_v58, %v3907_v18 }
 0x4a4   : > { %6480 = vmatmul.msk.f32.gmra.mxu3 %vm204_vm1, %v8628_v32 }
 0x4a6   : > { %v3602_v22 = vpop.f32.mrf.mxu2  ;;  %v4132_v46 = vpop.f32.mrf.mxu0 }
 0x4a7   : > { %v3603_v36 = vadd.f32 %v3602_v22, %v3390_v53  ;;  %v3848_v56 = vpop.f32.mrf.mxu3  ;;  %v3393_v3 = vpop.f32.mrf.mxu1 }
 0x4a9   : > { %v3908_v5 = vadd.f32 %v3848_v56, %v3603_v36  ;;  %6516 = vmatmul.msk.f32.gmra.mxu0 %vm204_vm1, %v8701_v12 }
 0x4aa   : > { %6413 = vmatmul.msk.f32.gmra.mxu1 %vm204_vm1, %v8659_v11 }
 0x4ab   : > { %6447 = vmatmul.msk.f32.gmra.mxu2 %vm204_vm1, %v8667_v37  ;;  %v9115_v32 = vadd.f32 %v4126_v14, %v3908_v5 }
 0x4ac   : > { %6481 = vmatmul.msk.f32.gmra.mxu3 %vm204_vm1, %v8643_v57 }
 0x4ae   : > { %v3605_v25 = vpop.f32.mrf.mxu2  ;;  %v4135_v27 = vpop.f32.mrf.mxu0 }
 0x4af   : > { %v3606_v6 = vadd.f32 %v3605_v25, %v3393_v3  ;;  %v3851_v58 = vpop.f32.mrf.mxu3  ;;  %v3396_v45 = vpop.f32.mrf.mxu1 }
 0x4b1   : > { %v3909_v47 = vadd.f32 %v3851_v58, %v3606_v6  ;;  %6517 = vmatmul.msk.f32.gmra.mxu0 %vm204_vm1, %v8715_v55 }
 0x4b2   : > { %6414 = vmatmul.msk.f32.gmra.mxu1 %vm204_vm1, %v8673_v21 }
 0x4b3   : > { %6448 = vmatmul.msk.f32.gmra.mxu2 %vm204_vm1, %v8681_v61  ;;  %v9125_v57 = vadd.f32 %v4129_v15, %v3909_v47 }
 0x4b4   : > { %6482 = vmatmul.msk.f32.gmra.mxu3 %vm204_vm1, %v8657_v43 }
 0x4b6   : > { %v3608_v11 = vpop.f32.mrf.mxu2  ;;  %v4138_v44 = vpop.f32.mrf.mxu0 }
 0x4b7   : > { %v3609_v37 = vadd.f32 %v3608_v11, %v3396_v45  ;;  %v3854_v14 = vpop.f32.mrf.mxu3  ;;  %v3399_v29 = vpop.f32.mrf.mxu1 }
 0x4b9   : > { %v3910_v53 = vadd.f32 %v3854_v14, %v3609_v37  ;;  %6518 = vmatmul.msk.f32.gmra.mxu0 %vm204_vm1, %v8729_v59 }
 0x4ba   : > { %6415 = vmatmul.msk.f32.gmra.mxu1 %vm204_vm1, %v8687_v52 }
 0x4bb   : > { %6449 = vmatmul.msk.f32.gmra.mxu2 %vm204_vm1, %v8695_v48  ;;  %v9135_v43 = vadd.f32 %v4132_v46, %v3910_v53 }
 0x4bc   : > { %6483 = vmatmul.msk.f32.gmra.mxu3 %vm204_vm1, %v8671_v41 }
 0x4be   : > { %v3611_v21 = vpop.f32.mrf.mxu2  ;;  %v4141_v18 = vpop.f32.mrf.mxu0 }
 0x4bf   : > { %v3612_v61 = vadd.f32 %v3611_v21, %v3399_v29  ;;  %v3857_v15 = vpop.f32.mrf.mxu3  ;;  %v3402_v22 = vpop.f32.mrf.mxu1 }
 0x4c1   : > { %v3911_v36 = vadd.f32 %v3857_v15, %v3612_v61  ;;  %6519 = vmatmul.msk.f32.gmra.mxu0 %vm204_vm1, %v8743_v50 }
 0x4c2   : > { %6416 = vmatmul.msk.f32.gmra.mxu1 %vm204_vm1, %v8701_v12 }
 0x4c3   : > { %6450 = vmatmul.msk.f32.gmra.mxu2 %vm204_vm1, %v8709_v38  ;;  %v9145_v41 = vadd.f32 %v4135_v27, %v3911_v36 }
 0x4c4   : > { %6484 = vmatmul.msk.f32.gmra.mxu3 %vm204_vm1, %v8685_v35 }
 0x4c6   : > { %v3614_v52 = vpop.f32.mrf.mxu2  ;;  %v4144_v46 = vpop.f32.mrf.mxu0 }
 0x4c7   : > { %v3615_v48 = vadd.f32 %v3614_v52, %v3402_v22  ;;  %v3860_v56 = vpop.f32.mrf.mxu3  ;;  %v3405_v3 = vpop.f32.mrf.mxu1 }
 0x4c9   : > { %v3912_v5 = vadd.f32 %v3860_v56, %v3615_v48  ;;  %6520 = vmatmul.msk.f32.gmra.mxu0 %vm204_vm1, %v8757_v2 }
 0x4ca   : > { %6417 = vmatmul.msk.f32.gmra.mxu1 %vm204_vm1, %v8715_v55 }
 0x4cb   : > { %6451 = vmatmul.msk.f32.gmra.mxu2 %vm204_vm1, %v8723_v8  ;;  %v9155_v35 = vadd.f32 %v4138_v44, %v3912_v5 }
 0x4cc   : > { %6485 = vmatmul.msk.f32.gmra.mxu3 %vm204_vm1, %v8699_v16 }
 0x4ce   : > { %v3617_v12 = vpop.f32.mrf.mxu2  ;;  %v4147_v6 = vpop.f32.mrf.mxu0 }
 0x4cf   : > { %v3618_v38 = vadd.f32 %v3617_v12, %v3405_v3  ;;  %v3863_v25 = vpop.f32.mrf.mxu3  ;;  %v3408_v58 = vpop.f32.mrf.mxu1 }
 0x4d1   : > { %v3913_v27 = vadd.f32 %v3863_v25, %v3618_v38  ;;  %6521 = vmatmul.msk.f32.gmra.mxu0 %vm204_vm1, %v8771_v19 }
 0x4d2   : > { %6418 = vmatmul.msk.f32.gmra.mxu1 %vm204_vm1, %v8729_v59 }
 0x4d3   : > { %6452 = vmatmul.msk.f32.gmra.mxu2 %vm204_vm1, %v8737_v54  ;;  %v9165_v16 = vadd.f32 %v4141_v18, %v3913_v27 }
 0x4d4   : > { %6486 = vmatmul.msk.f32.gmra.mxu3 %vm204_vm1, %v8713_v51 }
 0x4d6   : > { %v3620_v55 = vpop.f32.mrf.mxu2  ;;  %v4150_v47 = vpop.f32.mrf.mxu0 }
 0x4d7   : > { %v3621_v8 = vadd.f32 %v3620_v55, %v3408_v58  ;;  %v3866_v45 = vpop.f32.mrf.mxu3  ;;  %v3411_v11 = vpop.f32.mrf.mxu1  ;;  %v10416_v55 = vld [vmem:[#allocation44_spill] sm:$0xff] }
 0x4d9   : > { %v3914_v37 = vadd.f32 %v3866_v45, %v3621_v8  ;;  %6522 = vmatmul.msk.f32.gmra.mxu0 %vm204_vm1, %v8785_v26  ;;  %v10418_v8 = vld [vmem:[#allocation34_spill] sm:$0xff] }
 0x4da   : > { %6419 = vmatmul.msk.f32.gmra.mxu1 %vm204_vm1, %v8743_v50 }
 0x4db   : > { %6453 = vmatmul.msk.f32.gmra.mxu2 %vm204_vm1, %v8751_v24  ;;  %v9175_v51 = vadd.f32 %v4144_v46, %v3914_v37 }
 0x4dc   : > { %6487 = vmatmul.msk.f32.gmra.mxu3 %vm204_vm1, %v8727_v40 }
 0x4de   : > { %v3623_v59 = vpop.f32.mrf.mxu2  ;;  %v4153_v44 = vpop.f32.mrf.mxu0 }
 0x4df   : > { %v3624_v54 = vadd.f32 %v3623_v59, %v3411_v11  ;;  %v3869_v14 = vpop.f32.mrf.mxu3  ;;  %v3414_v29 = vpop.f32.mrf.mxu1 }
 0x4e1   : > { %v3915_v53 = vadd.f32 %v3869_v14, %v3624_v54  ;;  %6523 = vmatmul.msk.f32.gmra.mxu0 %vm204_vm1, %v8799_v10 }
 0x4e2   : > { %6420 = vmatmul.msk.f32.gmra.mxu1 %vm204_vm1, %v8757_v2 }
 0x4e3   : > { %6454 = vmatmul.msk.f32.gmra.mxu2 %vm204_vm1, %v8765_v9  ;;  %v9185_v40 = vadd.f32 %v4147_v6, %v3915_v53 }
 0x4e4   : > { %6488 = vmatmul.msk.f32.gmra.mxu3 %vm204_vm1, %v8741_v42 }
 0x4e6   : > { %v3626_v50 = vpop.f32.mrf.mxu2  ;;  %v4156_v61 = vpop.f32.mrf.mxu0 }
 0x4e7   : > { %v3627_v24 = vadd.f32 %v3626_v50, %v3414_v29  ;;  %v3872_v21 = vpop.f32.mrf.mxu3  ;;  %v3417_v15 = vpop.f32.mrf.mxu1  ;;  %v10422_v29 = vld [vmem:[#allocation35_spill] sm:$0xff] }
 0x4e9   : > { %v3916_v18 = vadd.f32 %v3872_v21, %v3627_v24  ;;  %6524 = vmatmul.msk.f32.gmra.mxu0 %vm204_vm1, %v8813_v49 }
 0x4ea   : > { %6421 = vmatmul.msk.f32.gmra.mxu1 %vm204_vm1, %v8771_v19 }
 0x4eb   : > { %6455 = vmatmul.msk.f32.gmra.mxu2 %vm204_vm1, %v8779_v60  ;;  %v9195_v42 = vadd.f32 %v4150_v47, %v3916_v18 }
 0x4ec   : > { %6489 = vmatmul.msk.f32.gmra.mxu3 %vm204_vm1, %v8755_v13 }
 0x4ee   : > { %v3629_v2 = vpop.f32.mrf.mxu2  ;;  %v4159_v36 = vpop.f32.mrf.mxu0 }
 0x4ef   : > { %v3630_v9 = vadd.f32 %v3629_v2, %v3417_v15  ;;  %v3875_v22 = vpop.f32.mrf.mxu3  ;;  %v3420_v52 = vpop.f32.mrf.mxu1  ;;  %v10424_v2 = vld [vmem:[#allocation62_spill] sm:$0xff] }
 0x4f1   : > { %v3917_v48 = vadd.f32 %v3875_v22, %v3630_v9  ;;  %6525 = vmatmul.msk.f32.gmra.mxu0 %vm204_vm1, %v8827_v31  ;;  %v10426_v9 = vld [vmem:[#allocation38_spill] sm:$0xff]  ;;  %v10427_v22 = vld [vmem:[#allocation41_spill] sm:$0xff] }
 0x4f2   : > { %6422 = vmatmul.msk.f32.gmra.mxu1 %vm204_vm1, %v8785_v26  ;;  %v10414_v26 = vld [vmem:[#allocation37_spill] sm:$0xff] }
 0x4f3   : > { %6456 = vmatmul.msk.f32.gmra.mxu2 %vm204_vm1, %v8793_v17  ;;  %v9205_v13 = vadd.f32 %v4153_v44, %v3917_v48  ;;  %v10415_v17 = vld [vmem:[#allocation36_spill] sm:$0xff] }
 0x4f4   : > { %6490 = vmatmul.msk.f32.gmra.mxu3 %vm204_vm1, %v8769_v1  ;;  %v10420_v44 = vld [vmem:[#allocation60_spill] sm:$0xff] }
 0x4f6   : > { %v3632_v19 = vpop.f32.mrf.mxu2  ;;  %v4162_v46 = vpop.f32.mrf.mxu0 }
 0x4f7   : > { %v3633_v60 = vadd.f32 %v3632_v19, %v3420_v52  ;;  %v3878_v56 = vpop.f32.mrf.mxu3  ;;  %v3423_v3 = vpop.f32.mrf.mxu1 }
 0x4f9   : > { %v3918_v5 = vadd.f32 %v3878_v56, %v3633_v60  ;;  %6526 = vmatmul.msk.f32.gmra.mxu0 %vm204_vm1, %v8843_v20 }
 0x4fa   : > { %6423 = vmatmul.msk.f32.gmra.mxu1 %vm204_vm1, %v8799_v10  ;;  %v10417_v10 = vld [vmem:[#allocation67_spill] sm:$0xff] }
 0x4fb   : > { %6457 = vmatmul.msk.f32.gmra.mxu2 %vm204_vm1, %v10414_v26  ;;  %v9215_v1 = vadd.f32 %v4156_v61, %v3918_v5  ;;  %v10429_v5 = vld [vmem:[#allocation74_spill] sm:$0xff]  ;;  %v10431_v26 = vld [vmem:[#allocation40_spill] sm:$0xff] }
 0x4fc   : > { %6491 = vmatmul.msk.f32.gmra.mxu3 %vm204_vm1, %v10415_v17  ;;  %v10432_v17 = vld [vmem:[#allocation42_spill] sm:$0xff] }
 0x4fe   : > { %v3635_v12 = vpop.f32.mrf.mxu2  ;;  %v4165_v6 = vpop.f32.mrf.mxu0 }
 0x4ff   : > { %v3636_v38 = vadd.f32 %v3635_v12, %v3423_v3  ;;  %v3881_v25 = vpop.f32.mrf.mxu3  ;;  %v3426_v58 = vpop.f32.mrf.mxu1 }
 0x501   : > { %v3919_v27 = vadd.f32 %v3881_v25, %v3636_v38  ;;  %6527 = vmatmul.msk.f32.gmra.mxu0 %vm204_vm1, %v10416_v55 }
 0x502   : > { %6424 = vmatmul.msk.f32.gmra.mxu1 %vm204_vm1, %v8813_v49  ;;  %v10421_v49 = vld [vmem:[#allocation39_spill] sm:$0xff] }
 0x503   : > { %6458 = vmatmul.msk.f32.gmra.mxu2 %vm204_vm1, %v10417_v10  ;;  %v9225_v45 = vadd.f32 %v4159_v36, %v3919_v27 }
 0x504   : > { %6492 = vmatmul.msk.f32.gmra.mxu3 %vm204_vm1, %v10418_v8 }
 0x505   : > { %10419 = vst [vmem:[#allocation52_spill] sm:$0xff] %v9225_v45 }
 0x506   : > { %v3638_v47 = vpop.f32.mrf.mxu2  ;;  %v5184_v59 = vpop.f32.mrf.mxu0 }
 0x507   : > { %v3639_v11 = vadd.f32 %v3638_v47, %v3426_v58  ;;  %v3884_v37 = vpop.f32.mrf.mxu3  ;;  %v3429_v54 = vpop.f32.mrf.mxu1  ;;  %v10433_v47 = vld [vmem:[#allocation76_spill] sm:$0xff] }
 0x509   : > { %v3920_v14 = vadd.f32 %v3884_v37, %v3639_v11  ;;  %6528 = vmatmul.msk.f32.gmra.mxu0 %vm204_vm1, %v10420_v44  ;;  %v10435_v11 = vld [vmem:[#allocation45_spill] sm:$0xff]  ;;  %v10436_v37 = vld [vmem:[#allocation46_spill] sm:$0xff] }
 0x50a   : > { %6425 = vmatmul.msk.f32.gmra.mxu1 %vm204_vm1, %v8827_v31  ;;  %v10425_v31 = vld [vmem:[#allocation43_spill] sm:$0xff] }
 0x50b   : > { %6459 = vmatmul.msk.f32.gmra.mxu2 %vm204_vm1, %v10421_v49  ;;  %v9235_v53 = vadd.f32 %v4162_v46, %v3920_v14 }
 0x50c   : > { %6493 = vmatmul.msk.f32.gmra.mxu3 %vm204_vm1, %v10422_v29 }
 0x50d   : > { %10423 = vst [vmem:[#allocation55_spill] sm:$0xff] %v9235_v53 }
 0x50e   : > { %v3641_v50 = vpop.f32.mrf.mxu2  ;;  %v5187_v61 = vpop.f32.mrf.mxu0 }
 0x50f   : > { %v3642_v24 = vadd.f32 %v3641_v50, %v3429_v54  ;;  %v3887_v21 = vpop.f32.mrf.mxu3  ;;  %v4350_v15 = vpop.f32.mrf.mxu1 }
 0x510   : > { %v4446_v36 = vadd.f32 %v4350_v15, %v10427_v22  ;;  %v10437_v15 = vld [vmem:[#allocation51_spill] sm:$0xff] }
 0x511   : > { %v3921_v18 = vadd.f32 %v3887_v21, %v3642_v24  ;;  %6529 = vmatmul.msk.f32.gmra.mxu0 %vm204_vm1, %v10424_v2 }
 0x512   : > { %6426 = vmatmul.msk.f32.gmra.mxu1 %vm204_vm1, %v8843_v20  ;;  %v10430_v20 = vld [vmem:[#allocation47_spill] sm:$0xff] }
 0x513   : > { %6460 = vmatmul.msk.f32.gmra.mxu2 %vm204_vm1, %v10425_v31  ;;  %v9246_v52 = vadd.f32 %v4165_v6, %v3921_v18  ;;  %v10439_v18 = vld [vmem:[#allocation49_spill] sm:$0xff] }
 0x514   : > { %6494 = vmatmul.msk.f32.gmra.mxu3 %vm204_vm1, %v10426_v9 }
 0x515   : > { %10428 = vst [vmem:[#allocation54_spill] sm:$0xff] %v9246_v52 }
 0x516   : > { %v4628_v48 = vpop.f32.mrf.mxu2  ;;  %v5190_v56 = vpop.f32.mrf.mxu0 }
 0x517   : > { %v4724_v19 = vadd.f32 %v4628_v48, %v4446_v36  ;;  %v4906_v60 = vpop.f32.mrf.mxu3  ;;  %v4353_v46 = vpop.f32.mrf.mxu1 }
 0x518   : > { %v4447_v12 = vadd.f32 %v4353_v46, %v10432_v17 }
 0x519   : > { %v5002_v3 = vadd.f32 %v4906_v60, %v4724_v19  ;;  %6530 = vmatmul.msk.f32.gmra.mxu0 %vm204_vm1, %v10429_v5 }
 0x51a   : > { %6427 = vmatmul.msk.f32.gmra.mxu1 %vm204_vm1, %v10416_v55  ;;  %v10434_v55 = vld [vmem:[#allocation64_spill] sm:$0xff] }
 0x51b   : > { %6461 = vmatmul.msk.f32.gmra.mxu2 %vm204_vm1, %v10430_v20  ;;  %v9257_v38 = vadd.f32 %v5184_v59, %v5002_v3  ;;  %v10441_v3 = vld [vmem:[#allocation82_spill] sm:$0xff]  ;;  %v10443_v20 = vld [vmem:[#allocation65_spill] sm:$0xff] }
 0x51c   : > { %6495 = vmatmul.msk.f32.gmra.mxu3 %vm204_vm1, %v10431_v26 }
 0x51e   : > { %v4631_v25 = vpop.f32.mrf.mxu2  ;;  %v5193_v27 = vpop.f32.mrf.mxu0 }
 0x51f   : > { %v4725_v6 = vadd.f32 %v4631_v25, %v4447_v12  ;;  %v4909_v58 = vpop.f32.mrf.mxu3  ;;  %v4356_v10 = vpop.f32.mrf.mxu1 }
 0x520   : > { %v4448_v59 = vadd.f32 %v4356_v10, %v10436_v37 }
 0x521   : > { %v5003_v8 = vadd.f32 %v4909_v58, %v4725_v6  ;;  %6531 = vmatmul.msk.f32.gmra.mxu0 %vm204_vm1, %v10433_v47 }
 0x522   : > { %6428 = vmatmul.msk.f32.gmra.mxu1 %vm204_vm1, %v10420_v44  ;;  %v10438_v44 = vld [vmem:[#allocation70_spill] sm:$0xff] }
 0x523   : > { %6462 = vmatmul.msk.f32.gmra.mxu2 %vm204_vm1, %v10434_v55  ;;  %v9268_v54 = vadd.f32 %v5187_v61, %v5003_v8  ;;  %v10440_v61 = vld [vmem:[#allocation63_spill] sm:$0xff]  ;;  %v10445_v55 = vld [vmem:[#allocation85_spill] sm:$0xff] }
 0x524   : > { %6496 = vmatmul.msk.f32.gmra.mxu3 %vm204_vm1, %v10435_v11  ;;  %v10447_v11 = vld [vmem:[#allocation66_spill] sm:$0xff] }
 0x526   : > { %v4634_v14 = vpop.f32.mrf.mxu2  ;;  %v5196_v50 = vpop.f32.mrf.mxu0 }
 0x527   : > { %v4726_v49 = vadd.f32 %v4634_v14, %v4448_v59  ;;  %v4912_v29 = vpop.f32.mrf.mxu3  ;;  %v4359_v24 = vpop.f32.mrf.mxu1 }
 0x528   : > { %v4449_v31 = vadd.f32 %v4359_v24, %v10440_v61  ;;  %v10451_v61 = vld [vmem:[#allocation75_spill] sm:$0xff] }
 0x529   : > { %v5004_v21 = vadd.f32 %v4912_v29, %v4726_v49  ;;  %6532 = vmatmul.msk.f32.gmra.mxu0 %vm204_vm1, %v10437_v15 }
 0x52a   : > { %6429 = vmatmul.msk.f32.gmra.mxu1 %vm204_vm1, %v10424_v2  ;;  %v10442_v2 = vld [vmem:[#allocation72_spill] sm:$0xff] }
 0x52b   : > { %6463 = vmatmul.msk.f32.gmra.mxu2 %vm204_vm1, %v10438_v44  ;;  %v9279_v9 = vadd.f32 %v5190_v56, %v5004_v21  ;;  %v10444_v56 = vld [vmem:[#allocation71_spill] sm:$0xff] }
 0x52c   : > { %6497 = vmatmul.msk.f32.gmra.mxu3 %vm204_vm1, %v10439_v18  ;;  %v10449_v18 = vld [vmem:[#allocation84_spill] sm:$0xff] }
 0x52e   : > { %v4637_v22 = vpop.f32.mrf.mxu2  ;;  %v5199_v19 = vpop.f32.mrf.mxu0 }
 0x52f   : > { %v4727_v36 = vadd.f32 %v4637_v22, %v4449_v31  ;;  %v4915_v48 = vpop.f32.mrf.mxu3  ;;  %v4362_v60 = vpop.f32.mrf.mxu1 }
 0x530   : > { %v4450_v26 = vadd.f32 %v4362_v60, %v10444_v56 }
 0x531   : > { %v5005_v46 = vadd.f32 %v4915_v48, %v4727_v36  ;;  %6533 = vmatmul.msk.f32.gmra.mxu0 %vm204_vm1, %v10441_v3 }
 0x532   : > { %6430 = vmatmul.msk.f32.gmra.mxu1 %vm204_vm1, %v10429_v5  ;;  %v10446_v5 = vld [vmem:[#allocation77_spill] sm:$0xff] }
 0x533   : > { %6464 = vmatmul.msk.f32.gmra.mxu2 %vm204_vm1, %v10442_v2  ;;  %v9290_v17 = vadd.f32 %v5193_v27, %v5005_v46  ;;  %v10448_v27 = vld [vmem:[#allocation73_spill] sm:$0xff] }
 0x534   : > { %6498 = vmatmul.msk.f32.gmra.mxu3 %vm204_vm1, %v10443_v20 }
 0x536   : > { %v4640_v12 = vpop.f32.mrf.mxu2  ;;  %v5202_v58 = vpop.f32.mrf.mxu0 }
 0x537   : > { %v4728_v25 = vadd.f32 %v4640_v12, %v4450_v26  ;;  %v4918_v6 = vpop.f32.mrf.mxu3  ;;  %v4365_v10 = vpop.f32.mrf.mxu1 }
 0x538   : > { %v4451_v37 = vadd.f32 %v4365_v10, %v10448_v27 }
 0x539   : > { %v5006_v8 = vadd.f32 %v4918_v6, %v4728_v25  ;;  %6534 = vmatmul.msk.f32.gmra.mxu0 %vm204_vm1, %v10445_v55 }
 0x53a   : > { %6431 = vmatmul.msk.f32.gmra.mxu1 %vm204_vm1, %v10433_v47  ;;  %v10450_v47 = vld [vmem:[#allocation79_spill] sm:$0xff] }
 0x53b   : > { %6465 = vmatmul.msk.f32.gmra.mxu2 %vm204_vm1, %v10446_v5  ;;  %v9301_v59 = vadd.f32 %v5196_v50, %v5006_v8  ;;  %v10452_v50 = vld [vmem:[#allocation48_spill] sm:$0xff] }
 0x53c   : > { %6499 = vmatmul.msk.f32.gmra.mxu3 %vm204_vm1, %v10447_v11 }
 0x53e   : > { %v4643_v14 = vpop.f32.mrf.mxu2  ;;  %v5205_v24 = vpop.f32.mrf.mxu0 }
 0x53f   : > { %v4729_v49 = vadd.f32 %v4643_v14, %v4451_v37  ;;  %v4921_v29 = vpop.f32.mrf.mxu3  ;;  %v4368_v21 = vpop.f32.mrf.mxu1 }
 0x540   : > { %v4452_v31 = vadd.f32 %v4368_v21, %v10452_v50 }
 0x541   : > { %v5007_v44 = vadd.f32 %v4921_v29, %v4729_v49  ;;  %6535 = vmatmul.msk.f32.gmra.mxu0 %vm204_vm1, %v10449_v18 }
 0x542   : > { %6432 = vmatmul.msk.f32.gmra.mxu1 %vm204_vm1, %v10437_v15  ;;  %v10453_v15 = vld [vmem:[#allocation83_spill] sm:$0xff] }
 0x543   : > { %6466 = vmatmul.msk.f32.gmra.mxu2 %vm204_vm1, %v10450_v47  ;;  %v9312_v22 = vadd.f32 %v5199_v19, %v5007_v44  ;;  %v10454_v19 = vld [vmem:[#allocation80_spill] sm:$0xff] }
 0x544   : > { %6500 = vmatmul.msk.f32.gmra.mxu3 %vm204_vm1, %v10451_v61 }
 0x546   : > { %v4646_v36 = vpop.f32.mrf.mxu2  ;;  %v5208_v46 = vpop.f32.mrf.mxu0 }
 0x547   : > { %v4730_v48 = vadd.f32 %v4646_v36, %v4452_v31  ;;  %v4924_v60 = vpop.f32.mrf.mxu3  ;;  %v4371_v2 = vpop.f32.mrf.mxu1 }
 0x548   : > { %v4453_v56 = vadd.f32 %v4371_v2, %v10454_v19 }
 0x549   : > { %v5008_v20 = vadd.f32 %v4924_v60, %v4730_v48  ;;  %6536 = vmatmul.msk.f32.gmra.mxu0 %vm204_vm1, %v9013_v39 }
 0x54a   : > { %6433 = vmatmul.msk.f32.gmra.mxu1 %vm204_vm1, %v10441_v3  ;;  %v10455_v3 = vld [vmem:[#allocation86_spill] sm:$0xff] }
 0x54b   : > { %6467 = vmatmul.msk.f32.gmra.mxu2 %vm204_vm1, %v10453_v15  ;;  %v9323_v26 = vadd.f32 %v5202_v58, %v5008_v20  ;;  %v10457_v58 = vld [vmem:[#allocation81_spill] sm:$0xff] }
 0x54c   : > { %6501 = vmatmul.msk.f32.gmra.mxu3 %vm204_vm1, %v8937_v33  ;;  %v10456_v33 = vld [vmem:[#allocation78_spill] sm:$0xff] }
 0x54e   : > { %v4649_v12 = vpop.f32.mrf.mxu2  ;;  %v5211_v10 = vpop.f32.mrf.mxu0 }
 0x54f   : > { %v4731_v25 = vadd.f32 %v4649_v12, %v4453_v56  ;;  %v4927_v6 = vpop.f32.mrf.mxu3  ;;  %v4374_v8 = vpop.f32.mrf.mxu1 }
 0x550   : > { %v4454_v11 = vadd.f32 %v4374_v8, %v10457_v58 }
 0x551   : > { %v5009_v5 = vadd.f32 %v4927_v6, %v4731_v25  ;;  %6537 = vmatmul.msk.f32.gmra.mxu0 %vm204_vm1, %v9033_v0  ;;  %v5062_v6 = vld [vmem:[#allocation2 + $0x181] sm:$0xff] }
 0x552   : > { %6434 = vmatmul.msk.f32.gmra.mxu1 %vm204_vm1, %v10445_v55  ;;  %v10458_v55 = vld [vmem:[#allocation89_spill] sm:$0xff] }
 0x553   : > { %6468 = vmatmul.msk.f32.gmra.mxu2 %vm204_vm1, %v10455_v3  ;;  %v9334_v27 = vadd.f32 %v5205_v24, %v5009_v5  ;;  %v10459_v24 = vld [vmem:[#allocation88_spill] sm:$0xff] }
 0x554   : > { %6502 = vmatmul.msk.f32.gmra.mxu3 %vm204_vm1, %v10456_v33 }
 0x556   : > { %v4652_v37 = vpop.f32.mrf.mxu2  ;;  %v5214_v21 = vpop.f32.mrf.mxu0 }
 0x557   : > { %v4732_v14 = vadd.f32 %v4652_v37, %v4454_v11  ;;  %v4930_v49 = vpop.f32.mrf.mxu3  ;;  %v4377_v29 = vpop.f32.mrf.mxu1 }
 0x558   : > { %v4455_v47 = vadd.f32 %v4377_v29, %v10459_v24 }
 0x559   : > { %v5010_v44 = vadd.f32 %v4930_v49, %v4732_v14  ;;  %6538 = vmatmul.msk.f32.gmra.mxu0 %vm204_vm1, %v9049_v7  ;;  %v5063_v14 = vld [vmem:[#allocation2 + $0x189] sm:$0xff] }
 0x55a   : > { %6435 = vmatmul.msk.f32.gmra.mxu1 %vm204_vm1, %v10449_v18  ;;  %v10460_v18 = vld [vmem:[#allocation50_spill] sm:$0xff]  ;;  %v10465_v49 = vld [vmem:[#allocation87_spill] sm:$0xff] }
 0x55b   : > { %6469 = vmatmul.msk.f32.gmra.mxu2 %vm204_vm1, %v10458_v55  ;;  %v9345_v61 = vadd.f32 %v5208_v46, %v5010_v44 }
 0x55c   : > { %6503 = vmatmul.msk.f32.gmra.mxu3 %vm204_vm1, %v8969_v63  ;;  %v10461_v63 = vld [vmem:[#allocation91_spill] sm:$0xff] }
 0x55e   : > { %v4655_v50 = vpop.f32.mrf.mxu2  ;;  %v5217_v2 = vpop.f32.mrf.mxu0 }
 0x55f   : > { %v4733_v31 = vadd.f32 %v4655_v50, %v4455_v47  ;;  %v4933_v36 = vpop.f32.mrf.mxu3  ;;  %v4380_v48 = vpop.f32.mrf.mxu1 }
 0x560   : > { %v4456_v46 = vadd.f32 %v4380_v48, %v10461_v63  ;;  %v10468_v48 = vld [vmem:[#allocation90_spill] sm:$0xff] }
 0x561   : > { %v5011_v60 = vadd.f32 %v4933_v36, %v4733_v31  ;;  %6539 = vmatmul.msk.f32.gmra.mxu0 %vm204_vm1, %v9063_v28  ;;  %v5064_v36 = vld [vmem:[#allocation2 + $0x199] sm:$0xff] }
 0x562   : > { %6436 = vmatmul.msk.f32.gmra.mxu1 %vm204_vm1, %v9013_v39  ;;  %v10462_v39 = vld [vmem:[#allocation93_spill] sm:$0xff] }
 0x563   : > { %6470 = vmatmul.msk.f32.gmra.mxu2 %vm204_vm1, %v10460_v18  ;;  %v9356_v20 = vadd.f32 %v5211_v10, %v5011_v60  ;;  %v10469_v60 = vld [vmem:[#allocation96_spill] sm:$0xff] }
 0x564   : > { %6504 = vmatmul.msk.f32.gmra.mxu3 %vm204_vm1, %v8985_v62  ;;  %v10463_v62 = vld [vmem:[#allocation53_spill] sm:$0xff] }
 0x566   : > { %v4658_v15 = vpop.f32.mrf.mxu2  ;;  %v5220_v8 = vpop.f32.mrf.mxu0 }
 0x567   : > { %v4734_v19 = vadd.f32 %v4658_v15, %v4456_v46  ;;  %v4936_v56 = vpop.f32.mrf.mxu3  ;;  %v4383_v12 = vpop.f32.mrf.mxu1 }
 0x568   : > { %v4457_v10 = vadd.f32 %v4383_v12, %v10463_v62 }
 0x569   : > { %v5012_v25 = vadd.f32 %v4936_v56, %v4734_v19  ;;  %6540 = vmatmul.msk.f32.gmra.mxu0 %vm204_vm1, %v5062_v6 }
 0x56a   : > { %6437 = vmatmul.msk.f32.gmra.mxu1 %vm204_vm1, %v9033_v0  ;;  %v10464_v0 = vld [vmem:[#allocation92_spill] sm:$0xff] }
 0x56b   : > { %6471 = vmatmul.msk.f32.gmra.mxu2 %vm204_vm1, %v10462_v39  ;;  %v9366_v5 = vadd.f32 %v5214_v21, %v5012_v25  ;;  %v5065_v25 = vld [vmem:[#allocation2 + $0x1a1] sm:$0xff] }
 0x56c   : > { %6505 = vmatmul.msk.f32.gmra.mxu3 %vm204_vm1, %v8607_v23  ;;  %v10466_v23 = vld [vmem:[#allocation94_spill] sm:$0xff] }
 0x56d   : > { %v9388_v39 = vld [vmem:[#allocation2 + $0x182] sm:$0xff] }
 0x56e   : > { %v4661_v3 = vpop.f32.mrf.mxu2  ;;  %v5223_v44 = vpop.f32.mrf.mxu0 }
 0x56f   : > { %v4735_v33 = vadd.f32 %v4661_v3, %v4457_v10  ;;  %v4939_v58 = vpop.f32.mrf.mxu3  ;;  %v4386_v11 = vpop.f32.mrf.mxu1 }
 0x570   : > { %v4458_v29 = vadd.f32 %v4386_v11, %v10466_v23 }
 0x571   : > { %v5013_v37 = vadd.f32 %v4939_v58, %v4735_v33  ;;  %6541 = vmatmul.msk.f32.gmra.mxu0 %vm204_vm1, %v5063_v14 }
 0x572   : > { %6438 = vmatmul.msk.f32.gmra.mxu1 %vm204_vm1, %v9049_v7  ;;  %v10467_v7 = vld [vmem:[#allocation97_spill] sm:$0xff] }
 0x573   : > { %6472 = vmatmul.msk.f32.gmra.mxu2 %vm204_vm1, %v10464_v0  ;;  %v9376_v21 = vadd.f32 %v5217_v2, %v5013_v37 }
 0x574   : > { %6506 = vmatmul.msk.f32.gmra.mxu3 %vm204_vm1, %v10465_v49  ;;  %v9398_v49 = vld [vmem:[#allocation2 + $0x18a] sm:$0xff] }
 0x576   : > { %v4664_v55 = vpop.f32.mrf.mxu2  ;;  %v5226_v19 = vpop.f32.mrf.mxu0 }
 0x577   : > { %v4736_v24 = vadd.f32 %v4664_v55, %v4458_v29  ;;  %v4942_v47 = vpop.f32.mrf.mxu3  ;;  %v4389_v50 = vpop.f32.mrf.mxu1 }
 0x578   : > { %v4459_v2 = vadd.f32 %v4389_v50, %v10469_v60 }
 0x579   : > { %v5014_v31 = vadd.f32 %v4942_v47, %v4736_v24  ;;  %6542 = vmatmul.msk.f32.gmra.mxu0 %vm204_vm1, %v5064_v36 }
 0x57a   : > { %6439 = vmatmul.msk.f32.gmra.mxu1 %vm204_vm1, %v9063_v28  ;;  %v4786_v28 = vld [vmem:[#allocation2 + $0x198] sm:$0xff] }
 0x57b   : > { %6473 = vmatmul.msk.f32.gmra.mxu2 %vm204_vm1, %v10467_v7  ;;  %v9386_v18 = vadd.f32 %v5220_v8, %v5014_v31  ;;  %v10470_v8 = vld [vmem:[#allocation95_spill] sm:$0xff] }
 0x57c   : > { %6507 = vmatmul.msk.f32.gmra.mxu3 %vm204_vm1, %v10468_v48  ;;  %v5312_v31 = vld [vmem:[#allocation2 + $0x32] sm:$0xff] }
 0x57e   : > { %v4667_v63 = vpop.f32.mrf.mxu2  ;;  %v5229_v0 = vpop.f32.mrf.mxu0 }
 0x57f   : > { %v4737_v46 = vadd.f32 %v4667_v63, %v4459_v2  ;;  %v4945_v15 = vpop.f32.mrf.mxu3  ;;  %v4392_v56 = vpop.f32.mrf.mxu1 }
 0x580   : > { %v4460_v62 = vadd.f32 %v4392_v56, %v10470_v8 }
 0x581   : > { %v5015_v12 = vadd.f32 %v4945_v15, %v4737_v46  ;;  %6543 = vmatmul.msk.f32.gmra.mxu0 %vm204_vm1, %v5065_v25  ;;  %v5313_v46 = vld [vmem:[#allocation2 + $0x3a] sm:$0xff] }
 0x582   : > { %6440 = vmatmul.msk.f32.gmra.mxu1 %vm204_vm1, %v5062_v6  ;;  %v4787_v6 = vld [vmem:[#allocation2 + $0x1a0] sm:$0xff] }
 0x583   : > { %6474 = vmatmul.msk.f32.gmra.mxu2 %vm204_vm1, %v9388_v39  ;;  %v9396_v10 = vadd.f32 %v5223_v44, %v5015_v12 }
 0x584   : > { %6508 = vmatmul.msk.f32.gmra.mxu3 %vm204_vm1, %v4786_v28 }
 0x586   : > { %v4670_v3 = vpop.f32.mrf.mxu2  ;;  %v5232_v36 = vpop.f32.mrf.mxu0 }
 0x587   : > { %v4738_v33 = vadd.f32 %v4670_v3, %v4460_v62  ;;  %v4948_v58 = vpop.f32.mrf.mxu3  ;;  %v4395_v11 = vpop.f32.mrf.mxu1  ;;  %v5314_v62 = vld [vmem:[#allocation2 + $0x4a] sm:$0xff] }
 0x588   : > { %v4461_v23 = vadd.f32 %v4395_v11, %v9085_v34 }
 0x589   : > { %v5016_v37 = vadd.f32 %v4948_v58, %v4738_v33 }
 0x58a   : > { %6441 = vmatmul.msk.f32.gmra.mxu1 %vm204_vm1, %v5063_v14 }
 0x58b   : > { %6475 = vmatmul.msk.f32.gmra.mxu2 %vm204_vm1, %v9398_v49  ;;  %v9405_v29 = vadd.f32 %v5226_v19, %v5016_v37 }
 0x58c   : > { %6509 = vmatmul.msk.f32.gmra.mxu3 %vm204_vm1, %v4787_v6 }
 0x58e   : > { %v4673_v44 = vpop.f32.mrf.mxu2  ;;  %v5235_v56 = vpop.f32.mrf.mxu0 }
 0x58f   : > { %v4739_v55 = vadd.f32 %v4673_v44, %v4461_v23  ;;  %v4951_v24 = vpop.f32.mrf.mxu3  ;;  %v4398_v47 = vpop.f32.mrf.mxu1  ;;  %v5315_v23 = vld [vmem:[#allocation2 + $0x52] sm:$0xff] }
 0x590   : > { %v4462_v14 = vadd.f32 %v4398_v47, %v9095_v4 }
 0x591   : > { %v5017_v50 = vadd.f32 %v4951_v24, %v4739_v55 }
 0x592   : > { %6546 = vmatmul.msk.f32.vlgmr.msra.gmra.mxu1 %vm204_vm1, %v5312_v31 }
 0x593   : > { %v9409_v7 = vadd.f32 %v5229_v0, %v5017_v50 }
 0x596   : > { %v4676_v48 = vpop.f32.mrf.mxu2  ;;  %v5238_v0 = vpop.f32.mrf.mxu0 }
 0x597   : > { %v4740_v60 = vadd.f32 %v4676_v48, %v4462_v14  ;;  %v4954_v2 = vpop.f32.mrf.mxu3  ;;  %v4401_v63 = vpop.f32.mrf.mxu1  ;;  %v5316_v14 = vld [vmem:[#allocation2 + $0x62] sm:$0xff] }
 0x598   : > { %v4463_v15 = vadd.f32 %v4401_v63, %v9105_v30 }
 0x599   : > { %v5018_v34 = vadd.f32 %v4954_v2, %v4740_v60 }
 0x59a   : > { %6547 = vmatmul.msk.f32.gmra.mxu1 %vm204_vm1, %v5313_v46 }
 0x59b   : > { %v9413_v19 = vadd.f32 %v5232_v36, %v5018_v34 }
 0x59e   : > { %v4679_v12 = vpop.f32.mrf.mxu2  ;;  %v5241_v36 = vpop.f32.mrf.mxu0 }
 0x59f   : > { %v4741_v25 = vadd.f32 %v4679_v12, %v4463_v15  ;;  %v4957_v28 = vpop.f32.mrf.mxu3  ;;  %v4404_v8 = vpop.f32.mrf.mxu1  ;;  %v5317_v15 = vld [vmem:[#allocation2 + $0x6a] sm:$0xff] }
 0x5a0   : > { %v4464_v3 = vadd.f32 %v4404_v8, %v9115_v32  ;;  %v5319_v8 = vld [vmem:[#allocation2 + $0x82] sm:$0xff] }
 0x5a1   : > { %v5019_v4 = vadd.f32 %v4957_v28, %v4741_v25  ;;  %v5318_v28 = vld [vmem:[#allocation2 + $0x7a] sm:$0xff] }
 0x5a2   : > { %6548 = vmatmul.msk.f32.gmra.mxu1 %vm204_vm1, %v5314_v62  ;;  %v5320_v62 = vld [vmem:[#allocation2 + $0x92] sm:$0xff] }
 0x5a3   : > { %v9417_v33 = vadd.f32 %v5235_v56, %v5019_v4 }
 0x5a6   : > { %v4682_v58 = vpop.f32.mrf.mxu2  ;;  %v5244_v56 = vpop.f32.mrf.mxu0 }
 0x5a7   : > { %v4742_v11 = vadd.f32 %v4682_v58, %v4464_v3  ;;  %v4960_v37 = vpop.f32.mrf.mxu3  ;;  %v4407_v30 = vpop.f32.mrf.mxu1  ;;  %v5321_v58 = vld [vmem:[#allocation2 + $0x9a] sm:$0xff] }
 0x5a8   : > { %v4465_v44 = vadd.f32 %v4407_v30, %v9125_v57  ;;  %v5323_v30 = vld [vmem:[#allocation2 + $0xb2] sm:$0xff] }
 0x5a9   : > { %v5020_v6 = vadd.f32 %v4960_v37, %v4742_v11  ;;  %v5322_v37 = vld [vmem:[#allocation2 + $0xaa] sm:$0xff] }
 0x5aa   : > { %6549 = vmatmul.msk.f32.gmra.mxu1 %vm204_vm1, %v5315_v23  ;;  %v5324_v23 = vld [vmem:[#allocation2 + $0xc2] sm:$0xff] }
 0x5ab   : > { %v9421_v55 = vadd.f32 %v5238_v0, %v5020_v6 }
 0x5ae   : > { %v4685_v24 = vpop.f32.mrf.mxu2 }
 0x5af   : > { %v4743_v47 = vadd.f32 %v4685_v24, %v4465_v44  ;;  %v4963_v50 = vpop.f32.mrf.mxu3  ;;  %v4410_v31 = vpop.f32.mrf.mxu1  ;;  %v5325_v24 = vld [vmem:[#allocation2 + $0xca] sm:$0xff] }
 0x5b0   : > { %v4466_v48 = vadd.f32 %v4410_v31, %v9135_v43 }
 0x5b1   : > { %v5021_v32 = vadd.f32 %v4963_v50, %v4743_v47  ;;  %v5326_v50 = vld [vmem:[#allocation2 + $0xda] sm:$0xff] }
 0x5b2   : > { %6550 = vmatmul.msk.f32.gmra.mxu1 %vm204_vm1, %v5316_v14  ;;  %v5328_v14 = vld [vmem:[#allocation2 + $0xf2] sm:$0xff] }
 0x5b3   : > { %v9425_v60 = vadd.f32 %v5241_v36, %v5021_v32  ;;  %v5327_v32 = vld [vmem:[#allocation2 + $0xe2] sm:$0xff] }
 0x5b6   : > { %v4688_v2 = vpop.f32.mrf.mxu2 }
 0x5b7   : > { %v4744_v63 = vadd.f32 %v4688_v2, %v4466_v48  ;;  %v4966_v34 = vpop.f32.mrf.mxu3  ;;  %v9427_v46 = vpop.f32.mrf.mxu1  ;;  %v5329_v2 = vld [vmem:[#allocation2 + $0xfa] sm:$0xff] }
 0x5b9   : > { %v5022_v57 = vadd.f32 %v4966_v34, %v4744_v63  ;;  %v5330_v34 = vld [vmem:[#allocation2 + $0x10a] sm:$0xff] }
 0x5ba   : > { %6551 = vmatmul.msk.f32.gmra.mxu1 %vm204_vm1, %v5317_v15  ;;  %v5331_v15 = vld [vmem:[#allocation2 + $0x112] sm:$0xff] }
 0x5bb   : > { %v9430_v12 = vadd.f32 %v5244_v56, %v5022_v57 }
 0x5bf   : > { %v9432_v25 = vpop.f32.mrf.mxu1 }
 0x5c2   : > { %6552 = vmatmul.msk.f32.gmra.mxu1 %vm204_vm1, %v5318_v28  ;;  %v5332_v28 = vld [vmem:[#allocation2 + $0x122] sm:$0xff] }
 0x5c7   : > { %v9435_v43 = vpop.f32.mrf.mxu1 }
 0x5ca   : > { %6553 = vmatmul.msk.f32.gmra.mxu1 %vm204_vm1, %v5319_v8 }
 0x5cf   : > { %v9438_v4 = vpop.f32.mrf.mxu1 }
 0x5d2   : > { %6554 = vmatmul.msk.f32.gmra.mxu1 %vm204_vm1, %v5320_v62  ;;  %v5333_v62 = vld [vmem:[#allocation2 + $0x12a] sm:$0xff] }
 0x5d7   : > { %v9441_v3 = vpop.f32.mrf.mxu1 }
 0x5da   : > { %6555 = vmatmul.msk.f32.gmra.mxu1 %vm204_vm1, %v5321_v58 }
 0x5df   : > { %v9444_v11 = vpop.f32.mrf.mxu1 }
 0x5e2   : > { %6556 = vmatmul.msk.f32.gmra.mxu1 %vm204_vm1, %v5322_v37  ;;  %v5334_v37 = vld [vmem:[#allocation2 + $0x13a] sm:$0xff] }
 0x5e7   : > { %v9447_v0 = vpop.f32.mrf.mxu1 }
 0x5ea   : > { %6557 = vmatmul.msk.f32.gmra.mxu1 %vm204_vm1, %v5323_v30 }
 0x5ef   : > { %v9450_v6 = vpop.f32.mrf.mxu1 }
 0x5f2   : > { %6558 = vmatmul.msk.f32.gmra.mxu1 %vm204_vm1, %v5324_v23  ;;  %v5335_v23 = vld [vmem:[#allocation2 + $0x142] sm:$0xff] }
 0x5f7   : > { %v9453_v44 = vpop.f32.mrf.mxu1 }
 0x5f8   : > { %10471 = vst [vmem:[#allocation57_spill] sm:$0xff] %v9453_v44 }
 0x5fa   : > { %6559 = vmatmul.msk.f32.gmra.mxu1 %vm204_vm1, %v5325_v24 }
 0x5ff   : > { %v9456_v47 = vpop.f32.mrf.mxu1 }
 0x600   : > { %10472 = vst [vmem:[#allocation56_spill] sm:$0xff] %v9456_v47 }
 0x602   : > { %6560 = vmatmul.msk.f32.gmra.mxu1 %vm204_vm1, %v5326_v50 }
 0x607   : > { %v9459_v31 = vpop.f32.mrf.mxu1 }
 0x608   : > { %10473 = vst [vmem:[#allocation59_spill] sm:$0xff] %v9459_v31 }
 0x60a   : > { %6561 = vmatmul.msk.f32.gmra.mxu1 %vm204_vm1, %v5327_v32  ;;  %v5336_v32 = vld [vmem:[#allocation2 + $0x152] sm:$0xff] }
 0x60f   : > { %v9462_v36 = vpop.f32.mrf.mxu1 }
 0x612   : > { %6562 = vmatmul.msk.f32.gmra.mxu1 %vm204_vm1, %v5328_v14 }
 0x617   : > { %v9465_v48 = vpop.f32.mrf.mxu1 }
 0x61a   : > { %6563 = vmatmul.msk.f32.gmra.mxu1 %vm204_vm1, %v5329_v2 }
 0x61f   : > { %v9468_v63 = vpop.f32.mrf.mxu1 }
 0x622   : > { %6564 = vmatmul.msk.f32.gmra.mxu1 %vm204_vm1, %v5330_v34  ;;  %v5337_v34 = vld [vmem:[#allocation2 + $0x15a] sm:$0xff] }
 0x627   : > { %v9471_v57 = vpop.f32.mrf.mxu1 }
 0x62a   : > { %6565 = vmatmul.msk.f32.gmra.mxu1 %vm204_vm1, %v5331_v15 }
 0x62f   : > { %v9474_v56 = vpop.f32.mrf.mxu1 }
 0x632   : > { %6566 = vmatmul.msk.f32.gmra.mxu1 %vm204_vm1, %v5332_v28 }
 0x637   : > { %v9477_v8 = vpop.f32.mrf.mxu1 }
 0x638   : > { %v9592_v52 = vadd.f32 %v9477_v8, %v9312_v22 }
 0x63a   : > { %6567 = vmatmul.msk.f32.gmra.mxu1 %vm204_vm1, %v5333_v62  ;;  %v5338_v62 = vld [vmem:[#allocation2 + $0x16a] sm:$0xff] }
 0x63f   : > { %v9480_v58 = vpop.f32.mrf.mxu1 }
 0x642   : > { %6568 = vmatmul.msk.f32.gmra.mxu1 %vm204_vm1, %v5334_v37 }
 0x647   : > { %v9483_v30 = vpop.f32.mrf.mxu1 }
 0x64a   : > { %6569 = vmatmul.msk.f32.gmra.mxu1 %vm204_vm1, %v5335_v23  ;;  %v5339_v23 = vld [vmem:[#allocation2 + $0x172] sm:$0xff] }
 0x64f   : > { %v5486_v24 = vpop.f32.mrf.mxu1 }
 0x650   : > { %v9487_v50 = vadd.f32 %v5486_v24, %v9345_v61 }
 0x652   : > { %10474 = vst [vmem:[#allocation58_spill] sm:$0xff] %v9487_v50  ;;  %6570 = vmatmul.msk.f32.gmra.mxu1 %vm204_vm1, %v5336_v32 }
 0x657   : > { %v5489_v14 = vpop.f32.mrf.mxu1 }
 0x658   : > { %v9491_v2 = vadd.f32 %v5489_v14, %v9356_v20 }
 0x65a   : > { %10475 = vst [vmem:[#allocation61_spill] sm:$0xff] %v9491_v2  ;;  %6571 = vmatmul.msk.f32.gmra.mxu1 %vm204_vm1, %v5337_v34  ;;  %v5342_v34 = vld [vmem:[#allocation2 + $0x19a] sm:$0xff] }
 0x65f   : > { %v5492_v15 = vpop.f32.mrf.mxu1 }
 0x660   : > { %v9495_v28 = vadd.f32 %v5492_v15, %v9366_v5 }
 0x662   : > { %6572 = vmatmul.msk.f32.gmra.mxu1 %vm204_vm1, %v5338_v62  ;;  %v5343_v62 = vld [vmem:[#allocation2 + $0x1a2] sm:$0xff] }
 0x667   : > { %v5495_v37 = vpop.f32.mrf.mxu1 }
 0x668   : > { %v9499_v61 = vadd.f32 %v5495_v37, %v9376_v21  ;;  %v9523_v37 = vpop.f32.mrf.mxu2 }
 0x66a   : > { %6573 = vmatmul.msk.f32.gmra.mxu1 %vm204_vm1, %v5339_v23  ;;  %v9528_v23 = vpop.f32.mrf.mxu3 }
 0x66f   : > { %v5498_v24 = vpop.f32.mrf.mxu1 }
 0x670   : > { %v9503_v20 = vadd.f32 %v5498_v24, %v9386_v18 }
 0x672   : > { %6574 = vmatmul.msk.f32.gmra.mxu1 %vm204_vm1, %v9388_v39 }
 0x677   : > { %v5501_v32 = vpop.f32.mrf.mxu1 }
 0x678   : > { %v9508_v5 = vadd.f32 %v5501_v32, %v9396_v10  ;;  %v9530_v32 = vpop.f32.mrf.mxu0 }
 0x67a   : > { %6575 = vmatmul.msk.f32.gmra.mxu1 %vm204_vm1, %v9398_v49 }
 0x67f   : > { %v5504_v14 = vpop.f32.mrf.mxu1 }
 0x680   : > { %v9513_v21 = vadd.f32 %v5504_v14, %v9405_v29  ;;  %v9535_v14 = vpop.f32.mrf.mxu2 }
 0x682   : > { %6576 = vmatmul.msk.f32.gmra.mxu1 %vm204_vm1, %v5342_v34  ;;  %v9537_v34 = vpop.f32.mrf.mxu3 }
 0x687   : > { %v5507_v15 = vpop.f32.mrf.mxu1 }
 0x688   : > { %v9517_v18 = vadd.f32 %v5507_v15, %v9409_v7 }
 0x68a   : > { %6577 = vmatmul.msk.f32.gmra.mxu1 %vm204_vm1, %v5343_v62  ;;  %v9542_v62 = vpop.f32.mrf.mxu0 }
 0x68f   : > { %v5510_v39 = vpop.f32.mrf.mxu1 }
 0x690   : > { %v9521_v10 = vadd.f32 %v5510_v39, %v9413_v19  ;;  %v9548_v39 = vadd.f32 %v9465_v48, %v9268_v54  ;;  %v9567_v54 = vadd.f32 %v9471_v57, %v9290_v17  ;;  %v9579_v48 = vadd.f32 %v9474_v56, %v9301_v59 }
 0x692   : > { %10476 = vst [vmem:[#allocation37_spill] sm:$0xff] %v9548_v39  ;;  %v5661_v31 = vmul.f32 %v9548_v39, %v9548_v39 }
 0x693   : > { %10479 = vst [vmem:[#allocation67_spill] sm:$0xff] %v9567_v54 }
 0x694   : > { %v5693_v57 = vsel %vm204_vm1, %v5661_v31, 0.0  ;;  %v5595_v31 = vsel %vm204_vm1, %v9567_v54, 0.0 }
 0x697   : > { %v5513_v49 = vpop.f32.mrf.mxu1 }
 0x698   : > { %v9526_v29 = vadd.f32 %v5513_v49, %v9417_v33  ;;  %v9544_v33 = vpop.f32.mrf.mxu2 }
 0x69f   : > { %v5516_v24 = vpop.f32.mrf.mxu1 }
 0x6a0   : > { %v9533_v7 = vadd.f32 %v5516_v24, %v9421_v55  ;;  %v9552_v55 = vadd.f32 %v9462_v36, %v9257_v38  ;;  %v9556_v24 = vadd.f32 %v9468_v63, %v9279_v9  ;;  %v9571_v36 = vpop.f32.mrf.mxu0  ;;  %v5591_v9 = vsel %vm204_vm1, %v9548_v39, 0.0  ;;  %v9581_v63 = vpop.f32.mrf.mxu2 }
 0x6a1   : > { %v5663_v39 = vmul.f32 %v9567_v54, %v9567_v54 }
 0x6a2   : > { %10477 = vst [vmem:[#allocation36_spill] sm:$0xff] %v9552_v55  ;;  %v5660_v38 = vmul.f32 %v9552_v55, %v9552_v55  ;;  %v5590_v17 = vsel %vm204_vm1, %v9552_v55, 0.0  ;;  %v9604_v55 = vadd.f32 %v9480_v58, %v9323_v26  ;;  %v5599_v58 = vsel %vm204_vm1, %v9592_v52, 0.0 }
 0x6a3   : > { %10478 = vst [vmem:[#allocation44_spill] sm:$0xff] %v9556_v24  ;;  %v5592_v56 = vadd.f32 %v5591_v9, %v5590_v17  ;;  %v5697_v8 = vsel %vm204_vm1, %v5663_v39, 0.0  ;;  %v5665_v9 = vmul.f32 %v9592_v52, %v9592_v52 }
 0x6a4   : > { %v5692_v59 = vsel %vm204_vm1, %v5660_v38, 0.0  ;;  %10480 = vst [vmem:[#allocation34_spill] sm:$0xff] %v9604_v55  ;;  %v5597_v38 = vsel %vm204_vm1, %v9579_v48, 0.0  ;;  %v5666_v39 = vmul.f32 %v9604_v55, %v9604_v55 }
 0x6a5   : > { %v5694_v44 = vadd.f32 %v5693_v57, %v5692_v59 }
 0x6a7   : > { %v5519_v19 = vpop.f32.mrf.mxu1 }
 0x6a8   : > { %v9540_v15 = vadd.f32 %v5519_v19, %v9425_v60  ;;  %v9561_v19 = vpop.f32.mrf.mxu3  ;;  %v9622_v59 = vpop.f32.mrf.mxu0 }
 0x6af   : > { %v5522_v49 = vpop.f32.mrf.mxu1 }
 0x6b0   : > { %v9559_v60 = vadd.f32 %v5522_v49, %v9430_v12  ;;  %v5662_v12 = vmul.f32 %v9556_v24, %v9556_v24  ;;  %v5593_v49 = vsel %vm204_vm1, %v9556_v24, 0.0  ;;  %v5664_v24 = vmul.f32 %v9579_v48, %v9579_v48  ;;  %v9615_v17 = vpop.f32.mrf.mxu3 }
 0x6b1   : > { %v5594_v22 = vadd.f32 %v5593_v49, %v5592_v56  ;;  %v5701_v56 = vsel %vm204_vm1, %v5665_v9, 0.0 }
 0x6b2   : > { %v5695_v53 = vsel %vm204_vm1, %v5662_v12, 0.0  ;;  %v9613_v12 = vadd.f32 %v9483_v30, %v9334_v27  ;;  %v5699_v26 = vsel %vm204_vm1, %v5664_v24, 0.0  ;;  %v5601_v27 = vsel %vm204_vm1, %v9604_v55, 0.0 }
 0x6b3   : > { %v5696_v54 = vadd.f32 %v5695_v53, %v5694_v44  ;;  %v5596_v45 = vadd.f32 %v5595_v31, %v5594_v22  ;;  %v9629_v44 = vpop.f32.mrf.mxu2  ;;  %v5703_v22 = vsel %vm204_vm1, %v5666_v39, 0.0  ;;  %v5605_v55 = vsel %vm204_vm1, %v9487_v50, 0.0 }
 0x6b4   : > { %10481 = vst [vmem:[#allocation60_spill] sm:$0xff] %v9613_v12  ;;  %v5667_v53 = vmul.f32 %v9613_v12, %v9613_v12 }
 0x6b5   : > { %v5698_v57 = vadd.f32 %v5697_v8, %v5696_v54  ;;  %v5598_v49 = vadd.f32 %v5597_v38, %v5596_v45  ;;  %v5603_v45 = vsel %vm204_vm1, %v9613_v12, 0.0  ;;  %v5668_v54 = vmul.f32 %v9487_v50, %v9487_v50  ;;  %v9660_v50 = vpop.f32.mrf.mxu0 }
 0x6b6   : > { %v5705_v9 = vsel %vm204_vm1, %v5667_v53, 0.0  ;;  %v5670_v12 = vmul.f32 %v9495_v28, %v9495_v28 }
 0x6b7   : > { %v9595_v47 = vpop.f32.mrf.mxu1  ;;  %v5700_v30 = vadd.f32 %v5699_v26, %v5698_v57  ;;  %v5600_v24 = vadd.f32 %v5599_v58, %v5598_v49  ;;  %v5669_v26 = vmul.f32 %v9491_v2, %v9491_v2  ;;  %v5707_v39 = vsel %vm204_vm1, %v5668_v54, 0.0 }
 0x6b8   : > { %v5607_v49 = vsel %vm204_vm1, %v9491_v2, 0.0 }
 0x6b9   : > { %v5702_v8 = vadd.f32 %v5701_v56, %v5700_v30  ;;  %v5602_v38 = vadd.f32 %v5601_v27, %v5600_v24  ;;  %v4467_v56 = vadd.f32 %v9427_v46, %v9145_v41  ;;  %v9650_v27 = vpop.f32.mrf.mxu3  ;;  %v5709_v24 = vsel %vm204_vm1, %v5669_v26, 0.0 }
 0x6ba   : > { %v5711_v41 = vsel %vm204_vm1, %v5670_v12, 0.0  ;;  %v5611_v46 = vsel %vm204_vm1, %v9499_v61, 0.0  ;;  %v5673_v12 = vmul.f32 %v9508_v5, %v9508_v5 }
 0x6bb   : > { %v5704_v58 = vadd.f32 %v5703_v22, %v5702_v8  ;;  %v5604_v57 = vadd.f32 %v5603_v45, %v5602_v38  ;;  %v5609_v22 = vsel %vm204_vm1, %v9495_v28, 0.0  ;;  %v5671_v45 = vmul.f32 %v9499_v61, %v9499_v61  ;;  %v4706_v26 = vpop.f32.mrf.mxu2 }
 0x6bc   : > { %v4745_v54 = vadd.f32 %v9523_v37, %v4467_v56 }
 0x6bd   : > { %v5706_v53 = vadd.f32 %v5705_v9, %v5704_v58  ;;  %v5606_v30 = vadd.f32 %v5605_v55, %v5604_v57  ;;  %v5672_v55 = vmul.f32 %v9503_v20, %v9503_v20  ;;  %v4468_v9 = vadd.f32 %v9432_v25, %v9155_v35 }
 0x6be   : > { %v5713_v57 = vsel %vm204_vm1, %v5671_v45, 0.0  ;;  %v4469_v35 = vadd.f32 %v9435_v43, %v9165_v16  ;;  %v5675_v16 = vmul.f32 %v9517_v18, %v9517_v18  ;;  %v4470_v43 = vadd.f32 %v9438_v4, %v9175_v51 }
 0x6bf   : > { %v9631_v31 = vpop.f32.mrf.mxu1  ;;  %v5708_v8 = vadd.f32 %v5707_v39, %v5706_v53  ;;  %v5608_v38 = vadd.f32 %v5607_v49, %v5606_v30  ;;  %v5613_v39 = vsel %vm204_vm1, %v9503_v20, 0.0  ;;  %v5023_v49 = vadd.f32 %v9528_v23, %v4745_v54 }
 0x6c0   : > { %v4746_v56 = vadd.f32 %v9535_v14, %v4468_v9  ;;  %v5715_v25 = vsel %vm204_vm1, %v5672_v55, 0.0  ;;  %v5717_v23 = vsel %vm204_vm1, %v5673_v12, 0.0  ;;  %v5617_v14 = vsel %vm204_vm1, %v9513_v21, 0.0 }
 0x6c1   : > { %v5710_v58 = vadd.f32 %v5709_v24, %v5708_v8  ;;  %v5610_v37 = vadd.f32 %v5609_v22, %v5608_v38  ;;  %v5615_v24 = vsel %vm204_vm1, %v9508_v5, 0.0  ;;  %v5674_v22 = vmul.f32 %v9513_v21, %v9513_v21  ;;  %v4984_v54 = vpop.f32.mrf.mxu3 }
 0x6c2   : > { %v4747_v38 = vadd.f32 %v9544_v33, %v4469_v35  ;;  %v5301_v55 = vadd.f32 %v9530_v32, %v5023_v49  ;;  %v4471_v51 = vadd.f32 %v9441_v3, %v9185_v40  ;;  %v5262_v49 = vpop.f32.mrf.mxu0 }
 0x6c3   : > { %v5712_v53 = vadd.f32 %v5711_v41, %v5710_v58  ;;  %v5612_v30 = vadd.f32 %v5611_v46, %v5610_v37  ;;  %v5024_v58 = vadd.f32 %v9537_v34, %v4746_v56  ;;  %v5719_v33 = vsel %vm204_vm1, %v5674_v22, 0.0  ;;  %v4709_v35 = vpop.f32.mrf.mxu2 }
 0x6c4   : > { %v5619_v37 = vsel %vm204_vm1, %v9517_v18, 0.0  ;;  %v5025_v32 = vadd.f32 %v9561_v19, %v4747_v38  ;;  %v5721_v34 = vsel %vm204_vm1, %v5675_v16, 0.0  ;;  %v5621_v56 = vsel %vm204_vm1, %v9521_v10, 0.0 }
 0x6c5   : > { %v5714_v45 = vadd.f32 %v5713_v57, %v5712_v53  ;;  %v5614_v8 = vadd.f32 %v5613_v39, %v5612_v30  ;;  %v5676_v57 = vmul.f32 %v9521_v10, %v9521_v10  ;;  %v4748_v39 = vadd.f32 %v9581_v63, %v4470_v43 }
 0x6c6   : > { %v5677_v53 = vmul.f32 %v9526_v29, %v9526_v29  ;;  %v4749_v30 = vadd.f32 %v9629_v44, %v4471_v51  ;;  %v4472_v63 = vadd.f32 %v9444_v11, %v9195_v42  ;;  %v5623_v19 = vsel %vm204_vm1, %v9526_v29, 0.0 }
 0x6c7   : > { %v9658_v2 = vpop.f32.mrf.mxu1  ;;  %v5716_v41 = vadd.f32 %v5715_v25, %v5714_v45  ;;  %v5616_v46 = vadd.f32 %v5615_v24, %v5614_v8  ;;  %v5723_v25 = vsel %vm204_vm1, %v5676_v57, 0.0  ;;  %v5678_v24 = vmul.f32 %v9533_v7, %v9533_v7 }
 0x6c8   : > { %v5302_v22 = vadd.f32 %v9542_v62, %v5024_v58  ;;  %v5026_v45 = vadd.f32 %v9615_v17, %v4748_v39  ;;  %v4750_v8 = vadd.f32 %v4706_v26, %v4472_v63  ;;  %v5725_v42 = vsel %vm204_vm1, %v5677_v53, 0.0 }
 0x6c9   : > { %v5718_v4 = vadd.f32 %v5717_v23, %v5716_v41  ;;  %v5618_v12 = vadd.f32 %v5617_v14, %v5616_v46  ;;  %v5625_v11 = vsel %vm204_vm1, %v9533_v7, 0.0  ;;  %v5679_v23 = vmul.f32 %v9540_v15, %v9540_v15 }
 0x6ca   : > { %v9723_v14 = vadd.f32 %v9595_v47, %v5301_v55  ;;  %v5027_v16 = vadd.f32 %v9650_v27, %v4749_v30  ;;  %v5303_v17 = vadd.f32 %v9571_v36, %v5025_v32  ;;  %v5727_v41 = vsel %vm204_vm1, %v5678_v24, 0.0  ;;  %v4987_v55 = vpop.f32.mrf.mxu3 }
 0x6cb   : > { %v5720_v40 = vadd.f32 %v5719_v33, %v5718_v4  ;;  %v5620_v3 = vadd.f32 %v5619_v37, %v5618_v12  ;;  %v5627_v46 = vsel %vm204_vm1, %v9540_v15, 0.0  ;;  %v5680_v58 = vmul.f32 %v9559_v60, %v9559_v60  ;;  %v4712_v63 = vpop.f32.mrf.mxu2 }
 0x6cc   : > { %v9733_v33 = vadd.f32 %v9631_v31, %v5302_v22  ;;  %v5028_v47 = vadd.f32 %v4984_v54, %v4750_v8  ;;  %v5304_v57 = vadd.f32 %v9622_v59, %v5026_v45  ;;  %v5729_v36 = vsel %vm204_vm1, %v5679_v23, 0.0 }
 0x6cd   : > { %v5722_v44 = vadd.f32 %v5721_v34, %v5720_v40  ;;  %v5622_v38 = vadd.f32 %v5621_v56, %v5620_v3  ;;  %v5629_v39 = vsel %vm204_vm1, %v9559_v60, 0.0  ;;  %v5681_v51 = vmul.f32 %v9723_v14, %v9723_v14  ;;  %v5265_v34 = vpop.f32.mrf.mxu0 }
 0x6ce   : > { %v9742_v4 = vadd.f32 %v9658_v2, %v5303_v17  ;;  %v4473_v31 = vadd.f32 %v9447_v0, %v9205_v13  ;;  %v5305_v32 = vadd.f32 %v9660_v50, %v5027_v16  ;;  %v5731_v59 = vsel %vm204_vm1, %v5680_v58, 0.0 }
 0x6cf   : > { %v5534_v9 = vpop.f32.mrf.mxu1  ;;  %v5724_v43 = vadd.f32 %v5723_v25, %v5722_v44  ;;  %v5624_v62 = vadd.f32 %v5623_v19, %v5622_v38  ;;  %v5631_v56 = vsel %vm204_vm1, %v9723_v14, 0.0  ;;  %v5682_v53 = vmul.f32 %v9733_v33, %v9733_v33 }
 0x6d0   : > { %v9752_v30 = vadd.f32 %v5534_v9, %v5304_v57  ;;  %v4751_v2 = vadd.f32 %v4709_v35, %v4473_v31  ;;  %v5306_v13 = vadd.f32 %v5262_v49, %v5028_v47  ;;  %v5733_v0 = vsel %vm204_vm1, %v5681_v51, 0.0 }
 0x6d1   : > { %v5726_v37 = vadd.f32 %v5725_v42, %v5724_v43  ;;  %v5626_v27 = vadd.f32 %v5625_v11, %v5624_v62  ;;  %v5633_v50 = vsel %vm204_vm1, %v9733_v33, 0.0  ;;  %v5683_v25 = vmul.f32 %v9742_v4, %v9742_v4 }
 0x6d2   : > { %v5735_v9 = vsel %vm204_vm1, %v5682_v53, 0.0  ;;  %v5635_v35 = vsel %vm204_vm1, %v9742_v4, 0.0  ;;  %v5684_v49 = vmul.f32 %v9752_v30, %v9752_v30  ;;  %v5029_v42 = vadd.f32 %v4987_v55, %v4751_v2  ;;  %v4990_v43 = vpop.f32.mrf.mxu3 }
 0x6d3   : > { %v5728_v54 = vadd.f32 %v5727_v41, %v5726_v37  ;;  %v5628_v12 = vadd.f32 %v5627_v46, %v5626_v27  ;;  %v5737_v11 = vsel %vm204_vm1, %v5683_v25, 0.0  ;;  %v5637_v23 = vsel %vm204_vm1, %v9752_v30, 0.0  ;;  %v4715_v51 = vpop.f32.mrf.mxu2 }
 0x6d4   : > { %v5739_v41 = vsel %vm204_vm1, %v5684_v49, 0.0 }
 0x6d5   : > { %v5730_v40 = vadd.f32 %v5729_v36, %v5728_v54  ;;  %v5630_v3 = vadd.f32 %v5629_v39, %v5628_v12  ;;  %v5268_v37 = vpop.f32.mrf.mxu0  ;;  %v5307_v39 = vadd.f32 %v5265_v34, %v5029_v42  ;;  %v10482_v34 = vld [vmem:[#allocation52_spill] sm:$0xff] }
 0x6d7   : > { %v5537_v26 = vpop.f32.mrf.mxu1  ;;  %v5732_v24 = vadd.f32 %v5731_v59, %v5730_v40  ;;  %v5632_v22 = vadd.f32 %v5631_v56, %v5630_v3  ;;  %v10483_v3 = vld [vmem:[#allocation57_spill] sm:$0xff] }
 0x6d8   : > { %v9759_v19 = vadd.f32 %v5537_v26, %v5305_v32  ;;  %v4474_v26 = vadd.f32 %v9450_v6, %v9215_v1 }
 0x6d9   : > { %v5734_v44 = vadd.f32 %v5733_v0, %v5732_v24  ;;  %v5634_v38 = vadd.f32 %v5633_v50, %v5632_v22 }
 0x6da   : > { %v5685_v16 = vmul.f32 %v9759_v19, %v9759_v19  ;;  %v5639_v46 = vsel %vm204_vm1, %v9759_v19, 0.0  ;;  %v4752_v27 = vadd.f32 %v4712_v63, %v4474_v26  ;;  %v4993_v50 = vpop.f32.mrf.mxu3 }
 0x6db   : > { %v5736_v62 = vadd.f32 %v5735_v9, %v5734_v44  ;;  %v5636_v17 = vadd.f32 %v5635_v35, %v5634_v38  ;;  %v4718_v49 = vpop.f32.mrf.mxu2 }
 0x6dc   : > { %v5741_v57 = vsel %vm204_vm1, %v5685_v16, 0.0  ;;  %v5030_v56 = vadd.f32 %v4990_v43, %v4752_v27  ;;  %v10485_v16 = vld [vmem:[#allocation56_spill] sm:$0xff] }
 0x6dd   : > { %v5738_v47 = vadd.f32 %v5737_v11, %v5736_v62  ;;  %v5638_v55 = vadd.f32 %v5637_v23, %v5636_v17  ;;  %v5271_v35 = vpop.f32.mrf.mxu0  ;;  %v10484_v23 = vld [vmem:[#allocation55_spill] sm:$0xff] }
 0x6de   : > { %v5308_v22 = vadd.f32 %v5268_v37, %v5030_v56  ;;  %v4476_v43 = vadd.f32 %v10485_v16, %v10484_v23 }
 0x6df   : > { %v5540_v45 = vpop.f32.mrf.mxu1  ;;  %v5740_v1 = vadd.f32 %v5739_v41, %v5738_v47  ;;  %v5640_v6 = vadd.f32 %v5639_v46, %v5638_v55 }
 0x6e0   : > { %v9766_v8 = vadd.f32 %v5540_v45, %v5306_v13  ;;  %v4475_v13 = vadd.f32 %v10483_v3, %v10482_v34  ;;  %v4754_v26 = vadd.f32 %v4718_v49, %v4476_v43 }
 0x6e1   : > { %v5742_v32 = vadd.f32 %v5741_v57, %v5740_v1  ;;  %v10487_v1 = vld [vmem:[#allocation59_spill] sm:$0xff] }
 0x6e2   : > { %v5686_v58 = vmul.f32 %v9766_v8, %v9766_v8  ;;  %v5641_v36 = vsel %vm204_vm1, %v9766_v8, 0.0  ;;  %v4753_v24 = vadd.f32 %v4715_v51, %v4475_v13  ;;  %v4996_v46 = vpop.f32.mrf.mxu3  ;;  %v10486_v51 = vld [vmem:[#allocation54_spill] sm:$0xff] }
 0x6e3   : > { %v5642_v59 = vadd.f32 %v5641_v36, %v5640_v6  ;;  %v5032_v55 = vadd.f32 %v4996_v46, %v4754_v26  ;;  %v4721_v36 = vpop.f32.mrf.mxu2  ;;  %v4477_v6 = vadd.f32 %v10487_v1, %v10486_v51 }
 0x6e4   : > { %v5743_v54 = vsel %vm204_vm1, %v5686_v58, 0.0  ;;  %v5031_v44 = vadd.f32 %v4993_v50, %v4753_v24 }
 0x6e5   : > { %v5744_v63 = vadd.f32 %v5743_v54, %v5742_v32  ;;  %v5274_v57 = vpop.f32.mrf.mxu0  ;;  %v4755_v32 = vadd.f32 %v4721_v36, %v4477_v6 }
 0x6e6   : > { %v5309_v41 = vadd.f32 %v5271_v35, %v5031_v44 }
 0x6e7   : > { %v5543_v31 = vpop.f32.mrf.mxu1 }
 0x6e8   : > { %v9784_v12 = vadd.f32 %v5543_v31, %v5307_v39 }
 0x6ea   : > { %v5643_v53 = vsel %vm204_vm1, %v9784_v12, 0.0  ;;  %v5687_v2 = vmul.f32 %v9784_v12, %v9784_v12 }
 0x6eb   : > { %v5644_v40 = vadd.f32 %v5643_v53, %v5642_v59  ;;  %v5310_v59 = vadd.f32 %v5274_v57, %v5032_v55  ;;  %v10488_v55 = vld [vmem:[#allocation32_spill] sm:$0xff] }
 0x6ec   : > { %v5745_v0 = vsel %vm204_vm1, %v5687_v2, 0.0  ;;  %v4999_v2 = vpop.f32.mrf.mxu3 }
 0x6ed   : > { %v5746_v25 = vadd.f32 %v5745_v0, %v5744_v63  ;;  %v5033_v63 = vadd.f32 %v4999_v2, %v4755_v32  ;;  %v5277_v0 = vpop.f32.mrf.mxu0 }
 0x6ef   : > { %v5546_v45 = vpop.f32.mrf.mxu1 }
 0x6f0   : > { %v9793_v9 = vadd.f32 %v5546_v45, %v5308_v22 }
 0x6f2   : > { %v5645_v38 = vsel %vm204_vm1, %v9793_v9, 0.0  ;;  %v5688_v42 = vmul.f32 %v9793_v9, %v9793_v9 }
 0x6f3   : > { %v5646_v11 = vadd.f32 %v5645_v38, %v5644_v40 }
 0x6f4   : > { %v5747_v62 = vsel %vm204_vm1, %v5688_v42, 0.0 }
 0x6f5   : > { %v5748_v17 = vadd.f32 %v5747_v62, %v5746_v25  ;;  %v5311_v25 = vadd.f32 %v5277_v0, %v5033_v63 }
 0x6f7   : > { %v5549_v58 = vpop.f32.mrf.mxu1 }
 0x6f8   : > { %v9802_v47 = vadd.f32 %v5549_v58, %v5309_v41 }
 0x6fa   : > { %v5647_v37 = vsel %vm204_vm1, %v9802_v47, 0.0  ;;  %v5689_v27 = vmul.f32 %v9802_v47, %v9802_v47 }
 0x6fb   : > { %v5648_v39 = vadd.f32 %v5647_v37, %v5646_v11 }
 0x6fc   : > { %v5749_v31 = vsel %vm204_vm1, %v5689_v27, 0.0 }
 0x6fd   : > { %v5750_v54 = vadd.f32 %v5749_v31, %v5748_v17 }
 0x6ff   : > { %v5552_v56 = vpop.f32.mrf.mxu1 }
 0x700   : > { %v9811_v53 = vadd.f32 %v5552_v56, %v5310_v59 }
 0x702   : > { %v5649_v40 = vsel %vm204_vm1, %v9811_v53, 0.0  ;;  %v5690_v34 = vmul.f32 %v9811_v53, %v9811_v53 }
 0x703   : > { %v5650_v3 = vadd.f32 %v5649_v40, %v5648_v39 }
 0x704   : > { %v5751_v13 = vsel %vm204_vm1, %v5690_v34, 0.0  ;;  %v10489_v34 = vld [vmem:[#allocation36_spill] sm:$0xff] }
 0x705   : > { %v5752_v50 = vadd.f32 %v5751_v13, %v5750_v54  ;;  %v10490_v13 = vld [vmem:[#allocation37_spill] sm:$0xff] }
 0x707   : > { %v5555_v24 = vpop.f32.mrf.mxu1 }
 0x708   : > { %v9818_v22 = vadd.f32 %v5555_v24, %v5311_v25  ;;  %v10492_v24 = vld [vmem:[#allocation67_spill] sm:$0xff] }
 0x70a   : > { %v5651_v45 = vsel %vm204_vm1, %v9818_v22, 0.0  ;;  %v5691_v35 = vmul.f32 %v9818_v22, %v9818_v22 }
 0x70b   : > { %v5652_v49 = vadd.f32 %v5651_v45, %v5650_v3 }
 0x70c   : > { %v5753_v44 = vsel %vm204_vm1, %v5691_v35, 0.0 }
 0x70d   : > { %v5653_v38 = vrot.slane %v5652_v49, 4  ;;  %v5754_v42 = vadd.f32 %v5753_v44, %v5752_v50  ;;  %v10491_v50 = vld [vmem:[#allocation44_spill] sm:$0xff]  ;;  %v10493_v44 = vld [vmem:[#allocation34_spill] sm:$0xff] }
 0x70f   : > { %v5654_v11 = vadd.f32 %v5653_v38, %v5652_v49  ;;  %v5755_v23 = vrot.slane %v5754_v42, 4 }
 0x711   : > { %v5655_v16 = vrot.slane %v5654_v11, 2  ;;  %v5756_v43 = vadd.f32 %v5755_v23, %v5754_v42 }
 0x713   : > { %v5656_v62 = vadd.f32 %v5655_v16, %v5654_v11  ;;  %v5757_v17 = vrot.slane %v5756_v43, 2  ;;  %v10494_v11 = vld [vmem:[#allocation60_spill] sm:$0xff]  ;;  %v10495_v16 = vld [vmem:[#allocation58_spill] sm:$0xff] }
 0x715   : > { %v5657_v26 = vrot.slane %v5656_v62, 1  ;;  %v5758_v41 = vadd.f32 %v5757_v17, %v5756_v43 }
 0x717   : > { %v5658_v46 = vadd.f32 %v5657_v26, %v5656_v62  ;;  %v5759_v58 = vrot.slane %v5758_v41, 1  ;;  %v10496_v62 = vld [vmem:[#allocation61_spill] sm:$0xff] }
 0x719   : > { %v9826_v37 = vmul.f32 %v5658_v46, %v10488_v55  ;;  %v5760_v27 = vadd.f32 %v5759_v58, %v5758_v41 }
 0x71b   : > { %v5761_v57 = vmul.f32 %v5760_v27, %v10488_v55  ;;  %v5762_v36 = vmul.f32 %v9826_v37, %v9826_v37  ;;  %v5791_v1 = vsub.f32 %v9766_v8, %v9826_v37  ;;  %v5792_v6 = vsub.f32 %v9784_v12, %v9826_v37 }
 0x71c   : > { %v5793_v31 = vsub.f32 %v9793_v9, %v9826_v37  ;;  %v5794_v54 = vsub.f32 %v9802_v47, %v9826_v37  ;;  %v5795_v32 = vsub.f32 %v9811_v53, %v9826_v37  ;;  %v5796_v59 = vsub.f32 %v9818_v22, %v9826_v37  ;;  %v10502_v53 = vld [vmem:[#allocation17_spill] sm:$0xff]  ;;  %v10503_v22 = vld [vmem:[#allocation19_spill] sm:$0xff] }
 0x71d   : > { %v5763_v39 = vsub.f32 %v5761_v57, %v5762_v36  ;;  %v5765_v3 = vsub.f32 %v10489_v34, %v9826_v37  ;;  %v5766_v0 = vsub.f32 %v10490_v13, %v9826_v37  ;;  %v5767_v25 = vsub.f32 %v10491_v50, %v9826_v37 }
 0x71e   : > { %v5768_v45 = vsub.f32 %v10492_v24, %v9826_v37  ;;  %v5769_v35 = vsub.f32 %v9579_v48, %v9826_v37  ;;  %v5770_v49 = vsub.f32 %v9592_v52, %v9826_v37  ;;  %v5771_v38 = vsub.f32 %v10493_v44, %v9826_v37 }
 0x71f   : > { %v5764_v51 = vmax.f32 %v5763_v39, 0.0  ;;  %v5772_v23 = vsub.f32 %v10494_v11, %v9826_v37  ;;  %v5773_v43 = vsub.f32 %v10495_v16, %v9826_v37  ;;  %v5774_v17 = vsub.f32 %v10496_v62, %v9826_v37 }
 0x720   : > { %v5775_v26 = vsub.f32 %v9495_v28, %v9826_v37  ;;  %v5776_v48 = vsub.f32 %v9499_v61, %v9826_v37  ;;  %v5777_v52 = vsub.f32 %v9503_v20, %v9826_v37  ;;  %v5778_v46 = vsub.f32 %v9508_v5, %v9826_v37 }
 0x721   : > { %v5797_v56 = vadd.f32 1e-05, %v5764_v51  ;;  %v5779_v58 = vsub.f32 %v9513_v21, %v9826_v37  ;;  %v5780_v55 = vsub.f32 %v9517_v18, %v9826_v37  ;;  %v5781_v28 = vsub.f32 %v9521_v10, %v9826_v37 }
 0x722   : > { %v5782_v61 = vsub.f32 %v9526_v29, %v9826_v37  ;;  %v5783_v20 = vsub.f32 %v9533_v7, %v9826_v37  ;;  %v5784_v5 = vsub.f32 %v9540_v15, %v9826_v37  ;;  %v5785_v21 = vsub.f32 %v9559_v60, %v9826_v37 }
 0x723   : > { %6597 = vrsqrt.f32 %v5797_v56  ;;  %vm5804_vm9 = vweird.f32 %v5797_v56  ;;  %v5786_v18 = vsub.f32 %v9723_v14, %v9826_v37  ;;  %v5787_v10 = vsub.f32 %v9733_v33, %v9826_v37 }
 0x724   : > { %v5788_v29 = vsub.f32 %v9742_v4, %v9826_v37  ;;  %v5789_v7 = vsub.f32 %v9752_v30, %v9826_v37  ;;  %v5790_v57 = vsub.f32 %v9759_v19, %v9826_v37 }
 0x729   : > { %v6598_v2 = vpop.eup %6597 }
 0x72a   : > { %v5799_v63 = vmul.f32 %v6598_v2, %v5797_v56  ;;  %vm5805_vm8 = vweird.f32 %v6598_v2 }
 0x72b   : > { %vm5806_vm10 = vmor %vm5804_vm9, %vm5805_vm8 }
 0x72c   : > { %v5800_v40 = vmul.f32 %v6598_v2, %v5799_v63 }
 0x72e   : > { %v5801_v42 = vmul.f32 0.5, %v5800_v40 }
 0x730   : > { %v5802_v41 = vsub.f32 1.5, %v5801_v42 }
 0x732   : > { %v5803_v27 = vmul.f32 %v6598_v2, %v5802_v41  ;;  %v10505_v41 = vld [vmem:[#allocation23_spill] sm:$0xff] }
 0x734   : > { %v5807_v15 = vsel %vm5806_vm10, %v6598_v2, %v5803_v27 }
 0x735   : > { %v5808_v36 = vmul.f32 %v5807_v15, %v5765_v3  ;;  %v5809_v39 = vmul.f32 %v5807_v15, %v5766_v0  ;;  %v5810_v60 = vmul.f32 %v5807_v15, %v5767_v25  ;;  %v5811_v51 = vmul.f32 %v5807_v15, %v5768_v45 }
 0x736   : > { %v5812_v56 = vmul.f32 %v5807_v15, %v5769_v35  ;;  %v5813_v14 = vmul.f32 %v5807_v15, %v5770_v49  ;;  %v5814_v63 = vmul.f32 %v5807_v15, %v5771_v38  ;;  %v5815_v40 = vmul.f32 %v5807_v15, %v5772_v23 }
 0x737   : > { %v5816_v33 = vmul.f32 %v5807_v15, %v5773_v43  ;;  %v5817_v34 = vmul.f32 %v5807_v15, %v5774_v17  ;;  %v5818_v13 = vmul.f32 %v5807_v15, %v5775_v26  ;;  %v5819_v50 = vmul.f32 %v5807_v15, %v5776_v48  ;;  %v10498_v43 = vld [vmem:[#allocation11_spill] sm:$0xff]  ;;  %v10499_v17 = vld [vmem:[#allocation5_spill] sm:$0xff]  ;;  %v10500_v26 = vld [vmem:[#allocation6_spill] sm:$0xff] }
 0x738   : > { %v5820_v4 = vmul.f32 %v5807_v15, %v5777_v52  ;;  %v5821_v24 = vmul.f32 %v5807_v15, %v5778_v46  ;;  %v5822_v30 = vmul.f32 %v5807_v15, %v5779_v58  ;;  %v5823_v44 = vmul.f32 %v5807_v15, %v5780_v55  ;;  %v10506_v58 = vld [vmem:[#allocation25_spill] sm:$0xff] }
 0x739   : > { %v5824_v42 = vmul.f32 %v5807_v15, %v5781_v28  ;;  %v5825_v19 = vmul.f32 %v5807_v15, %v5782_v61  ;;  %v5826_v2 = vmul.f32 %v5807_v15, %v5783_v20  ;;  %v5827_v3 = vmul.f32 %v5807_v15, %v5784_v5  ;;  %v10507_v28 = vld [vmem:[#allocation27_spill] sm:$0xff]  ;;  %v10508_v20 = vld [vmem:[#allocation29_spill] sm:$0xff] }
 0x73a   : > { %v5828_v0 = vmul.f32 %v5807_v15, %v5785_v21  ;;  %v5829_v25 = vmul.f32 %v5807_v15, %v5786_v18  ;;  %v5830_v45 = vmul.f32 %v5807_v15, %v5787_v10  ;;  %v5831_v35 = vmul.f32 %v5807_v15, %v5788_v29  ;;  %v10509_v5 = vld [vmem:[#allocation31_spill] sm:$0xff]  ;;  %v10510_v18 = vld [vmem:[#allocation33_spill] sm:$0xff] }
 0x73b   : > { %v5832_v49 = vmul.f32 %v5807_v15, %v5789_v7  ;;  %v5833_v38 = vmul.f32 %v5807_v15, %v5790_v57  ;;  %v5834_v11 = vmul.f32 %v5807_v15, %v5791_v1  ;;  %v5835_v23 = vmul.f32 %v5807_v15, %v5792_v6  ;;  %v10497_v6 = vld [vmem:[#allocation9_spill] sm:$0xff]  ;;  %v10511_v29 = vld [vmem:[#allocation3_spill] sm:$0xff]  ;;  %v10512_v57 = vld [vmem:[#allocation4_spill] sm:$0xff] }
 0x73c   : > { %v5836_v16 = vmul.f32 %v5807_v15, %v5793_v31  ;;  %v5837_v8 = vmul.f32 %v5807_v15, %v5794_v54  ;;  %v5838_v12 = vmul.f32 %v5807_v15, %v5795_v32  ;;  %v5839_v1 = vmul.f32 %v5807_v15, %v5796_v59  ;;  %v10501_v54 = vld [vmem:[#allocation15_spill] sm:$0xff]  ;;  %v10504_v59 = vld [vmem:[#allocation21_spill] sm:$0xff] }
 0x73d   : > { %v5840_v9 = vadd.f32 %v5808_v36, %v10497_v6  ;;  %v5841_v62 = vadd.f32 %v5809_v39, %v10498_v43  ;;  %v5842_v31 = vadd.f32 %v5810_v60, %v10499_v17  ;;  %v5843_v47 = vadd.f32 %v5811_v51, %v10500_v26  ;;  %v10513_v36 = vld [vmem:[#allocation7_spill] sm:$0xff]  ;;  %v10514_v60 = vld [vmem:[#allocation8_spill] sm:$0xff]  ;;  %v10528_v17 = vld [vmem:[#allocation69_spill] sm:$0xff] }
 0x73e   : > { %v5844_v48 = vadd.f32 %v5812_v56, %v10501_v54  ;;  %v5845_v32 = vadd.f32 %v5813_v14, %v10502_v53  ;;  %v5846_v37 = vadd.f32 %v5814_v63, %v10503_v22  ;;  %v5847_v52 = vadd.f32 %v5815_v40, %v10504_v59  ;;  %v10515_v56 = vld [vmem:[#allocation10_spill] sm:$0xff]  ;;  %v10516_v63 = vld [vmem:[#allocation12_spill] sm:$0xff] }
 0x73f   : > { %5872 = vst.msk [vmem:[%s9906_s5] sm:$0xff] %vm204_vm1, %v5840_v9  ;;  %v5848_v46 = vadd.f32 %v5816_v33, %v10505_v41  ;;  %v5849_v55 = vadd.f32 %v5817_v34, %v10506_v58  ;;  %v5850_v61 = vadd.f32 %v5818_v13, %v10507_v28  ;;  %v5851_v27 = vadd.f32 %v5819_v50, %v10508_v20  ;;  %v10517_v33 = vld [vmem:[#allocation13_spill] sm:$0xff]  ;;  %v10518_v13 = vld [vmem:[#allocation14_spill] sm:$0xff]  ;;  %v10525_v6 = vld [vmem:[#allocation28_spill] sm:$0xff] }
 0x740   : > { %5873 = vst.msk [vmem:[%s9906_s5 + $0x8] sm:$0xff] %vm204_vm1, %v5841_v62  ;;  %v5852_v21 = vadd.f32 %v5820_v4, %v10509_v5  ;;  %v5853_v10 = vadd.f32 %v5821_v24, %v10510_v18  ;;  %v5854_v7 = vadd.f32 %v5822_v30, %v10511_v29  ;;  %v5855_v15 = vadd.f32 %v5823_v44, %v10512_v57  ;;  %v10519_v4 = vld [vmem:[#allocation16_spill] sm:$0xff]  ;;  %v10520_v30 = vld [vmem:[#allocation18_spill] sm:$0xff] }
 0x741   : > { %5874 = vst.msk [vmem:[%s9906_s5 + $0x10] sm:$0xff] %vm204_vm1, %v5842_v31  ;;  %v5856_v39 = vadd.f32 %v5824_v42, %v10513_v36  ;;  %v5857_v51 = vadd.f32 %v5825_v19, %v10514_v60  ;;  %v5858_v14 = vadd.f32 %v5826_v2, %v10515_v56  ;;  %v5859_v40 = vadd.f32 %v5827_v3, %v10516_v63  ;;  %v10521_v42 = vld [vmem:[#allocation20_spill] sm:$0xff]  ;;  %v10522_v2 = vld [vmem:[#allocation22_spill] sm:$0xff] }
 0x742   : > { %5875 = vst.msk [vmem:[%s9906_s5 + $0x18] sm:$0xff] %vm204_vm1, %v5843_v47  ;;  %v5860_v34 = vadd.f32 %v5828_v0, %v10517_v33  ;;  %v5861_v50 = vadd.f32 %v5829_v25, %v10518_v13  ;;  %v5862_v24 = vadd.f32 %v5830_v45, %v10519_v4  ;;  %v5863_v44 = vadd.f32 %v5831_v35, %v10520_v30  ;;  %v10523_v0 = vld [vmem:[#allocation24_spill] sm:$0xff]  ;;  %v10524_v45 = vld [vmem:[#allocation26_spill] sm:$0xff] }
 0x743   : > { %5876 = vst.msk [vmem:[%s9906_s5 + $0x20] sm:$0xff] %vm204_vm1, %v5844_v48  ;;  %v5864_v19 = vadd.f32 %v5832_v49, %v10521_v42  ;;  %v5865_v3 = vadd.f32 %v5833_v38, %v10522_v2  ;;  %v5866_v25 = vadd.f32 %v5834_v11, %v10523_v0  ;;  %v5867_v35 = vadd.f32 %v5835_v23, %v10524_v45  ;;  %v10526_v9 = vld [vmem:[#allocation30_spill] sm:$0xff]  ;;  %v10527_v38 = vld [vmem:[#allocation68_spill] sm:$0xff] }
 0x744   : > { %5877 = vst.msk [vmem:[%s9906_s5 + $0x28] sm:$0xff] %vm204_vm1, %v5845_v32  ;;  %v5868_v49 = vadd.f32 %v5836_v16, %v10525_v6  ;;  %v5869_v43 = vadd.f32 %v5837_v8, %v10526_v9  ;;  %v5870_v62 = vadd.f32 %v5838_v12, %v10527_v38  ;;  %v5871_v11 = vadd.f32 %v5839_v1, %v10528_v17 }
 0x745   : > { %5878 = vst.msk [vmem:[%s9906_s5 + $0x30] sm:$0xff] %vm204_vm1, %v5846_v37 }
 0x746   : > { %5879 = vst.msk [vmem:[%s9906_s5 + $0x38] sm:$0xff] %vm204_vm1, %v5847_v52 }
 0x747   : > { %5880 = vst.msk [vmem:[%s9906_s5 + $0x40] sm:$0xff] %vm204_vm1, %v5848_v46 }
 0x748   : > { %5881 = vst.msk [vmem:[%s9906_s5 + $0x48] sm:$0xff] %vm204_vm1, %v5849_v55 }
 0x749   : > { %5882 = vst.msk [vmem:[%s9906_s5 + $0x50] sm:$0xff] %vm204_vm1, %v5850_v61 }
 0x74a   : > { %5883 = vst.msk [vmem:[%s9906_s5 + $0x58] sm:$0xff] %vm204_vm1, %v5851_v27 }
 0x74b   : > { %5884 = vst.msk [vmem:[%s9906_s5 + $0x60] sm:$0xff] %vm204_vm1, %v5852_v21 }
 0x74c   : > { %5885 = vst.msk [vmem:[%s9906_s5 + $0x68] sm:$0xff] %vm204_vm1, %v5853_v10 }
 0x74d   : > { %5886 = vst.msk [vmem:[%s9906_s5 + $0x70] sm:$0xff] %vm204_vm1, %v5854_v7 }
 0x74e   : > { %5887 = vst.msk [vmem:[%s9906_s5 + $0x78] sm:$0xff] %vm204_vm1, %v5855_v15 }
 0x74f   : > { %5888 = vst.msk [vmem:[%s9906_s5 + $0x80] sm:$0xff] %vm204_vm1, %v5856_v39 }
 0x750   : > { %5889 = vst.msk [vmem:[%s9906_s5 + $0x88] sm:$0xff] %vm204_vm1, %v5857_v51 }
 0x751   : > { %5890 = vst.msk [vmem:[%s9906_s5 + $0x90] sm:$0xff] %vm204_vm1, %v5858_v14 }
 0x752   : > { %5891 = vst.msk [vmem:[%s9906_s5 + $0x98] sm:$0xff] %vm204_vm1, %v5859_v40 }
 0x753   : > { %5892 = vst.msk [vmem:[%s9906_s5 + $0xa0] sm:$0xff] %vm204_vm1, %v5860_v34 }
 0x754   : > { %5893 = vst.msk [vmem:[%s9906_s5 + $0xa8] sm:$0xff] %vm204_vm1, %v5861_v50 }
 0x755   : > { %5894 = vst.msk [vmem:[%s9906_s5 + $0xb0] sm:$0xff] %vm204_vm1, %v5862_v24 }
 0x756   : > { %5895 = vst.msk [vmem:[%s9906_s5 + $0xb8] sm:$0xff] %vm204_vm1, %v5863_v44 }
 0x757   : > { %5896 = vst.msk [vmem:[%s9906_s5 + $0xc0] sm:$0xff] %vm204_vm1, %v5864_v19 }
 0x758   : > { %5897 = vst.msk [vmem:[%s9906_s5 + $0xc8] sm:$0xff] %vm204_vm1, %v5865_v3 }
 0x759   : > { %5898 = vst.msk [vmem:[%s9906_s5 + $0xd0] sm:$0xff] %vm204_vm1, %v5866_v25 }
 0x75a   : > { %5899 = vst.msk [vmem:[%s9906_s5 + $0xd8] sm:$0xff] %vm204_vm1, %v5867_v35 }
 0x75b   : > { %5900 = vst.msk [vmem:[%s9906_s5 + $0xe0] sm:$0xff] %vm204_vm1, %v5868_v49 }
 0x75c   : > { %5901 = vst.msk [vmem:[%s9906_s5 + $0xe8] sm:$0xff] %vm204_vm1, %v5869_v43 }
 0x75d   : > { %5902 = vst.msk [vmem:[%s9906_s5 + $0xf0] sm:$0xff] %vm204_vm1, %v5870_v62 }
 0x75e   : > { %5903 = vst.msk [vmem:[%s9906_s5 + $0xf8] sm:$0xff] %vm204_vm1, %v5871_v11 }
 0x75f PF: > { %s13_s12 = sadd.s32 1, %s6605_s12  }
 0x760   : > { %p10_p4 = scmp.ge.s32.totalorder %s13_s12, 4  }
 0x762   :  { %12 = sbr.rel (!%p10_p4) target bundleno = 1 (0x1), region = 82 }

</bundles_post_ra>
